<compile_context>
chip_gen: v6e
topology: v6e:2x2x1
jax: 0.10.0
libtpu: 0.0.40
codegen_flags: <defaults>
</compile_context>

<pallas_src>
import math
import numpy as np
import jax
import jax.numpy as jnp
from jax import lax
from jax.experimental import pallas as pl
from jax.experimental.pallas import tpu as pltpu


GRAPHS_PER_BLOCK = 8        # GB: graphs folded into the row dim per grid step


# ----------------------------- helpers (traced inside the kernel) -------------
def _gelu(x):
    # exact erf-based GELU == torch.nn.GELU() default
    return 0.5 * x * (1.0 + lax.erf(x * (1.0 / math.sqrt(2.0))))


def _layernorm(x, gamma, beta, eps=1e-5):
    mu = jnp.mean(x, axis=-1, keepdims=True)
    var = jnp.mean(jnp.square(x - mu), axis=-1, keepdims=True)
    return (x - mu) * lax.rsqrt(var + eps) * gamma + beta


# ----------------------------- fused kernel -----------------------------------
def fused_lstm_layer_kernel(
        dm_ref,        # [GB, K*M, M]   bf16 (0/1 masks)
        dense_ref,     # [GB, M, D]     f32
        m1ln_ref,      # [2, D]         (gamma; beta) of MLP1 LayerNorm
        m1w1_ref, m1b1_ref, m1w2_ref, m1b2_ref,
        ln_ref,        # [2, D]         (gamma; beta) of pre-LSTM LayerNorm
        wih_ref,       # [D, 4V]        concatenated input gate weights (i,f,g,o)
        whh_ref,       # [V, 4V]        concatenated hidden gate weights
        bias_ref,      # [1, 4V]        b_ih + b_hh
        mw_ref,        # [V, 2D]        MLP2 linear1 | linear2
        mb_ref,        # [1, 2D]
        out_ref,       # [GB, M, D]
        xg_ref):       # scratch VMEM [K*GB*M, 4V]  (hop-major pre-activations)
    GB, M, D = dense_ref.shape
    K = dm_ref.shape[1] // M
    V = whh_ref.shape[0]
    R = GB * M                                       # rows per hop (graph-block)

    dense = dense_ref[...]                           # [GB, M, D]
    dm = dm_ref[...].astype(jnp.float32)             # [GB, K*M, M]

    # 1) hop aggregation: all K hops of all GB graphs in one batched MXU matmul
    agg = jnp.einsum('gkm,gmd->gkd', dm, dense,
                     preferred_element_type=jnp.float32)         # [GB, K*M, D]

    wih = wih_ref[...]
    bias = bias_ref[...]
    lng = ln_ref[0:1, :]
    lnb = ln_ref[1:2, :]

    # 2/3) per-hop: hop 0 also feeds the MLP1 residual branch (written straight
    # to out_ref so it does not stay live in vregs); every hop's LayerNorm and
    # the single 128-lane input matmul are hoisted out of the recurrence and
    # parked hop-major in VMEM scratch.
    for k in range(K):
        agg_k = agg[:, k * M:(k + 1) * M, :].reshape(R, D)       # [R, D]
        if k == 0:
            xn0 = _layernorm(agg_k, m1ln_ref[0:1, :], m1ln_ref[1:2, :])
            t0 = _gelu(jnp.dot(xn0, m1w1_ref[...],
                               preferred_element_type=jnp.float32) + m1b1_ref[...])
            skip = (jnp.dot(t0, m1w2_ref[...],
                            preferred_element_type=jnp.float32) + m1b2_ref[...]
                    + agg_k)
            out_ref[...] = skip.reshape(GB, M, D)
        xn_k = _layernorm(agg_k, lng, lnb)
        xg_ref[k * R:(k + 1) * R, :] = (
            jnp.dot(xn_k, wih, preferred_element_type=jnp.float32) + bias)

    # 4) LSTM recurrence over hops in flipped order (torch.flip == index math).
    #    One concatenated [V,4V] matmul per step; per-step pre-activations are
    #    re-loaded from VMEM scratch so vreg pressure stays bounded.
    whh = whh_ref[...]
    h = jnp.zeros((R, V), jnp.float32)
    c = jnp.zeros((R, V), jnp.float32)
    for t in range(K):                               # K tiny & static: unroll
        k = K - 1 - t
        gates = xg_ref[k * R:(k + 1) * R, :] + jnp.dot(
            h, whh, preferred_element_type=jnp.float32)          # [R, 4V]
        ig = jax.nn.sigmoid(gates[:, 0 * V:1 * V])               # torch order i,f,g,o
        fg = jax.nn.sigmoid(gates[:, 1 * V:2 * V])
        gg = jnp.tanh(gates[:, 2 * V:3 * V])
        og = jax.nn.sigmoid(gates[:, 3 * V:4 * V])
        c = fg * c + ig * gg
        h = og * jnp.tanh(c)

    # 5) MLP2 (full-glu) on the final LSTM step only, fused linear1|linear2,
    #    plus the skip already stored in out_ref.
    z = _gelu(h)
    ab = jnp.dot(z, mw_ref[...], preferred_element_type=jnp.float32) + mb_ref[...]
    glu = ab[:, :D] * jax.nn.sigmoid(ab[:, D:])
    out_ref[...] = out_ref[...] + glu.reshape(GB, M, D)


# ----------------------------- wrapper -----------------------------------------
def _resident_spec(arr):
    shp = arr.shape
    return pl.BlockSpec(shp, lambda b, _n=len(shp): (0,) * _n)   # resident in VMEM


def fused_call(dm_r, dense, weights, gb):
    B_pad, M, D = dense.shape
    KM = dm_r.shape[1]
    n_blocks = B_pad // gb
    four_v = weights[7].shape[1]                                 # whh is [V, 4V]
    in_specs = [
        pl.BlockSpec((gb, KM, M), lambda b: (b, 0, 0)),          # per-block masks
        pl.BlockSpec((gb, M, D), lambda b: (b, 0, 0)),           # per-block feats
    ] + [_resident_spec(w) for w in weights]
    return pl.pallas_call(
        fused_lstm_layer_kernel,
        out_shape=jax.ShapeDtypeStruct((B_pad, M, D), jnp.float32),
        grid=(n_blocks,),
        in_specs=in_specs,
        out_specs=pl.BlockSpec((gb, M, D), lambda b: (b, 0, 0)),
        scratch_shapes=[pltpu.VMEM((gb * KM, four_v), jnp.float32)],
        compiler_params=pltpu.CompilerParams(
            dimension_semantics=("parallel",)),
    )(dm_r, dense, *weights)


def flatten_params(params):
    m1g, m1b, m1w1, m1b1, m1w2, m1b2 = params["mlp1"]
    lng, lnb = params["ln"]
    wih_t, whh_t, bias = params["lstm"]
    mw1, mb1, mw2, mb2 = params["mlp2"]
    # consolidate tiny resident refs: LN gamma/beta pairs, fused MLP2 weights.
    m1ln = jnp.concatenate([m1g, m1b], axis=0)       # [2, D]
    ln2 = jnp.concatenate([lng, lnb], axis=0)        # [2, D]
    mw = jnp.concatenate([mw1, mw2], axis=1)         # [V, 2D]
    mb = jnp.concatenate([mb1, mb2], axis=1)         # [1, 2D]
    return (m1ln, m1w1, m1b1, m1w2, m1b2, ln2, wih_t, whh_t, bias, mw, mb)


# ----------------------------- host glue ----------------------------------------
def to_dense_batch_np(x_np, labels_np):
    # PyG's to_dense_batch: pad per-graph node features to the max graph size.
    # TODO(synk): node->(graph,slot) scatter stays as host-side glue (data-dependent).
    N, D = x_np.shape
    B = int(labels_np.max()) + 1
    counts = np.bincount(labels_np, minlength=B)
    M = int(counts.max())
    pos = np.zeros(N, dtype=np.int32)
    running = np.zeros(B, dtype=np.int32)
    for n in range(N):
        b = int(labels_np[n])
        pos[n] = running[b]
        running[b] += 1
    dense = np.zeros((B, M, D), dtype=np.float32)
    dense[labels_np, pos] = x_np
    mask = np.zeros((B, M), dtype=bool)
    mask[labels_np, pos] = True
    return jnp.asarray(dense), mask


def lstm_layer_forward(params, x_nodes, graph_labels, dist_masks,
                       graphs_per_block=GRAPHS_PER_BLOCK):
    # dist_masks: [B, K, M, M]; returns new batch.x of shape [N, dim_hidden]
    dense, mask = to_dense_batch_np(np.asarray(x_nodes), np.asarray(graph_labels))
    B, M, D = dense.shape
    K = dist_masks.shape[1]
    gb = max(1, min(graphs_per_block, B))
    B_pad = ((B + gb - 1) // gb) * gb

    # masks streamed as bf16 (exact 0/1 -> half the HBM bytes of the largest
    # input); hop axis folded into the matmul rows on the host (free XLA reshape).
    dm_r = jnp.asarray(dist_masks, jnp.bfloat16).reshape(B, K * M, M)
    if B_pad != B:
        dense = jnp.pad(dense, ((0, B_pad - B), (0, 0), (0, 0)))
        dm_r = jnp.pad(dm_r, ((0, B_pad - B), (0, 0), (0, 0)))
        mask_pad = np.zeros((B_pad, M), dtype=bool)
        mask_pad[:B] = mask
        mask = mask_pad

    out_dense = fused_call(dm_r, dense, flatten_params(params), gb)  # [B_pad, M, D]
    # compaction back to per-node rows; padded slots computed garbage inside the
    # kernel (finite, see header note) and are simply discarded here.
    return out_dense.reshape(B_pad * M, D)[np.asarray(mask).reshape(-1)]


# ----------------------------- pure-JAX reference --------------------------------
def reference_forward(params, x_nodes, graph_labels, dist_masks):
    dense, mask = to_dense_batch_np(np.asarray(x_nodes), np.asarray(graph_labels))
    dm_t = jnp.transpose(jnp.asarray(dist_masks, jnp.float32), (1, 0, 2, 3))
    agg = jnp.einsum("kbij,bjd->kbid", dm_t, dense)
    K, B, M, D = agg.shape
    h = agg.reshape(K, B * M, D)[:, mask.reshape(-1), :]

    def ln(x, g, b):
        mu = x.mean(-1, keepdims=True)
        var = ((x - mu) ** 2).mean(-1, keepdims=True)
        return (x - mu) / jnp.sqrt(var + 1e-5) * g + b

    def gelu(x):
        return 0.5 * x * (1.0 + jax.scipy.special.erf(x / math.sqrt(2.0)))

    g1, b1_, w1, bb1, w2, bb2 = params["mlp1"]
    t = gelu(ln(h, g1, b1_) @ w1 + bb1)
    x_skip = (t @ w2 + bb2) + h

    lng, lnb = params["ln"]
    wih_t, whh_t, bias = params["lstm"]
    V = whh_t.shape[0]
    N = h.shape[1]
    xn = ln(jnp.flip(h, axis=0), lng, lnb)
    hh = jnp.zeros((N, V), jnp.float32)
    cc = jnp.zeros((N, V), jnp.float32)
    ys = []
    for t_ in range(K):
        gates = xn[t_] @ wih_t + hh @ whh_t + bias
        ig = jax.nn.sigmoid(gates[:, :V])
        fg = jax.nn.sigmoid(gates[:, V:2 * V])
        gg = jnp.tanh(gates[:, 2 * V:3 * V])
        og = jax.nn.sigmoid(gates[:, 3 * V:])
        cc = fg * cc + ig * gg
        hh = og * jnp.tanh(cc)
        ys.append(hh)
    y = jnp.stack(ys, axis=0)

    mw1, mb1, mw2, mb2 = params["mlp2"]
    z = gelu(y)
    z = (z @ mw1 + mb1) * jax.nn.sigmoid(z @ mw2 + mb2)
    return z[-1] + x_skip[0]


# ----------------------------- parameter init -------------------------------------
def init_params(key, D, V, expand=1):
    ks = jax.random.split(key, 16)
    s = 0.1
    mlp1 = (
        1.0 + s * jax.random.normal(ks[0], (1, D)),            # LN gamma
        s * jax.random.normal(ks[1], (1, D)),                  # LN beta
        s * jax.random.normal(ks[2], (D, expand * D)),         # linear1.weight^T
        s * jax.random.normal(ks[3], (1, expand * D)),         # linear1.bias
        s * jax.random.normal(ks[4], (expand * D, D)),         # linear2.weight^T
        s * jax.random.normal(ks[5], (1, D)),                  # linear2.bias
    )
    ln = (1.0 + s * jax.random.normal(ks[6], (1, D)),
          s * jax.random.normal(ks[7], (1, D)))
    lstm = (
        s * jax.random.normal(ks[8], (D, 4 * V)),              # weight_ih^T (i,f,g,o)
        s * jax.random.normal(ks[9], (V, 4 * V)),              # weight_hh^T
        s * jax.random.normal(ks[10], (1, 4 * V)),             # b_ih + b_hh combined
    )
    mlp2 = (
        s * jax.random.normal(ks[11], (V, D)),                 # mlp2.linear1.weight^T
        s * jax.random.normal(ks[12], (1, D)),
        s * jax.random.normal(ks[13], (V, D)),                 # mlp2.linear2.weight^T
        s * jax.random.normal(ks[14], (1, D)),
    )
    return {"mlp1": mlp1, "ln": ln, "lstm": lstm, "mlp2": mlp2}


# ----------------------------- main -------------------------------------------------
if __name__ == "__main__":
    key = jax.random.PRNGKey(0)
    D = 32          # dim_hidden
    V = 32          # dim_v (LSTM hidden size)
    B = 16          # graphs in the batch  (GB=8 -> grid of 2 steps)
    M = 8           # nodes per graph (equal-size graphs -> mask all True)
    K = 4           # number of distance masks / hops
    N = B * M       # total nodes

    k_x, k_dm, k_p = jax.random.split(key, 3)
    x_nodes = jax.random.normal(k_x, (N, D), dtype=jnp.float32)           # batch.x
    graph_labels = np.repeat(np.arange(B), M).astype(np.int32)            # batch.graph_labels
    dist_masks = (jax.random.uniform(k_dm, (B, K, M, M)) < 0.5)           # bool -> .float()

    params = init_params(k_p, D, V, expand=1)

    out = lstm_layer_forward(params, x_nodes, graph_labels, dist_masks,
                             graphs_per_block=GRAPHS_PER_BLOCK)
    out = jax.block_until_ready(out)

    ref = reference_forward(params, x_nodes, graph_labels, dist_masks)
    assert out.shape == (N, D)
    assert np.allclose(np.asarray(out), np.asarray(ref), rtol=1e-4, atol=1e-4), (
        "Pallas output mismatch vs pure-JAX reference")

    print("KERNEL_OK")
</pallas_src>

<mosaic_0001>
module attributes {stable_mosaic.version = 11 : i64} {
  func.func @fused_lstm_layer_kernel(%arg0: i32, %arg1: memref<8x32x8xbf16, #tpu.memory_space<vmem>>, %arg2: memref<8x8x32xf32, #tpu.memory_space<vmem>>, %arg3: memref<2x32xf32, #tpu.memory_space<vmem>>, %arg4: memref<32x32xf32, #tpu.memory_space<vmem>>, %arg5: memref<1x32xf32, #tpu.memory_space<vmem>>, %arg6: memref<32x32xf32, #tpu.memory_space<vmem>>, %arg7: memref<1x32xf32, #tpu.memory_space<vmem>>, %arg8: memref<2x32xf32, #tpu.memory_space<vmem>>, %arg9: memref<32x128xf32, #tpu.memory_space<vmem>>, %arg10: memref<32x128xf32, #tpu.memory_space<vmem>>, %arg11: memref<1x128xf32, #tpu.memory_space<vmem>>, %arg12: memref<32x64xf32, #tpu.memory_space<vmem>>, %arg13: memref<1x64xf32, #tpu.memory_space<vmem>>, %arg14: memref<8x8x32xf32, #tpu.memory_space<vmem>>, %arg15: memref<256x128xf32, #tpu.memory_space<vmem>>) attributes {dimension_semantics = [#tpu.dimension_semantics<parallel>], iteration_bounds = array<i64: 2>, scalar_prefetch = 0 : i64, scratch_operands = 1 : i64, tpu.core_type = #tpu.core_type<tc>, window_params = [{transform_indices = @transform_0, window_bounds = array<i64: 8, 32, 8>}, {transform_indices = @transform_1, window_bounds = array<i64: 8, 8, 32>}, {pipeline_mode = #tpu.pipeline_mode<synchronous>, transform_indices = @transform_2, window_bounds = array<i64: 2, 32>}, {pipeline_mode = #tpu.pipeline_mode<synchronous>, transform_indices = @transform_3, window_bounds = array<i64: 32, 32>}, {pipeline_mode = #tpu.pipeline_mode<synchronous>, transform_indices = @transform_4, window_bounds = array<i64: 1, 32>}, {pipeline_mode = #tpu.pipeline_mode<synchronous>, transform_indices = @transform_5, window_bounds = array<i64: 32, 32>}, {pipeline_mode = #tpu.pipeline_mode<synchronous>, transform_indices = @transform_6, window_bounds = array<i64: 1, 32>}, {pipeline_mode = #tpu.pipeline_mode<synchronous>, transform_indices = @transform_7, window_bounds = array<i64: 2, 32>}, {pipeline_mode = #tpu.pipeline_mode<synchronous>, transform_indices = @transform_8, window_bounds = array<i64: 32, 128>}, {pipeline_mode = #tpu.pipeline_mode<synchronous>, transform_indices = @transform_9, window_bounds = array<i64: 32, 128>}, {pipeline_mode = #tpu.pipeline_mode<synchronous>, transform_indices = @transform_10, window_bounds = array<i64: 1, 128>}, {pipeline_mode = #tpu.pipeline_mode<synchronous>, transform_indices = @transform_11, window_bounds = array<i64: 32, 64>}, {pipeline_mode = #tpu.pipeline_mode<synchronous>, transform_indices = @transform_12, window_bounds = array<i64: 1, 64>}, {transform_indices = @transform_13, window_bounds = array<i64: 8, 8, 32>}]} {
    %c0 = arith.constant 0 : index
    %c0_0 = arith.constant 0 : index
    %c0_1 = arith.constant 0 : index
    %0 = vector.load %arg2[%c0, %c0_0, %c0_1] : memref<8x8x32xf32, #tpu.memory_space<vmem>>, vector<8x8x32xf32>
    %c0_2 = arith.constant 0 : index
    %c0_3 = arith.constant 0 : index
    %c0_4 = arith.constant 0 : index
    %1 = vector.load %arg1[%c0_2, %c0_3, %c0_4] : memref<8x32x8xbf16, #tpu.memory_space<vmem>>, vector<8x32x8xbf16>
    %2 = arith.extf %1 : vector<8x32x8xbf16> to vector<8x32x8xf32>
    "tpu.trace_start"() <{level = 10 : i32, message = "gkm,gmd->gkd"}> : () -> ()
    %cst = arith.constant dense<0.000000e+00> : vector<8x32x32xf32>
    %3 = tpu.matmul %2, %0, %cst {dimension_numbers = #tpu.dot_dimension_numbers<[2], [1], [1], [2], [0, 0, 0, 1, 1, 2], [0], [0]>} : vector<8x32x8xf32>, vector<8x8x32xf32>, vector<8x32x32xf32> -> vector<8x32x32xf32>
    "tpu.trace_stop"() : () -> ()
    %c0_5 = arith.constant 0 : index
    %c0_6 = arith.constant 0 : index
    %4 = vector.load %arg9[%c0_5, %c0_6] : memref<32x128xf32, #tpu.memory_space<vmem>>, vector<32x128xf32>
    %c0_7 = arith.constant 0 : index
    %c0_8 = arith.constant 0 : index
    %5 = vector.load %arg11[%c0_7, %c0_8] : memref<1x128xf32, #tpu.memory_space<vmem>>, vector<1x128xf32>
    %c0_9 = arith.constant 0 : index
    %c0_10 = arith.constant 0 : index
    %6 = vector.load %arg8[%c0_9, %c0_10] : memref<2x32xf32, #tpu.memory_space<vmem>>, vector<1x32xf32>
    %c1 = arith.constant 1 : index
    %c0_11 = arith.constant 0 : index
    %7 = vector.load %arg8[%c1, %c0_11] : memref<2x32xf32, #tpu.memory_space<vmem>>, vector<1x32xf32>
    %8 = vector.extract_strided_slice %3 {offsets = [0, 0, 0], sizes = [8, 8, 32], strides = [1, 1, 1]} : vector<8x32x32xf32> to vector<8x8x32xf32>
    %9 = vector.shape_cast %8 : vector<8x8x32xf32> to vector<64x32xf32>
    %c0_12 = arith.constant 0 : index
    %c0_13 = arith.constant 0 : index
    %10 = vector.load %arg3[%c0_12, %c0_13] : memref<2x32xf32, #tpu.memory_space<vmem>>, vector<1x32xf32>
    %c1_14 = arith.constant 1 : index
    %c0_15 = arith.constant 0 : index
    %11 = vector.load %arg3[%c1_14, %c0_15] : memref<2x32xf32, #tpu.memory_space<vmem>>, vector<1x32xf32>
    %cst_16 = arith.constant dense<0.000000e+00> : vector<64xf32>
    %12 = vector.multi_reduction <add>, %9, %cst_16 [1] : vector<64x32xf32> to vector<64xf32>
    %13 = vector.shape_cast %12 : vector<64xf32> to vector<64x1xf32>
    %cst_17 = arith.constant 3.200000e+01 : f32
    %14 = vector.broadcast %cst_17 : f32 to vector<64x1xf32>
    %15 = arith.divf %13, %14 : vector<64x1xf32>
    %16 = vector.broadcast %15 : vector<64x1xf32> to vector<64x32xf32>
    %17 = arith.subf %9, %16 : vector<64x32xf32>
    %18 = arith.mulf %17, %17 : vector<64x32xf32>
    %cst_18 = arith.constant dense<0.000000e+00> : vector<64xf32>
    %19 = vector.multi_reduction <add>, %18, %cst_18 [1] : vector<64x32xf32> to vector<64xf32>
    %20 = vector.shape_cast %19 : vector<64xf32> to vector<64x1xf32>
    %cst_19 = arith.constant 3.200000e+01 : f32
    %21 = vector.broadcast %cst_19 : f32 to vector<64x1xf32>
    %22 = arith.divf %20, %21 : vector<64x1xf32>
    %23 = vector.broadcast %15 : vector<64x1xf32> to vector<64x32xf32>
    %24 = arith.subf %9, %23 : vector<64x32xf32>
    %cst_20 = arith.constant 9.99999974E-6 : f32
    %25 = vector.broadcast %cst_20 : f32 to vector<64x1xf32>
    %26 = arith.addf %22, %25 : vector<64x1xf32>
    %27 = math.rsqrt %26 : vector<64x1xf32>
    %28 = vector.broadcast %27 : vector<64x1xf32> to vector<64x32xf32>
    %29 = arith.mulf %24, %28 : vector<64x32xf32>
    %30 = vector.broadcast %10 : vector<1x32xf32> to vector<64x32xf32>
    %31 = arith.mulf %29, %30 : vector<64x32xf32>
    %32 = vector.broadcast %11 : vector<1x32xf32> to vector<64x32xf32>
    %33 = arith.addf %31, %32 : vector<64x32xf32>
    %c0_21 = arith.constant 0 : index
    %c0_22 = arith.constant 0 : index
    %34 = vector.load %arg4[%c0_21, %c0_22] : memref<32x32xf32, #tpu.memory_space<vmem>>, vector<32x32xf32>
    %cst_23 = arith.constant dense<0.000000e+00> : vector<64x32xf32>
    %35 = tpu.matmul %33, %34, %cst_23 {dimension_numbers = #tpu.dot_dimension_numbers<[1], [0], [0], [1], [0, 0, 1, 1], [], []>} : vector<64x32xf32>, vector<32x32xf32>, vector<64x32xf32> -> vector<64x32xf32>
    %c0_24 = arith.constant 0 : index
    %c0_25 = arith.constant 0 : index
    %36 = vector.load %arg5[%c0_24, %c0_25] : memref<1x32xf32, #tpu.memory_space<vmem>>, vector<1x32xf32>
    %37 = vector.broadcast %36 : vector<1x32xf32> to vector<64x32xf32>
    %38 = arith.addf %35, %37 : vector<64x32xf32>
    %cst_26 = arith.constant 5.000000e-01 : f32
    %39 = vector.broadcast %cst_26 : f32 to vector<64x32xf32>
    %40 = arith.mulf %39, %38 : vector<64x32xf32>
    %cst_27 = arith.constant 0.707106769 : f32
    %41 = vector.broadcast %cst_27 : f32 to vector<64x32xf32>
    %42 = arith.mulf %38, %41 : vector<64x32xf32>
    %43 = math.erf %42 : vector<64x32xf32>
    %cst_28 = arith.constant 1.000000e+00 : f32
    %44 = vector.broadcast %cst_28 : f32 to vector<64x32xf32>
    %45 = arith.addf %44, %43 : vector<64x32xf32>
    %46 = arith.mulf %40, %45 : vector<64x32xf32>
    %c0_29 = arith.constant 0 : index
    %c0_30 = arith.constant 0 : index
    %47 = vector.load %arg6[%c0_29, %c0_30] : memref<32x32xf32, #tpu.memory_space<vmem>>, vector<32x32xf32>
    %cst_31 = arith.constant dense<0.000000e+00> : vector<64x32xf32>
    %48 = tpu.matmul %46, %47, %cst_31 {dimension_numbers = #tpu.dot_dimension_numbers<[1], [0], [0], [1], [0, 0, 1, 1], [], []>} : vector<64x32xf32>, vector<32x32xf32>, vector<64x32xf32> -> vector<64x32xf32>
    %c0_32 = arith.constant 0 : index
    %c0_33 = arith.constant 0 : index
    %49 = vector.load %arg7[%c0_32, %c0_33] : memref<1x32xf32, #tpu.memory_space<vmem>>, vector<1x32xf32>
    %50 = vector.broadcast %49 : vector<1x32xf32> to vector<64x32xf32>
    %51 = arith.addf %48, %50 : vector<64x32xf32>
    %52 = arith.addf %51, %9 : vector<64x32xf32>
    %53 = vector.shape_cast %52 : vector<64x32xf32> to vector<8x8x32xf32>
    %c0_34 = arith.constant 0 : index
    %c0_35 = arith.constant 0 : index
    %c0_36 = arith.constant 0 : index
    %54 = vector.load %arg14[%c0_34, %c0_35, %c0_36] : memref<8x8x32xf32, #tpu.memory_space<vmem>>, vector<8x8x32xf32>
    tpu.vector_store %arg14[%c0_34, %c0_35, %c0_36], %53 {strides = array<i32>} : memref<8x8x32xf32, #tpu.memory_space<vmem>>, vector<8x8x32xf32>,
    %cst_37 = arith.constant dense<0.000000e+00> : vector<64xf32>
    %55 = vector.multi_reduction <add>, %9, %cst_37 [1] : vector<64x32xf32> to vector<64xf32>
    %56 = vector.shape_cast %55 : vector<64xf32> to vector<64x1xf32>
    %cst_38 = arith.constant 3.200000e+01 : f32
    %57 = vector.broadcast %cst_38 : f32 to vector<64x1xf32>
    %58 = arith.divf %56, %57 : vector<64x1xf32>
    %59 = vector.broadcast %58 : vector<64x1xf32> to vector<64x32xf32>
    %60 = arith.subf %9, %59 : vector<64x32xf32>
    %61 = arith.mulf %60, %60 : vector<64x32xf32>
    %cst_39 = arith.constant dense<0.000000e+00> : vector<64xf32>
    %62 = vector.multi_reduction <add>, %61, %cst_39 [1] : vector<64x32xf32> to vector<64xf32>
    %63 = vector.shape_cast %62 : vector<64xf32> to vector<64x1xf32>
    %cst_40 = arith.constant 3.200000e+01 : f32
    %64 = vector.broadcast %cst_40 : f32 to vector<64x1xf32>
    %65 = arith.divf %63, %64 : vector<64x1xf32>
    %66 = vector.broadcast %58 : vector<64x1xf32> to vector<64x32xf32>
    %67 = arith.subf %9, %66 : vector<64x32xf32>
    %cst_41 = arith.constant 9.99999974E-6 : f32
    %68 = vector.broadcast %cst_41 : f32 to vector<64x1xf32>
    %69 = arith.addf %65, %68 : vector<64x1xf32>
    %70 = math.rsqrt %69 : vector<64x1xf32>
    %71 = vector.broadcast %70 : vector<64x1xf32> to vector<64x32xf32>
    %72 = arith.mulf %67, %71 : vector<64x32xf32>
    %73 = vector.broadcast %6 : vector<1x32xf32> to vector<64x32xf32>
    %74 = arith.mulf %72, %73 : vector<64x32xf32>
    %75 = vector.broadcast %7 : vector<1x32xf32> to vector<64x32xf32>
    %76 = arith.addf %74, %75 : vector<64x32xf32>
    %cst_42 = arith.constant dense<0.000000e+00> : vector<64x128xf32>
    %77 = tpu.matmul %76, %4, %cst_42 {dimension_numbers = #tpu.dot_dimension_numbers<[1], [0], [0], [1], [0, 0, 1, 1], [], []>} : vector<64x32xf32>, vector<32x128xf32>, vector<64x128xf32> -> vector<64x128xf32>
    %78 = vector.broadcast %5 : vector<1x128xf32> to vector<64x128xf32>
    %79 = arith.addf %77, %78 : vector<64x128xf32>
    %c0_43 = arith.constant 0 : index
    %c0_44 = arith.constant 0 : index
    %80 = vector.load %arg15[%c0_43, %c0_44] : memref<256x128xf32, #tpu.memory_space<vmem>>, vector<64x128xf32>
    tpu.vector_store %arg15[%c0_43, %c0_44], %79 {strides = array<i32>} : memref<256x128xf32, #tpu.memory_space<vmem>>, vector<64x128xf32>,
    %81 = vector.extract_strided_slice %3 {offsets = [0, 8, 0], sizes = [8, 8, 32], strides = [1, 1, 1]} : vector<8x32x32xf32> to vector<8x8x32xf32>
    %82 = vector.shape_cast %81 : vector<8x8x32xf32> to vector<64x32xf32>
    %cst_45 = arith.constant dense<0.000000e+00> : vector<64xf32>
    %83 = vector.multi_reduction <add>, %82, %cst_45 [1] : vector<64x32xf32> to vector<64xf32>
    %84 = vector.shape_cast %83 : vector<64xf32> to vector<64x1xf32>
    %cst_46 = arith.constant 3.200000e+01 : f32
    %85 = vector.broadcast %cst_46 : f32 to vector<64x1xf32>
    %86 = arith.divf %84, %85 : vector<64x1xf32>
    %87 = vector.broadcast %86 : vector<64x1xf32> to vector<64x32xf32>
    %88 = arith.subf %82, %87 : vector<64x32xf32>
    %89 = arith.mulf %88, %88 : vector<64x32xf32>
    %cst_47 = arith.constant dense<0.000000e+00> : vector<64xf32>
    %90 = vector.multi_reduction <add>, %89, %cst_47 [1] : vector<64x32xf32> to vector<64xf32>
    %91 = vector.shape_cast %90 : vector<64xf32> to vector<64x1xf32>
    %cst_48 = arith.constant 3.200000e+01 : f32
    %92 = vector.broadcast %cst_48 : f32 to vector<64x1xf32>
    %93 = arith.divf %91, %92 : vector<64x1xf32>
    %94 = vector.broadcast %86 : vector<64x1xf32> to vector<64x32xf32>
    %95 = arith.subf %82, %94 : vector<64x32xf32>
    %cst_49 = arith.constant 9.99999974E-6 : f32
    %96 = vector.broadcast %cst_49 : f32 to vector<64x1xf32>
    %97 = arith.addf %93, %96 : vector<64x1xf32>
    %98 = math.rsqrt %97 : vector<64x1xf32>
    %99 = vector.broadcast %98 : vector<64x1xf32> to vector<64x32xf32>
    %100 = arith.mulf %95, %99 : vector<64x32xf32>
    %101 = vector.broadcast %6 : vector<1x32xf32> to vector<64x32xf32>
    %102 = arith.mulf %100, %101 : vector<64x32xf32>
    %103 = vector.broadcast %7 : vector<1x32xf32> to vector<64x32xf32>
    %104 = arith.addf %102, %103 : vector<64x32xf32>
    %cst_50 = arith.constant dense<0.000000e+00> : vector<64x128xf32>
    %105 = tpu.matmul %104, %4, %cst_50 {dimension_numbers = #tpu.dot_dimension_numbers<[1], [0], [0], [1], [0, 0, 1, 1], [], []>} : vector<64x32xf32>, vector<32x128xf32>, vector<64x128xf32> -> vector<64x128xf32>
    %106 = vector.broadcast %5 : vector<1x128xf32> to vector<64x128xf32>
    %107 = arith.addf %105, %106 : vector<64x128xf32>
    %c64 = arith.constant 64 : index
    %c0_51 = arith.constant 0 : index
    %108 = vector.load %arg15[%c64, %c0_51] : memref<256x128xf32, #tpu.memory_space<vmem>>, vector<64x128xf32>
    tpu.vector_store %arg15[%c64, %c0_51], %107 {strides = array<i32>} : memref<256x128xf32, #tpu.memory_space<vmem>>, vector<64x128xf32>,
    %109 = vector.extract_strided_slice %3 {offsets = [0, 16, 0], sizes = [8, 8, 32], strides = [1, 1, 1]} : vector<8x32x32xf32> to vector<8x8x32xf32>
    %110 = vector.shape_cast %109 : vector<8x8x32xf32> to vector<64x32xf32>
    %cst_52 = arith.constant dense<0.000000e+00> : vector<64xf32>
    %111 = vector.multi_reduction <add>, %110, %cst_52 [1] : vector<64x32xf32> to vector<64xf32>
    %112 = vector.shape_cast %111 : vector<64xf32> to vector<64x1xf32>
    %cst_53 = arith.constant 3.200000e+01 : f32
    %113 = vector.broadcast %cst_53 : f32 to vector<64x1xf32>
    %114 = arith.divf %112, %113 : vector<64x1xf32>
    %115 = vector.broadcast %114 : vector<64x1xf32> to vector<64x32xf32>
    %116 = arith.subf %110, %115 : vector<64x32xf32>
    %117 = arith.mulf %116, %116 : vector<64x32xf32>
    %cst_54 = arith.constant dense<0.000000e+00> : vector<64xf32>
    %118 = vector.multi_reduction <add>, %117, %cst_54 [1] : vector<64x32xf32> to vector<64xf32>
    %119 = vector.shape_cast %118 : vector<64xf32> to vector<64x1xf32>
    %cst_55 = arith.constant 3.200000e+01 : f32
    %120 = vector.broadcast %cst_55 : f32 to vector<64x1xf32>
    %121 = arith.divf %119, %120 : vector<64x1xf32>
    %122 = vector.broadcast %114 : vector<64x1xf32> to vector<64x32xf32>
    %123 = arith.subf %110, %122 : vector<64x32xf32>
    %cst_56 = arith.constant 9.99999974E-6 : f32
    %124 = vector.broadcast %cst_56 : f32 to vector<64x1xf32>
    %125 = arith.addf %121, %124 : vector<64x1xf32>
    %126 = math.rsqrt %125 : vector<64x1xf32>
    %127 = vector.broadcast %126 : vector<64x1xf32> to vector<64x32xf32>
    %128 = arith.mulf %123, %127 : vector<64x32xf32>
    %129 = vector.broadcast %6 : vector<1x32xf32> to vector<64x32xf32>
    %130 = arith.mulf %128, %129 : vector<64x32xf32>
    %131 = vector.broadcast %7 : vector<1x32xf32> to vector<64x32xf32>
    %132 = arith.addf %130, %131 : vector<64x32xf32>
    %cst_57 = arith.constant dense<0.000000e+00> : vector<64x128xf32>
    %133 = tpu.matmul %132, %4, %cst_57 {dimension_numbers = #tpu.dot_dimension_numbers<[1], [0], [0], [1], [0, 0, 1, 1], [], []>} : vector<64x32xf32>, vector<32x128xf32>, vector<64x128xf32> -> vector<64x128xf32>
    %134 = vector.broadcast %5 : vector<1x128xf32> to vector<64x128xf32>
    %135 = arith.addf %133, %134 : vector<64x128xf32>
    %c128 = arith.constant 128 : index
    %c0_58 = arith.constant 0 : index
    %136 = vector.load %arg15[%c128, %c0_58] : memref<256x128xf32, #tpu.memory_space<vmem>>, vector<64x128xf32>
    tpu.vector_store %arg15[%c128, %c0_58], %135 {strides = array<i32>} : memref<256x128xf32, #tpu.memory_space<vmem>>, vector<64x128xf32>,
    %137 = vector.extract_strided_slice %3 {offsets = [0, 24, 0], sizes = [8, 8, 32], strides = [1, 1, 1]} : vector<8x32x32xf32> to vector<8x8x32xf32>
    %138 = vector.shape_cast %137 : vector<8x8x32xf32> to vector<64x32xf32>
    %cst_59 = arith.constant dense<0.000000e+00> : vector<64xf32>
    %139 = vector.multi_reduction <add>, %138, %cst_59 [1] : vector<64x32xf32> to vector<64xf32>
    %140 = vector.shape_cast %139 : vector<64xf32> to vector<64x1xf32>
    %cst_60 = arith.constant 3.200000e+01 : f32
    %141 = vector.broadcast %cst_60 : f32 to vector<64x1xf32>
    %142 = arith.divf %140, %141 : vector<64x1xf32>
    %143 = vector.broadcast %142 : vector<64x1xf32> to vector<64x32xf32>
    %144 = arith.subf %138, %143 : vector<64x32xf32>
    %145 = arith.mulf %144, %144 : vector<64x32xf32>
    %cst_61 = arith.constant dense<0.000000e+00> : vector<64xf32>
    %146 = vector.multi_reduction <add>, %145, %cst_61 [1] : vector<64x32xf32> to vector<64xf32>
    %147 = vector.shape_cast %146 : vector<64xf32> to vector<64x1xf32>
    %cst_62 = arith.constant 3.200000e+01 : f32
    %148 = vector.broadcast %cst_62 : f32 to vector<64x1xf32>
    %149 = arith.divf %147, %148 : vector<64x1xf32>
    %150 = vector.broadcast %142 : vector<64x1xf32> to vector<64x32xf32>
    %151 = arith.subf %138, %150 : vector<64x32xf32>
    %cst_63 = arith.constant 9.99999974E-6 : f32
    %152 = vector.broadcast %cst_63 : f32 to vector<64x1xf32>
    %153 = arith.addf %149, %152 : vector<64x1xf32>
    %154 = math.rsqrt %153 : vector<64x1xf32>
    %155 = vector.broadcast %154 : vector<64x1xf32> to vector<64x32xf32>
    %156 = arith.mulf %151, %155 : vector<64x32xf32>
    %157 = vector.broadcast %6 : vector<1x32xf32> to vector<64x32xf32>
    %158 = arith.mulf %156, %157 : vector<64x32xf32>
    %159 = vector.broadcast %7 : vector<1x32xf32> to vector<64x32xf32>
    %160 = arith.addf %158, %159 : vector<64x32xf32>
    %cst_64 = arith.constant dense<0.000000e+00> : vector<64x128xf32>
    %161 = tpu.matmul %160, %4, %cst_64 {dimension_numbers = #tpu.dot_dimension_numbers<[1], [0], [0], [1], [0, 0, 1, 1], [], []>} : vector<64x32xf32>, vector<32x128xf32>, vector<64x128xf32> -> vector<64x128xf32>
    %162 = vector.broadcast %5 : vector<1x128xf32> to vector<64x128xf32>
    %163 = arith.addf %161, %162 : vector<64x128xf32>
    %c192 = arith.constant 192 : index
    %c0_65 = arith.constant 0 : index
    %164 = vector.load %arg15[%c192, %c0_65] : memref<256x128xf32, #tpu.memory_space<vmem>>, vector<64x128xf32>
    tpu.vector_store %arg15[%c192, %c0_65], %163 {strides = array<i32>} : memref<256x128xf32, #tpu.memory_space<vmem>>, vector<64x128xf32>,
    %c0_66 = arith.constant 0 : index
    %c0_67 = arith.constant 0 : index
    %165 = vector.load %arg10[%c0_66, %c0_67] : memref<32x128xf32, #tpu.memory_space<vmem>>, vector<32x128xf32>
    %cst_68 = arith.constant 0.000000e+00 : f32
    %166 = vector.broadcast %cst_68 : f32 to vector<64x32xf32>
    %cst_69 = arith.constant 0.000000e+00 : f32
    %167 = vector.broadcast %cst_69 : f32 to vector<64x32xf32>
    %c192_70 = arith.constant 192 : index
    %c0_71 = arith.constant 0 : index
    %168 = vector.load %arg15[%c192_70, %c0_71] : memref<256x128xf32, #tpu.memory_space<vmem>>, vector<64x128xf32>
    %cst_72 = arith.constant dense<0.000000e+00> : vector<64x128xf32>
    %169 = tpu.matmul %166, %165, %cst_72 {dimension_numbers = #tpu.dot_dimension_numbers<[1], [0], [0], [1], [0, 0, 1, 1], [], []>} : vector<64x32xf32>, vector<32x128xf32>, vector<64x128xf32> -> vector<64x128xf32>
    %170 = arith.addf %168, %169 : vector<64x128xf32>
    %171 = vector.extract_strided_slice %170 {offsets = [0, 0], sizes = [64, 32], strides = [1, 1]} : vector<64x128xf32> to vector<64x32xf32>
    %172 = arith.negf %171 : vector<64x32xf32>
    %173 = math.exp %172 : vector<64x32xf32>
    %cst_73 = arith.constant 1.000000e+00 : f32
    %174 = vector.broadcast %cst_73 : f32 to vector<64x32xf32>
    %175 = arith.addf %174, %173 : vector<64x32xf32>
    %176 = arith.divf %174, %175 : vector<64x32xf32>
    %177 = vector.extract_strided_slice %170 {offsets = [0, 32], sizes = [64, 32], strides = [1, 1]} : vector<64x128xf32> to vector<64x32xf32>
    %178 = arith.negf %177 : vector<64x32xf32>
    %179 = math.exp %178 : vector<64x32xf32>
    %cst_74 = arith.constant 1.000000e+00 : f32
    %180 = vector.broadcast %cst_74 : f32 to vector<64x32xf32>
    %181 = arith.addf %180, %179 : vector<64x32xf32>
    %182 = arith.divf %180, %181 : vector<64x32xf32>
    %183 = vector.extract_strided_slice %170 {offsets = [0, 64], sizes = [64, 32], strides = [1, 1]} : vector<64x128xf32> to vector<64x32xf32>
    %184 = math.tanh %183 : vector<64x32xf32>
    %185 = vector.extract_strided_slice %170 {offsets = [0, 96], sizes = [64, 32], strides = [1, 1]} : vector<64x128xf32> to vector<64x32xf32>
    %186 = arith.negf %185 : vector<64x32xf32>
    %187 = math.exp %186 : vector<64x32xf32>
    %cst_75 = arith.constant 1.000000e+00 : f32
    %188 = vector.broadcast %cst_75 : f32 to vector<64x32xf32>
    %189 = arith.addf %188, %187 : vector<64x32xf32>
    %190 = arith.divf %188, %189 : vector<64x32xf32>
    %191 = arith.mulf %182, %167 : vector<64x32xf32>
    %192 = arith.mulf %176, %184 : vector<64x32xf32>
    %193 = arith.addf %191, %192 : vector<64x32xf32>
    %194 = math.tanh %193 : vector<64x32xf32>
    %195 = arith.mulf %190, %194 : vector<64x32xf32>
    %c128_76 = arith.constant 128 : index
    %c0_77 = arith.constant 0 : index
    %196 = vector.load %arg15[%c128_76, %c0_77] : memref<256x128xf32, #tpu.memory_space<vmem>>, vector<64x128xf32>
    %cst_78 = arith.constant dense<0.000000e+00> : vector<64x128xf32>
    %197 = tpu.matmul %195, %165, %cst_78 {dimension_numbers = #tpu.dot_dimension_numbers<[1], [0], [0], [1], [0, 0, 1, 1], [], []>} : vector<64x32xf32>, vector<32x128xf32>, vector<64x128xf32> -> vector<64x128xf32>
    %198 = arith.addf %196, %197 : vector<64x128xf32>
    %199 = vector.extract_strided_slice %198 {offsets = [0, 0], sizes = [64, 32], strides = [1, 1]} : vector<64x128xf32> to vector<64x32xf32>
    %200 = arith.negf %199 : vector<64x32xf32>
    %201 = math.exp %200 : vector<64x32xf32>
    %cst_79 = arith.constant 1.000000e+00 : f32
    %202 = vector.broadcast %cst_79 : f32 to vector<64x32xf32>
    %203 = arith.addf %202, %201 : vector<64x32xf32>
    %204 = arith.divf %202, %203 : vector<64x32xf32>
    %205 = vector.extract_strided_slice %198 {offsets = [0, 32], sizes = [64, 32], strides = [1, 1]} : vector<64x128xf32> to vector<64x32xf32>
    %206 = arith.negf %205 : vector<64x32xf32>
    %207 = math.exp %206 : vector<64x32xf32>
    %cst_80 = arith.constant 1.000000e+00 : f32
    %208 = vector.broadcast %cst_80 : f32 to vector<64x32xf32>
    %209 = arith.addf %208, %207 : vector<64x32xf32>
    %210 = arith.divf %208, %209 : vector<64x32xf32>
    %211 = vector.extract_strided_slice %198 {offsets = [0, 64], sizes = [64, 32], strides = [1, 1]} : vector<64x128xf32> to vector<64x32xf32>
    %212 = math.tanh %211 : vector<64x32xf32>
    %213 = vector.extract_strided_slice %198 {offsets = [0, 96], sizes = [64, 32], strides = [1, 1]} : vector<64x128xf32> to vector<64x32xf32>
    %214 = arith.negf %213 : vector<64x32xf32>
    %215 = math.exp %214 : vector<64x32xf32>
    %cst_81 = arith.constant 1.000000e+00 : f32
    %216 = vector.broadcast %cst_81 : f32 to vector<64x32xf32>
    %217 = arith.addf %216, %215 : vector<64x32xf32>
    %218 = arith.divf %216, %217 : vector<64x32xf32>
    %219 = arith.mulf %210, %193 : vector<64x32xf32>
    %220 = arith.mulf %204, %212 : vector<64x32xf32>
    %221 = arith.addf %219, %220 : vector<64x32xf32>
    %222 = math.tanh %221 : vector<64x32xf32>
    %223 = arith.mulf %218, %222 : vector<64x32xf32>
    %c64_82 = arith.constant 64 : index
    %c0_83 = arith.constant 0 : index
    %224 = vector.load %arg15[%c64_82, %c0_83] : memref<256x128xf32, #tpu.memory_space<vmem>>, vector<64x128xf32>
    %cst_84 = arith.constant dense<0.000000e+00> : vector<64x128xf32>
    %225 = tpu.matmul %223, %165, %cst_84 {dimension_numbers = #tpu.dot_dimension_numbers<[1], [0], [0], [1], [0, 0, 1, 1], [], []>} : vector<64x32xf32>, vector<32x128xf32>, vector<64x128xf32> -> vector<64x128xf32>
    %226 = arith.addf %224, %225 : vector<64x128xf32>
    %227 = vector.extract_strided_slice %226 {offsets = [0, 0], sizes = [64, 32], strides = [1, 1]} : vector<64x128xf32> to vector<64x32xf32>
    %228 = arith.negf %227 : vector<64x32xf32>
    %229 = math.exp %228 : vector<64x32xf32>
    %cst_85 = arith.constant 1.000000e+00 : f32
    %230 = vector.broadcast %cst_85 : f32 to vector<64x32xf32>
    %231 = arith.addf %230, %229 : vector<64x32xf32>
    %232 = arith.divf %230, %231 : vector<64x32xf32>
    %233 = vector.extract_strided_slice %226 {offsets = [0, 32], sizes = [64, 32], strides = [1, 1]} : vector<64x128xf32> to vector<64x32xf32>
    %234 = arith.negf %233 : vector<64x32xf32>
    %235 = math.exp %234 : vector<64x32xf32>
    %cst_86 = arith.constant 1.000000e+00 : f32
    %236 = vector.broadcast %cst_86 : f32 to vector<64x32xf32>
    %237 = arith.addf %236, %235 : vector<64x32xf32>
    %238 = arith.divf %236, %237 : vector<64x32xf32>
    %239 = vector.extract_strided_slice %226 {offsets = [0, 64], sizes = [64, 32], strides = [1, 1]} : vector<64x128xf32> to vector<64x32xf32>
    %240 = math.tanh %239 : vector<64x32xf32>
    %241 = vector.extract_strided_slice %226 {offsets = [0, 96], sizes = [64, 32], strides = [1, 1]} : vector<64x128xf32> to vector<64x32xf32>
    %242 = arith.negf %241 : vector<64x32xf32>
    %243 = math.exp %242 : vector<64x32xf32>
    %cst_87 = arith.constant 1.000000e+00 : f32
    %244 = vector.broadcast %cst_87 : f32 to vector<64x32xf32>
    %245 = arith.addf %244, %243 : vector<64x32xf32>
    %246 = arith.divf %244, %245 : vector<64x32xf32>
    %247 = arith.mulf %238, %221 : vector<64x32xf32>
    %248 = arith.mulf %232, %240 : vector<64x32xf32>
    %249 = arith.addf %247, %248 : vector<64x32xf32>
    %250 = math.tanh %249 : vector<64x32xf32>
    %251 = arith.mulf %246, %250 : vector<64x32xf32>
    %c0_88 = arith.constant 0 : index
    %c0_89 = arith.constant 0 : index
    %252 = vector.load %arg15[%c0_88, %c0_89] : memref<256x128xf32, #tpu.memory_space<vmem>>, vector<64x128xf32>
    %cst_90 = arith.constant dense<0.000000e+00> : vector<64x128xf32>
    %253 = tpu.matmul %251, %165, %cst_90 {dimension_numbers = #tpu.dot_dimension_numbers<[1], [0], [0], [1], [0, 0, 1, 1], [], []>} : vector<64x32xf32>, vector<32x128xf32>, vector<64x128xf32> -> vector<64x128xf32>
    %254 = arith.addf %252, %253 : vector<64x128xf32>
    %255 = vector.extract_strided_slice %254 {offsets = [0, 0], sizes = [64, 32], strides = [1, 1]} : vector<64x128xf32> to vector<64x32xf32>
    %256 = arith.negf %255 : vector<64x32xf32>
    %257 = math.exp %256 : vector<64x32xf32>
    %cst_91 = arith.constant 1.000000e+00 : f32
    %258 = vector.broadcast %cst_91 : f32 to vector<64x32xf32>
    %259 = arith.addf %258, %257 : vector<64x32xf32>
    %260 = arith.divf %258, %259 : vector<64x32xf32>
    %261 = vector.extract_strided_slice %254 {offsets = [0, 32], sizes = [64, 32], strides = [1, 1]} : vector<64x128xf32> to vector<64x32xf32>
    %262 = arith.negf %261 : vector<64x32xf32>
    %263 = math.exp %262 : vector<64x32xf32>
    %cst_92 = arith.constant 1.000000e+00 : f32
    %264 = vector.broadcast %cst_92 : f32 to vector<64x32xf32>
    %265 = arith.addf %264, %263 : vector<64x32xf32>
    %266 = arith.divf %264, %265 : vector<64x32xf32>
    %267 = vector.extract_strided_slice %254 {offsets = [0, 64], sizes = [64, 32], strides = [1, 1]} : vector<64x128xf32> to vector<64x32xf32>
    %268 = math.tanh %267 : vector<64x32xf32>
    %269 = vector.extract_strided_slice %254 {offsets = [0, 96], sizes = [64, 32], strides = [1, 1]} : vector<64x128xf32> to vector<64x32xf32>
    %270 = arith.negf %269 : vector<64x32xf32>
    %271 = math.exp %270 : vector<64x32xf32>
    %cst_93 = arith.constant 1.000000e+00 : f32
    %272 = vector.broadcast %cst_93 : f32 to vector<64x32xf32>
    %273 = arith.addf %272, %271 : vector<64x32xf32>
    %274 = arith.divf %272, %273 : vector<64x32xf32>
    %275 = arith.mulf %266, %249 : vector<64x32xf32>
    %276 = arith.mulf %260, %268 : vector<64x32xf32>
    %277 = arith.addf %275, %276 : vector<64x32xf32>
    %278 = math.tanh %277 : vector<64x32xf32>
    %279 = arith.mulf %274, %278 : vector<64x32xf32>
    %cst_94 = arith.constant 5.000000e-01 : f32
    %280 = vector.broadcast %cst_94 : f32 to vector<64x32xf32>
    %281 = arith.mulf %280, %279 : vector<64x32xf32>
    %cst_95 = arith.constant 0.707106769 : f32
    %282 = vector.broadcast %cst_95 : f32 to vector<64x32xf32>
    %283 = arith.mulf %279, %282 : vector<64x32xf32>
    %284 = math.erf %283 : vector<64x32xf32>
    %cst_96 = arith.constant 1.000000e+00 : f32
    %285 = vector.broadcast %cst_96 : f32 to vector<64x32xf32>
    %286 = arith.addf %285, %284 : vector<64x32xf32>
    %287 = arith.mulf %281, %286 : vector<64x32xf32>
    %c0_97 = arith.constant 0 : index
    %c0_98 = arith.constant 0 : index
    %288 = vector.load %arg12[%c0_97, %c0_98] : memref<32x64xf32, #tpu.memory_space<vmem>>, vector<32x64xf32>
    %cst_99 = arith.constant dense<0.000000e+00> : vector<64x64xf32>
    %289 = tpu.matmul %287, %288, %cst_99 {dimension_numbers = #tpu.dot_dimension_numbers<[1], [0], [0], [1], [0, 0, 1, 1], [], []>} : vector<64x32xf32>, vector<32x64xf32>, vector<64x64xf32> -> vector<64x64xf32>
    %c0_100 = arith.constant 0 : index
    %c0_101 = arith.constant 0 : index
    %290 = vector.load %arg13[%c0_100, %c0_101] : memref<1x64xf32, #tpu.memory_space<vmem>>, vector<1x64xf32>
    %291 = vector.broadcast %290 : vector<1x64xf32> to vector<64x64xf32>
    %292 = arith.addf %289, %291 : vector<64x64xf32>
    %293 = vector.extract_strided_slice %292 {offsets = [0, 0], sizes = [64, 32], strides = [1, 1]} : vector<64x64xf32> to vector<64x32xf32>
    %294 = vector.extract_strided_slice %292 {offsets = [0, 32], sizes = [64, 32], strides = [1, 1]} : vector<64x64xf32> to vector<64x32xf32>
    %295 = arith.negf %294 : vector<64x32xf32>
    %296 = math.exp %295 : vector<64x32xf32>
    %cst_102 = arith.constant 1.000000e+00 : f32
    %297 = vector.broadcast %cst_102 : f32 to vector<64x32xf32>
    %298 = arith.addf %297, %296 : vector<64x32xf32>
    %299 = arith.divf %297, %298 : vector<64x32xf32>
    %300 = arith.mulf %293, %299 : vector<64x32xf32>
    %c0_103 = arith.constant 0 : index
    %c0_104 = arith.constant 0 : index
    %c0_105 = arith.constant 0 : index
    %301 = vector.load %arg14[%c0_103, %c0_104, %c0_105] : memref<8x8x32xf32, #tpu.memory_space<vmem>>, vector<8x8x32xf32>
    %302 = vector.shape_cast %300 : vector<64x32xf32> to vector<8x8x32xf32>
    %303 = arith.addf %301, %302 : vector<8x8x32xf32>
    %c0_106 = arith.constant 0 : index
    %c0_107 = arith.constant 0 : index
    %c0_108 = arith.constant 0 : index
    %304 = vector.load %arg14[%c0_106, %c0_107, %c0_108] : memref<8x8x32xf32, #tpu.memory_space<vmem>>, vector<8x8x32xf32>
    tpu.vector_store %arg14[%c0_106, %c0_107, %c0_108], %303 {strides = array<i32>} : memref<8x8x32xf32, #tpu.memory_space<vmem>>, vector<8x8x32xf32>,
    return
  }
  func.func @transform_0(%arg0: i32) -> (i32, i32, i32) {
    %c0_i32 = arith.constant 0 : i32
    %c0_i32_0 = arith.constant 0 : i32
    %c0_i32_1 = arith.constant 0 : i32
    return %arg0, %c0_i32, %c0_i32_0 : i32, i32, i32
  }
  func.func @transform_1(%arg0: i32) -> (i32, i32, i32) {
    %c0_i32 = arith.constant 0 : i32
    %c0_i32_0 = arith.constant 0 : i32
    %c0_i32_1 = arith.constant 0 : i32
    return %arg0, %c0_i32, %c0_i32_0 : i32, i32, i32
  }
  func.func @transform_2(%arg0: i32) -> (i32, i32) {
    %c0_i32 = arith.constant 0 : i32
    %c0_i32_0 = arith.constant 0 : i32
    %c0_i32_1 = arith.constant 0 : i32
    return %c0_i32, %c0_i32_0 : i32, i32
  }
  func.func @transform_3(%arg0: i32) -> (i32, i32) {
    %c0_i32 = arith.constant 0 : i32
    %c0_i32_0 = arith.constant 0 : i32
    %c0_i32_1 = arith.constant 0 : i32
    return %c0_i32, %c0_i32_0 : i32, i32
  }
  func.func @transform_4(%arg0: i32) -> (i32, i32) {
    %c0_i32 = arith.constant 0 : i32
    %c0_i32_0 = arith.constant 0 : i32
    %c0_i32_1 = arith.constant 0 : i32
    return %c0_i32, %c0_i32_0 : i32, i32
  }
  func.func @transform_5(%arg0: i32) -> (i32, i32) {
    %c0_i32 = arith.constant 0 : i32
    %c0_i32_0 = arith.constant 0 : i32
    %c0_i32_1 = arith.constant 0 : i32
    return %c0_i32, %c0_i32_0 : i32, i32
  }
  func.func @transform_6(%arg0: i32) -> (i32, i32) {
    %c0_i32 = arith.constant 0 : i32
    %c0_i32_0 = arith.constant 0 : i32
    %c0_i32_1 = arith.constant 0 : i32
    return %c0_i32, %c0_i32_0 : i32, i32
  }
  func.func @transform_7(%arg0: i32) -> (i32, i32) {
    %c0_i32 = arith.constant 0 : i32
    %c0_i32_0 = arith.constant 0 : i32
    %c0_i32_1 = arith.constant 0 : i32
    return %c0_i32, %c0_i32_0 : i32, i32
  }
  func.func @transform_8(%arg0: i32) -> (i32, i32) {
    %c0_i32 = arith.constant 0 : i32
    %c0_i32_0 = arith.constant 0 : i32
    %c0_i32_1 = arith.constant 0 : i32
    return %c0_i32, %c0_i32_0 : i32, i32
  }
  func.func @transform_9(%arg0: i32) -> (i32, i32) {
    %c0_i32 = arith.constant 0 : i32
    %c0_i32_0 = arith.constant 0 : i32
    %c0_i32_1 = arith.constant 0 : i32
    return %c0_i32, %c0_i32_0 : i32, i32
  }
  func.func @transform_10(%arg0: i32) -> (i32, i32) {
    %c0_i32 = arith.constant 0 : i32
    %c0_i32_0 = arith.constant 0 : i32
    %c0_i32_1 = arith.constant 0 : i32
    return %c0_i32, %c0_i32_0 : i32, i32
  }
  func.func @transform_11(%arg0: i32) -> (i32, i32) {
    %c0_i32 = arith.constant 0 : i32
    %c0_i32_0 = arith.constant 0 : i32
    %c0_i32_1 = arith.constant 0 : i32
    return %c0_i32, %c0_i32_0 : i32, i32
  }
  func.func @transform_12(%arg0: i32) -> (i32, i32) {
    %c0_i32 = arith.constant 0 : i32
    %c0_i32_0 = arith.constant 0 : i32
    %c0_i32_1 = arith.constant 0 : i32
    return %c0_i32, %c0_i32_0 : i32, i32
  }
  func.func @transform_13(%arg0: i32) -> (i32, i32, i32) {
    %c0_i32 = arith.constant 0 : i32
    %c0_i32_0 = arith.constant 0 : i32
    %c0_i32_1 = arith.constant 0 : i32
    return %arg0, %c0_i32, %c0_i32_0 : i32, i32, i32
  }
}

</mosaic_0001>

<bundles_post_ra>
// kernel: tpu_custom_call.1
= control target key start
LH: loop header
LB: loop body
LE: loop exit
PB: predicated region body
PF: predicated region fallthrough
CT: control target
= control target key end

     0   :  { %s7303_s0 = inlined_call_operand.vmem [shape: bf16[16,32,8], index: 0, kind: input, shape index: {}]   ;;  %s7304_s1 = inlined_call_operand.vmem [shape: f32[16,8,32], index: 1, kind: input, shape index: {}]   ;;  %s7305_s2 = inlined_call_operand.vmem [shape: f32[2,32], index: 2, kind: input, shape index: {}]   ;;  %s7306_s3 = inlined_call_operand.vmem [shape: f32[32,32], index: 3, kind: input, shape index: {}]   ;;  %s7307_s4 = inlined_call_operand.vmem [shape: f32[1,32], index: 4, kind: input, shape index: {}]   ;;  %s7308_s5 = inlined_call_operand.vmem [shape: f32[32,32], index: 5, kind: input, shape index: {}]   ;;  %s7309_s6 = inlined_call_operand.vmem [shape: f32[1,32], index: 6, kind: input, shape index: {}]   ;;  %s7310_s7 = inlined_call_operand.vmem [shape: f32[2,32], index: 7, kind: input, shape index: {}]   ;;  %s7311_s8 = inlined_call_operand.vmem [shape: f32[32,128], index: 8, kind: input, shape index: {}]   ;;  %s7312_s9 = inlined_call_operand.vmem [shape: f32[32,128], index: 9, kind: input, shape index: {}]   ;;  %s7313_s10 = inlined_call_operand.vmem [shape: f32[1,128], index: 10, kind: input, shape index: {}]   ;;  %s7314_s11 = inlined_call_operand.vmem [shape: f32[32,64], index: 11, kind: input, shape index: {}]   ;;  %s7315_s12 = inlined_call_operand.vmem [shape: f32[1,64], index: 12, kind: input, shape index: {}]   ;;  %s7316_s13 = inlined_call_operand.hbm [shape: f32[16,8,32], index: 13, kind: output, shape index: {}]  }
   0x1   :  { %7320 = sst [smem:[#allocation7_spill]] %s7303_s0 }
   0x2   :  { %7321 = sst [smem:[#allocation8_spill]] %s7304_s1 }
   0x3   :  { %18 = vsyncpa [#allocation4], 0 }
   0x4   :  { %20 = vsyncpa [#allocation4 + $0x1], 0  ;;  %s5790_s25 = smov 0   ;;  %s5792_s26 = smov 0  }
   0x5   :  { %s5794_s27 = smov 0   ;;  %s5796_s28 = smov 0  }
   0x6 LB: > { %s5811_s29 = sadd.s32 4294967295, %s5711_s28   ;;  %s4504_s30 = sadd.s32 4294967294, %s5711_s28   ;;  %s5711_s28 = sphi %s5796_s28, %s7333_s28   ;;  %s5707_s27 = sphi %s5794_s27, %s7332_s27   ;;  %s5703_s26 = sphi %s5792_s26, %s7331_s26   ;;  %s5699_s25 = sphi %s5790_s25, %s7330_s25  }
   0x7   : > { %s5815_s14 = sadd.s32 1, %s5711_s28   ;;  %s316_s15 = sadd.s32 1, %s5707_s27 }
   0x8   : > { %s313_s16 = ssub.s32 %s5711_s28, %s5815_s14  ;;  %p326_p0 = scmp.ne.s32.totalorder %s5707_s27, %s5703_s26 }
   0x9   : > { %p314_p1 = scmp.eq.s32.totalorder %s313_s16, 0  ;;  %p327_p2 = scmp.eq.s32.totalorder %s5811_s29, 1 }
   0xa   : > { %p332_p3 = scmp.ne.s32.totalorder %s5703_s26, %s5699_s25  ;;  %p333_p4 = scmp.eq.s32.totalorder %s4504_s30, 1 }
   0xb   : > { %s5826_s17 = scalar_select %p314_p1, %s5707_s27, %s316_s15  }
   0xc   : > { %p5828_p5 = por %p327_p2, %p326_p0  ;;  %p5832_p6 = por %p333_p4, %p332_p3 }
   0xd   : > { %7322 = sst [smem:[#allocation6_spill]] %s5826_s17  ;;  %p4507_p7 = scmp.ge.s32.totalorder %s5711_s28, 1 }
   0xe   : > { %p403_p8 = scmp.lt.s32.totalorder %s5711_s28, 3 }
  0x10   : > { %p404_p9 = pnand %p4507_p7, %p403_p8 }
  0x11   : > { %s4509_s20 = sshll.u32 (!%p404_p9), %s5811_s29, 3  ;;  %s7325_s0 = sld [smem:[#allocation7_spill]] (!%p404_p9) }
  0x12   : > { %407 = sbr.rel (%p404_p9) target bundleno = 3974 (0xf86), region = 72  ;;  %p454_p10 = scmp.lt.s32.totalorder (!%p404_p9), %s4509_s20, 15 }
  0x13   : > { %s7326_s1 = sld [smem:[#allocation8_spill]] (!%p404_p9)  ;;  %s7317_s16 = sand.u32 (!%p404_p9), 1, %s5703_s26  }
  0x14   : > { %s7318_s15 = smov (!%p404_p9), 32   ;;  %s5716_s24 = smov (!%p404_p9), 96  }
  0x17   : > { %s7335_s20 = smov (!%p454_p10, %s4509_s20), 15  ;;  %vm539_vm0 = vcmask 64512   ;;  %vm1325_vm1 = vcmask 261120  }
  0x18   : > { %s4679_s21 = sshll.u32 %s7335_s20, 4  ;;  %s4513_s22 = sshll.u32 %s7335_s20, 3 }
  0x19   : > { %s5842_s30 = scalar_lea.vmem %s7325_s0, %s4679_s21  ;;  %s5847_s17 = scalar_lea.vmem %s7326_s1, %s4513_s22 }
  0x1a   : > { %v467_v0 = vld [vmem:[%s5847_s17] sm:$0xff]  ;;  %v469_v1 = vld [vmem:[%s5847_s17 + $0x10] sm:$0xff]  ;;  %v468_v5 = vld [vmem:[%s5847_s17 + $0x8] sm:$0xff]  ;;  %s4508_s21 = sshll.u32 %s7317_s16, 6  ;;  %s7327_s16 = smov 32  }
  0x1b   : > { %v4682_v2 = vld [vmem:[%s5842_s30] sm:$0xff]   ;;  %4932 = vmatprep.subr.mxu1 %v467_v0  ;;  %4948 = vmatprep.subr.mxu0 %v469_v1  ;;  %v4745_v7 = vld [vmem:[%s5842_s30 + $0x8] sm:$0xff]   ;;  %v4746_v12 = vld [vmem:[%s5842_s30 + $0x10] sm:$0xff]   ;;  %s6638_s22 = scalar_lea.vmem [#allocation3], %s4508_s21 }
  0x1c   : > { %v4683_v3 = vunpack.c.l.bf16 %v4682_v2  ;;  %v4684_v4 = vunpack.c.h.bf16 %v4682_v2  ;;  %v4748_v6 = vld [vmem:[%s5842_s30 + $0x20] sm:$0xff]   ;;  %4933 = vmatpush3.msra.mxu1 %v467_v0  ;;  %4949 = vmatpush3.msra.mxu0 %v469_v1  ;;  %v4687_v10 = vunpack.c.l.bf16 %v4745_v7  ;;  %v4749_v11 = vld [vmem:[%s5842_s30 + $0x28] sm:$0xff]   ;;  %v4688_v15 = vunpack.c.h.bf16 %v4745_v7  ;;  %v470_v17 = vld [vmem:[%s5847_s17 + $0x18] sm:$0xff] }
  0x1d   : > { %v4699_v8 = vunpack.c.l.bf16 %v4748_v6  ;;  %v4700_v9 = vunpack.c.h.bf16 %v4748_v6  ;;  %4940 = vmatprep.subr.mxu1 %v468_v5  ;;  %v4703_v13 = vunpack.c.l.bf16 %v4749_v11  ;;  %v4752_v14 = vld [vmem:[%s5842_s30 + $0x40] sm:$0xff]   ;;  %v4704_v18 = vunpack.c.h.bf16 %v4749_v11  ;;  %v4747_v21 = vld [vmem:[%s5842_s30 + $0x18] sm:$0xff]   ;;  %v4753_v22 = vld [vmem:[%s5842_s30 + $0x48] sm:$0xff]  }
  0x1e   : > { %4934 = vmatprep.mubr.msk.f32.mxu1 %vm539_vm0, %v4683_v3  ;;  %v471_v16 = vld [vmem:[%s5847_s17 + $0x20] sm:$0xff]  ;;  %v4691_v19 = vunpack.c.l.bf16 %v4746_v12  ;;  %v4715_v20 = vunpack.c.l.bf16 %v4752_v14  ;;  %v473_v23 = vld [vmem:[%s5847_s17 + $0x30] sm:$0xff]  ;;  %v4692_v24 = vunpack.c.h.bf16 %v4746_v12  ;;  %v4716_v25 = vunpack.c.h.bf16 %v4752_v14  ;;  %v472_v31 = vld [vmem:[%s5847_s17 + $0x28] sm:$0xff] }
  0x1f   : > { %4950 = vmatprep.mubr.msk.f32.mxu0 %vm539_vm0, %v4699_v8  ;;  %4935 = vmatmul.mubr.msk.f32.vlgmr.msra.gmra.mxu1 %vm539_vm0, %v4684_v4  ;;  %v4695_v26 = vunpack.c.l.bf16 %v4747_v21  ;;  %v4719_v27 = vunpack.c.l.bf16 %v4753_v22  ;;  %v4750_v28 = vld [vmem:[%s5842_s30 + $0x30] sm:$0xff]   ;;  %v4756_v29 = vld [vmem:[%s5842_s30 + $0x60] sm:$0xff]   ;;  %v4696_v30 = vunpack.c.h.bf16 %v4747_v21  ;;  %v4720_v32 = vunpack.c.h.bf16 %v4753_v22  ;;  %v4751_v35 = vld [vmem:[%s5842_s30 + $0x38] sm:$0xff]  }
  0x20   : > { %4941 = vmatpush3.msra.mxu1 %v468_v5  ;;  %4951 = vmatmul.mubr.msk.f32.vlgmr.msra.gmra.mxu0 %vm539_vm0, %v4700_v9  ;;  %v4707_v33 = vunpack.c.l.bf16 %v4750_v28  ;;  %v4731_v34 = vunpack.c.l.bf16 %v4756_v29  ;;  %v4708_v36 = vunpack.c.h.bf16 %v4750_v28  ;;  %v4732_v37 = vunpack.c.h.bf16 %v4756_v29  ;;  %v4754_v39 = vld [vmem:[%s5842_s30 + $0x50] sm:$0xff]   ;;  %v474_v40 = vld [vmem:[%s5847_s17 + $0x38] sm:$0xff]  ;;  %v4757_v50 = vld [vmem:[%s5842_s30 + $0x68] sm:$0xff]   ;;  %s4680_s17 = sshll.u32 %s5811_s29, 10  ;;  %s7328_s29 = sand.u32 1, %s5703_s26  }
  0x21   : > { %4937 = vmatprep.mubr.msk.f32.mxu1 %vm539_vm0, %v4687_v10  ;;  %4953 = vmatprep.mubr.msk.f32.mxu0 %vm539_vm0, %v4703_v13  ;;  %v4711_v38 = vunpack.c.l.bf16 %v4751_v35  ;;  %v4712_v41 = vunpack.c.h.bf16 %v4751_v35  ;;  %v4723_v42 = vunpack.c.l.bf16 %v4754_v39  ;;  %v4755_v43 = vld [vmem:[%s5842_s30 + $0x58] sm:$0xff]   ;;  %v4724_v44 = vunpack.c.h.bf16 %v4754_v39  ;;  %v4758_v46 = vld [vmem:[%s5842_s30 + $0x70] sm:$0xff]   ;;  %s7253_s21 = scalar_lea.hbm %s7316_s13, %s4680_s17 }
  0x22   : > { %4964 = vmatprep.subr.mxu0 %v471_v16  ;;  %4956 = vmatprep.subr.mxu1 %v470_v17  ;;  %v4727_v45 = vunpack.c.l.bf16 %v4755_v43  ;;  %v4728_v47 = vunpack.c.h.bf16 %v4755_v43  ;;  %v4739_v48 = vunpack.c.l.bf16 %v4758_v46  ;;  %v4740_v49 = vunpack.c.h.bf16 %v4758_v46  ;;  %v4759_v53 = vld [vmem:[%s5842_s30 + $0x78] sm:$0xff]   ;;  %s5714_s30 = smov 64  }
  0x23   : > { %4938 = vmatmul.mubr.msk.f32.gmra.mxu1 %vm539_vm0, %v4688_v15  ;;  %4965 = vmatpush3.msra.mxu0 %v471_v16  ;;  %v4735_v51 = vunpack.c.l.bf16 %v4757_v50  ;;  %v4736_v52 = vunpack.c.h.bf16 %v4757_v50  ;;  %v4743_v54 = vunpack.c.l.bf16 %v4759_v53  ;;  %v4744_v55 = vunpack.c.h.bf16 %v4759_v53 }
  0x24   : > { %4954 = vmatmul.mubr.msk.f32.gmra.mxu0 %vm539_vm0, %v4704_v18  ;;  %4942 = vmatprep.mubr.msk.f32.mxu1 %vm539_vm0, %v4691_v19 }
  0x25   : > { %4966 = vmatprep.mubr.msk.f32.mxu0 %vm539_vm0, %v4715_v20  ;;  %4980 = vmatprep.subr.mxu0 %v473_v23 }
  0x27   : > { %4943 = vmatmul.mubr.msk.f32.vlgmr.msra.gmra.mxu1 %vm539_vm0, %v4692_v24 }
  0x28   : > { %4957 = vmatpush3.msra.mxu1 %v470_v17  ;;  %4967 = vmatmul.mubr.msk.f32.vlgmr.msra.gmra.mxu0 %vm539_vm0, %v4716_v25 }
  0x29   : > { %4945 = vmatprep.mubr.msk.f32.mxu1 %vm539_vm0, %v4695_v26  ;;  %4969 = vmatprep.mubr.msk.f32.mxu0 %vm539_vm0, %v4719_v27 }
  0x2a   : > { %4972 = vmatprep.subr.mxu1 %v472_v31  ;;  %4981 = vmatpush3.msra.mxu0 %v473_v23 }
  0x2b   : > { %4946 = vmatmul.mubr.msk.f32.gmra.mxu1 %vm539_vm0, %v4696_v30 }
  0x2c   : > { %4970 = vmatmul.mubr.msk.f32.gmra.mxu0 %vm539_vm0, %v4720_v32  ;;  %4958 = vmatprep.mubr.msk.f32.mxu1 %vm539_vm0, %v4707_v33 }
  0x2d   : > { %4982 = vmatprep.mubr.msk.f32.mxu0 %vm539_vm0, %v4731_v34 }
  0x2f   : > { %4959 = vmatmul.mubr.msk.f32.vlgmr.msra.gmra.mxu1 %vm539_vm0, %v4708_v36 }
  0x30   : > { %4973 = vmatpush3.msra.mxu1 %v472_v31  ;;  %4983 = vmatmul.mubr.msk.f32.vlgmr.msra.gmra.mxu0 %vm539_vm0, %v4732_v37 }
  0x31   : > { %4961 = vmatprep.mubr.msk.f32.mxu1 %vm539_vm0, %v4711_v38  ;;  %4988 = vmatprep.subr.mxu1 %v474_v40 }
  0x32   : > { %4985 = vmatprep.mubr.msk.f32.mxu0 %vm539_vm0, %v4735_v51 }
  0x33   : > { %4962 = vmatmul.mubr.msk.f32.gmra.mxu1 %vm539_vm0, %v4712_v41 }
  0x34   : > { %4974 = vmatprep.mubr.msk.f32.mxu1 %vm539_vm0, %v4723_v42  ;;  %4986 = vmatmul.mubr.msk.f32.gmra.mxu0 %vm539_vm0, %v4736_v52 }
  0x37   : > { %4975 = vmatmul.mubr.msk.f32.vlgmr.msra.gmra.mxu1 %vm539_vm0, %v4724_v44 }
  0x38   : > { %4989 = vmatpush3.msra.mxu1 %v474_v40  ;;  %4977 = vmatprep.mubr.msk.f32.mxu1 %vm539_vm0, %v4727_v45 }
  0x3b   : > { %4978 = vmatmul.mubr.msk.f32.gmra.mxu1 %vm539_vm0, %v4728_v47 }
  0x3c   : > { %4990 = vmatprep.mubr.msk.f32.mxu1 %vm539_vm0, %v4739_v48 }
  0x3f   : > { %4991 = vmatmul.mubr.msk.f32.vlgmr.msra.gmra.mxu1 %vm539_vm0, %v4740_v49 }
  0x40   : > { %4993 = vmatprep.mubr.msk.f32.mxu1 %vm539_vm0, %v4743_v54 }
  0x43   : > { %4994 = vmatmul.mubr.msk.f32.gmra.mxu1 %vm539_vm0, %v4744_v55 }
  0xdf   : > { %v5905_v56 = vpop.f32.mrf.mxu1 }
  0xe0   : > { %v5907_v57 = vpop.f32.mrf.mxu0 }
  0xe1   : > { %v5909_v58 = vpop.f32.mrf.mxu1 }
  0xe2   : > { %v5911_v59 = vpop.f32.mrf.mxu0  ;;  %v1326_v60 = vsel %vm1325_vm1, %v5909_v58, 0.0 }
  0xe3   : > { %v1332_v61 = vsel %vm1325_vm1, %v5911_v59, 0.0  ;;  %1327 = vadd.xlane.f32.xlu0 %v1326_v60  ;;  %v5917_v62 = vpop.f32.mrf.mxu1 }
  0xe4   : > { %1333 = vadd.xlane.f32.xlu1 %v1332_v61  ;;  %v5919_v63 = vpop.f32.mrf.mxu0 }
  0xe5   : > { %v5921_v0 = vpop.f32.mrf.mxu1 }
  0xe6   : > { %v5923_v1 = vpop.f32.mrf.mxu0 }
  0xe7   : > { %v5925_v2 = vpop.f32.mrf.mxu1 }
  0xe8   : > { %v5927_v3 = vpop.f32.mrf.mxu0 }
  0xe9   : > { %v5929_v4 = vpop.f32.mrf.mxu1 }
  0xea   : > { %v5931_v5 = vpop.f32.mrf.mxu0  ;;  %v1329_v6 = vsel %vm1325_vm1, %v5929_v4, 0.0 }
  0xeb   : > { %1330 = vadd.xlane.f32.xlu0 %v1329_v6  ;;  %v5935_v7 = vpop.f32.mrf.mxu1  ;;  %v1338_v9 = vsel %vm1325_vm1, %v5931_v5, 0.0 }
  0xec   : > { %v5937_v8 = vpop.f32.mrf.mxu0 }
  0xed   : > { %v5941_v10 = vpop.f32.mrf.mxu1 }
  0xee   : > { %v5943_v11 = vpop.f32.mrf.mxu0 }
  0xef   : > { %1339 = vadd.xlane.f32.xlu0 %v1338_v9  ;;  %v5945_v12 = vpop.f32.mrf.mxu1 }
  0xf0   : > { %v5947_v13 = vpop.f32.mrf.mxu0 }
  0xf1   : > { %v5949_v14 = vpop.f32.mrf.mxu1 }
  0xf2   : > { %v5951_v15 = vpop.f32.mrf.mxu0  ;;  %v1335_v16 = vsel %vm1325_vm1, %v5949_v14, 0.0 }
  0xf3   : > { %v1344_v17 = vsel %vm1325_vm1, %v5951_v15, 0.0  ;;  %1336 = vadd.xlane.f32.xlu1 %v1335_v16  ;;  %v5957_v18 = vpop.f32.mrf.mxu1 }
  0xf4   : > { %1345 = vadd.xlane.f32.xlu0 %v1344_v17  ;;  %v1958_v17 = vsel %vm1325_vm1, %v5905_v56, 0.0 }
  0xf5   : > { %v5959_v19 = vpop.f32.mrf.mxu1 }
  0xf7   : > { %v5961_v20 = vpop.f32.mrf.mxu1 }
  0xf9   : > { %v5963_v21 = vpop.f32.mrf.mxu1 }
  0xfa   : > { %v1341_v22 = vsel %vm1325_vm1, %v5963_v21, 0.0 }
  0xfb   : > { %1342 = vadd.xlane.f32.xlu1 %v1341_v22  ;;  %v5967_v23 = vpop.f32.mrf.mxu1 }
  0xfd   : > { %v5969_v24 = vpop.f32.mrf.mxu1 }
  0xff   : > { %v5971_v25 = vpop.f32.mrf.mxu1 }
 0x101   : > { %v5973_v26 = vpop.f32.mrf.mxu1 }
 0x102   : > { %v1347_v27 = vsel %vm1325_vm1, %v5973_v26, 0.0 }
 0x103   : > { %1348 = vadd.xlane.f32.xlu1 %v1347_v27 }
 0x16c   : > { %v1328_v28 = vpop.xlane.xlu0 %1327 }
 0x16d   : > { %v1334_v29 = vpop.xlane.xlu1 %1333  ;;  %v1351_v30 = vmul.f32 0.03125, %v1328_v28  ;;  %v2215_v28 = vsel %vm1325_vm1, %v5921_v0, 0.0 }
 0x16e   : > { %v1353_v31 = vmul.f32 0.03125, %v1334_v29 }
 0x16f   : > { %v5978_v32 = vsub.f32 %v5909_v58, %v1351_v30 }
 0x170   : > { %v5981_v33 = vsub.f32 %v5911_v59, %v1353_v31 }
 0x171   : > { %v1367_v34 = vmul.f32 %v5978_v32, %v5978_v32 }
 0x172   : > { %v1369_v36 = vmul.f32 %v5981_v33, %v5981_v33 }
 0x173   : > { %v1375_v35 = vsel %vm1325_vm1, %v1367_v34, 0.0  ;;  %v1964_v34 = vsel %vm1325_vm1, %v5907_v57, 0.0 }
 0x174   : > { %1376 = vadd.xlane.f32.xlu0 %v1375_v35  ;;  %v1331_v37 = vpop.xlane.xlu0 %1330  ;;  %v1381_v40 = vsel %vm1325_vm1, %v1369_v36, 0.0 }
 0x175   : > { %v1352_v38 = vmul.f32 0.03125, %v1331_v37  ;;  %v2221_v37 = vsel %vm1325_vm1, %v5923_v1, 0.0 }
 0x177   : > { %v5989_v39 = vsub.f32 %v5929_v4, %v1352_v38  ;;  %v1458_v38 = vld [vmem:[%s7306_s3 + $0x18] sm:$0xff] }
 0x178   : > { %1382 = vadd.xlane.f32.xlu0 %v1381_v40  ;;  %v1340_v41 = vpop.xlane.xlu0 %1339  ;;  %v1961_v40 = vsel %vm1325_vm1, %v5925_v2, 0.0  ;;  %4996 = vmatprep.subr.mxu0 %v1458_v38 }
 0x179   : > { %v1355_v42 = vmul.f32 0.03125, %v1340_v41  ;;  %v1368_v43 = vmul.f32 %v5989_v39, %v5989_v39  ;;  %v1970_v41 = vsel %vm1325_vm1, %v5927_v3, 0.0  ;;  %4997 = vmatpush3.msra.mxu0 %v1458_v38 }
 0x17b   : > { %v5995_v44 = vsub.f32 %v5931_v5, %v1355_v42  ;;  %v1378_v45 = vsel %vm1325_vm1, %v1368_v43, 0.0  ;;  %v1457_v42 = vld [vmem:[%s7306_s3 + $0x10] sm:$0xff]  ;;  %v1456_v43 = vld [vmem:[%s7306_s3 + $0x8] sm:$0xff] }
 0x17c   : > { %v1337_v46 = vpop.xlane.xlu1 %1336  ;;  %1379 = vadd.xlane.f32.xlu1 %v1378_v45  ;;  %4998 = vmatprep.subr.mxu0 %v1457_v42  ;;  %v2218_v45 = vsel %vm1325_vm1, %v5941_v10, 0.0 }
 0x17d   : > { %v1346_v47 = vpop.xlane.xlu0 %1345  ;;  %v1354_v48 = vmul.f32 0.03125, %v1337_v46  ;;  %v1371_v49 = vmul.f32 %v5995_v44, %v5995_v44  ;;  %4999 = vmatpush3.msra.mxu0 %v1457_v42  ;;  %v6048_v46 = vpop.f32.mrf.mxu0 }
 0x17e   : > { %v1357_v50 = vmul.f32 0.03125, %v1346_v47  ;;  %5000 = vmatprep.subr.mxu0 %v1456_v43  ;;  %v2227_v47 = vsel %vm1325_vm1, %v5943_v11, 0.0 }
 0x17f   : > { %v6001_v51 = vsub.f32 %v5949_v14, %v1354_v48  ;;  %v1387_v52 = vsel %vm1325_vm1, %v1371_v49, 0.0  ;;  %5001 = vmatpush3.msra.mxu0 %v1456_v43  ;;  %v1455_v48 = vld [vmem:[%s7306_s3] sm:$0xff]  ;;  %v1967_v49 = vsel %vm1325_vm1, %v5945_v12, 0.0 }
 0x180   : > { %v6005_v53 = vsub.f32 %v5951_v15, %v1357_v50  ;;  %1388 = vadd.xlane.f32.xlu0 %v1387_v52  ;;  %5002 = vmatprep.subr.mxu0 %v1455_v48  ;;  %v6057_v50 = vpop.f32.mrf.mxu0  ;;  %v1976_v52 = vsel %vm1325_vm1, %v5947_v13, 0.0 }
 0x181   : > { %v1370_v54 = vmul.f32 %v6001_v51, %v6001_v51  ;;  %5003 = vmatpush3.msra.mxu0 %v1455_v48 }
 0x182   : > { %v1373_v55 = vmul.f32 %v6005_v53, %v6005_v53 }
 0x183   : > { %v1384_v60 = vsel %vm1325_vm1, %v1370_v54, 0.0  ;;  %v2233_v54 = vsel %vm1325_vm1, %v6057_v50, 0.0 }
 0x184   : > { %v1393_v61 = vsel %vm1325_vm1, %v1373_v55, 0.0  ;;  %v1343_v6 = vpop.xlane.xlu1 %1342  ;;  %1385 = vadd.xlane.f32.xlu1 %v1384_v60  ;;  %v2224_v55 = vsel %vm1325_vm1, %v5959_v19, 0.0  ;;  %v1973_v60 = vsel %vm1325_vm1, %v5961_v20, 0.0 }
 0x185   : > { %1394 = vadd.xlane.f32.xlu0 %v1393_v61  ;;  %v1356_v9 = vmul.f32 0.03125, %v1343_v6  ;;  %v2472_v61 = vsel %vm1325_vm1, %v5917_v62, 0.0  ;;  %v6069_v6 = vpop.f32.mrf.mxu1 }
 0x186   : > { %v2493_v38 = vsel %vm1325_vm1, %v6069_v6, 0.0 }
 0x187   : > { %v6014_v16 = vsub.f32 %v5963_v21, %v1356_v9  ;;  %v2230_v9 = vsel %vm1325_vm1, %v5969_v24, 0.0 }
 0x189   : > { %1959 = vadd.xlane.f32.xlu0 %v1958_v17  ;;  %v1372_v22 = vmul.f32 %v6014_v16, %v6014_v16  ;;  %v2478_v17 = vsel %vm1325_vm1, %v5919_v63, 0.0 }
 0x18b   : > { %v1390_v27 = vsel %vm1325_vm1, %v1372_v22, 0.0  ;;  %v6075_v22 = vpop.f32.mrf.mxu1 }
 0x18c   : > { %1391 = vadd.xlane.f32.xlu1 %v1390_v27  ;;  %v1349_v29 = vpop.xlane.xlu1 %1348  ;;  %v1979_v27 = vsel %vm1325_vm1, %v5971_v25, 0.0 }
 0x18d   : > { %2216 = vadd.xlane.f32.xlu0 %v2215_v28  ;;  %v1358_v30 = vmul.f32 0.03125, %v1349_v29  ;;  %v2484_v28 = vsel %vm1325_vm1, %v5937_v8, 0.0  ;;  %v2236_v29 = vsel %vm1325_vm1, %v6075_v22, 0.0 }
 0x18f   : > { %v6024_v31 = vsub.f32 %v5973_v26, %v1358_v30  ;;  %v2490_v30 = vsel %vm1325_vm1, %v6048_v46, 0.0 }
 0x191   : > { %1965 = vadd.xlane.f32.xlu0 %v1964_v34  ;;  %v1374_v35 = vmul.f32 %v6024_v31, %v6024_v31  ;;  %v6088_v34 = vld [vmem:[%s7311_s8 + $0x18] sm:$0xff] }
 0x192   : > { %5036 = vmatprep.subr.mxu0 %v6088_v34 }
 0x193   : > { %v1396_v36 = vsel %vm1325_vm1, %v1374_v35, 0.0  ;;  %v2475_v35 = vsel %vm1325_vm1, %v5935_v7, 0.0 }
 0x194   : > { %1397 = vadd.xlane.f32.xlu1 %v1396_v36  ;;  %v2481_v36 = vsel %vm1325_vm1, %v5957_v18, 0.0 }
 0x195   : > { %2222 = vadd.xlane.f32.xlu0 %v2221_v37  ;;  %v2487_v37 = vsel %vm1325_vm1, %v5967_v23, 0.0 }
 0x198   : > { %1962 = vadd.xlane.f32.xlu1 %v1961_v40 }
 0x199   : > { %1971 = vadd.xlane.f32.xlu0 %v1970_v41 }
 0x19c   : > { %2219 = vadd.xlane.f32.xlu1 %v2218_v45 }
 0x19d   : > { %2228 = vadd.xlane.f32.xlu0 %v2227_v47 }
 0x1a0   : > { %1968 = vadd.xlane.f32.xlu1 %v1967_v49 }
 0x1a1   : > { %1977 = vadd.xlane.f32.xlu0 %v1976_v52 }
 0x1a4   : > { %2225 = vadd.xlane.f32.xlu1 %v2224_v55 }
 0x1a5   : > { %2234 = vadd.xlane.f32.xlu0 %v2233_v54 }
 0x1a8   : > { %1974 = vadd.xlane.f32.xlu1 %v1973_v60 }
 0x1a9   : > { %2473 = vadd.xlane.f32.xlu0 %v2472_v61 }
 0x1ac   : > { %2231 = vadd.xlane.f32.xlu1 %v2230_v9 }
 0x1ad   : > { %2479 = vadd.xlane.f32.xlu0 %v2478_v17 }
 0x1b0   : > { %1980 = vadd.xlane.f32.xlu1 %v1979_v27 }
 0x1b1   : > { %2485 = vadd.xlane.f32.xlu0 %v2484_v28  ;;  %v6102_v28 = vld [vmem:[%s7305_s2] ss:$0 sm:$0xff] }
 0x1b4   : > { %2237 = vadd.xlane.f32.xlu1 %v2236_v29 }
 0x1b5   : > { %2491 = vadd.xlane.f32.xlu0 %v2490_v30 }
 0x1b8   : > { %2476 = vadd.xlane.f32.xlu1 %v2475_v35 }
 0x1bc   : > { %2482 = vadd.xlane.f32.xlu1 %v2481_v36 }
 0x1c0   : > { %2488 = vadd.xlane.f32.xlu1 %v2487_v37  ;;  %v6110_v37 = vld [vmem:[%s7305_s2 + $0x1] ss:$0 sm:$0xff] }
 0x1c4   : > { %2494 = vadd.xlane.f32.xlu1 %v2493_v38 }
 0x1fd   : > { %v1377_v40 = vpop.xlane.xlu0 %1376 }
 0x1fe   : > { %v1399_v41 = vmul.f32 0.03125, %v1377_v40 }
 0x200   : > { %v1407_v42 = vadd.f32 1e-05, %v1399_v41 }
 0x201   : > { %v1383_v43 = vpop.xlane.xlu0 %1382 }
 0x202   : > { %5261 = vrsqrt.f32 %v1407_v42  ;;  %v1401_v45 = vmul.f32 0.03125, %v1383_v43 }
 0x204   : > { %v1409_v47 = vadd.f32 1e-05, %v1401_v45 }
 0x205   : > { %v1380_v48 = vpop.xlane.xlu1 %1379 }
 0x206   : > { %5263 = vrsqrt.f32 %v1409_v47  ;;  %v1400_v49 = vmul.f32 0.03125, %v1380_v48 }
 0x208   : > { %v1408_v52 = vadd.f32 1e-05, %v1400_v49 }
 0x209   : > { %v1389_v54 = vpop.xlane.xlu0 %1388 }
 0x20a   : > { %5265 = vrsqrt.f32 %v1408_v52  ;;  %v1403_v55 = vmul.f32 0.03125, %v1389_v54 }
 0x20c   : > { %v1411_v60 = vadd.f32 1e-05, %v1403_v55 }
 0x20d   : > { %v1386_v61 = vpop.xlane.xlu1 %1385 }
 0x20e   : > { %5267 = vrsqrt.f32 %v1411_v60  ;;  %v1395_v9 = vpop.xlane.xlu0 %1394  ;;  %v1402_v17 = vmul.f32 0.03125, %v1386_v61 }
 0x20f   : > { %v5262_v27 = vpop.eup %5261  ;;  %v1405_v29 = vmul.f32 0.03125, %v1395_v9 }
 0x210   : > { %v1410_v30 = vadd.f32 1e-05, %v1402_v17  ;;  %v6105_v35 = vmul.f32 %v5262_v27, %v5978_v32 }
 0x211   : > { %v1413_v36 = vadd.f32 1e-05, %v1405_v29 }
 0x212   : > { %5269 = vrsqrt.f32 %v1410_v30  ;;  %v1960_v38 = vpop.xlane.xlu0 %1959  ;;  %v1435_v40 = vmul.f32 %v6102_v28, %v6105_v35 }
 0x213   : > { %v5264_v41 = vpop.eup %5263  ;;  %v1982_v42 = vmul.f32 0.03125, %v1960_v38  ;;  %5271 = vrsqrt.f32 %v1413_v36 }
 0x214   : > { %v1447_v43 = vadd.f32 %v6110_v37, %v1435_v40  ;;  %v6119_v47 = vmul.f32 %v5264_v41, %v5981_v33 }
 0x215   : > { %v6116_v45 = vsub.f32 %v5905_v56, %v1982_v42  ;;  %v1392_v32 = vpop.xlane.xlu1 %1391 }
 0x216   : > { %v2217_v48 = vpop.xlane.xlu0 %2216  ;;  %v1404_v49 = vmul.f32 0.03125, %v1392_v32  ;;  %5004 = vmatprep.mubr.msk.f32.mxu0 %vm1325_vm1, %v1447_v43  ;;  %v1437_v33 = vmul.f32 %v6102_v28, %v6119_v47  ;;  %v6149_v43 = vld [vmem:[%s7311_s8 + $0x10] sm:$0xff] }
 0x217   : > { %v5266_v52 = vpop.eup %5265  ;;  %v2239_v54 = vmul.f32 0.03125, %v2217_v48  ;;  %v1998_v55 = vmul.f32 %v6116_v45, %v6116_v45 }
 0x218   : > { %v6125_v60 = vmul.f32 %v5266_v52, %v5989_v39  ;;  %v1412_v61 = vadd.f32 1e-05, %v1404_v49  ;;  %v1449_v41 = vadd.f32 %v6110_v37, %v1437_v33 }
 0x219   : > { %v6128_v56 = vsub.f32 %v5921_v0, %v2239_v54  ;;  %v2006_v9 = vsel %vm1325_vm1, %v1998_v55, 0.0 }
 0x21a   : > { %v1436_v17 = vmul.f32 %v6102_v28, %v6125_v60  ;;  %5273 = vrsqrt.f32 %v1412_v61  ;;  %2007 = vadd.xlane.f32.xlu0 %v2006_v9  ;;  %v1966_v27 = vpop.xlane.xlu0 %1965 }
 0x21b   : > { %v5268_v29 = vpop.eup %5267  ;;  %v1984_v30 = vmul.f32 0.03125, %v1966_v27  ;;  %v2255_v39 = vmul.f32 %v6128_v56, %v6128_v56  ;;  %v6175_v27 = vld [vmem:[%s7311_s8] sm:$0xff] }
 0x21c   : > { %v1448_v36 = vadd.f32 %v6110_v37, %v1436_v17  ;;  %v6144_v42 = vmul.f32 %v5268_v29, %v5995_v44  ;;  %v6159_v44 = vld [vmem:[%s7311_s8 + $0x8] sm:$0xff] }
 0x21d   : > { %v6139_v0 = vsub.f32 %v5907_v57, %v1984_v30  ;;  %v2263_v38 = vsel %vm1325_vm1, %v2255_v39, 0.0  ;;  %v1398_v40 = vpop.xlane.xlu1 %1397 }
 0x21e   : > { %2264 = vadd.xlane.f32.xlu0 %v2263_v38  ;;  %v2223_v32 = vpop.xlane.xlu0 %2222  ;;  %v1406_v48 = vmul.f32 0.03125, %v1398_v40  ;;  %5005 = vmatmul.mubr.msk.f32.vlgmr.msra.gmra.mxu0 %vm1325_vm1, %v1448_v36  ;;  %v1439_v17 = vmul.f32 %v6102_v28, %v6144_v42 }
 0x21f   : > { %v5270_v57 = vpop.eup %5269  ;;  %v2241_v49 = vmul.f32 0.03125, %v2223_v32  ;;  %5007 = vmatprep.mubr.msk.f32.mxu0 %vm1325_vm1, %v1449_v41  ;;  %v2000_v52 = vmul.f32 %v6139_v0, %v6139_v0  ;;  %5037 = vmatpush3.msra.mxu0 %v6088_v34 }
 0x220   : > { %v1414_v54 = vadd.f32 1e-05, %v1406_v48  ;;  %v6162_v55 = vmul.f32 %v5270_v57, %v6001_v51  ;;  %5038 = vmatprep.subr.mxu0 %v6149_v43  ;;  %v5272_v51 = vpop.eup %5271  ;;  %v1451_v57 = vadd.f32 %v6110_v37, %v1439_v17 }
 0x221   : > { %v6166_v61 = vsub.f32 %v5923_v1, %v2241_v49  ;;  %v2012_v9 = vsel %vm1325_vm1, %v2000_v52, 0.0  ;;  %v1963_v33 = vpop.xlane.xlu1 %1962  ;;  %5039 = vmatpush3.msra.mxu0 %v6149_v43  ;;  %v6194_v49 = vmul.f32 %v5272_v51, %v6005_v53 }
 0x222   : > { %5275 = vrsqrt.f32 %v1414_v54  ;;  %2013 = vadd.xlane.f32.xlu0 %v2012_v9  ;;  %v1972_v29 = vpop.xlane.xlu0 %1971  ;;  %v1983_v30 = vmul.f32 0.03125, %v1963_v33  ;;  %v1438_v1 = vmul.f32 %v6102_v28, %v6162_v55  ;;  %5040 = vmatprep.subr.mxu0 %v6159_v44 }
 0x223   : > { %v1986_v39 = vmul.f32 0.03125, %v1972_v29  ;;  %v2257_v36 = vmul.f32 %v6166_v61, %v6166_v61  ;;  %5041 = vmatpush3.msra.mxu0 %v6159_v44 }
 0x224   : > { %v6184_v38 = vsub.f32 %v5925_v2, %v1983_v30  ;;  %v1450_v40 = vadd.f32 %v6110_v37, %v1438_v1  ;;  %5042 = vmatprep.subr.mxu0 %v6175_v27 }
 0x225   : > { %v6189_v41 = vsub.f32 %v5927_v3, %v1986_v39  ;;  %v2269_v32 = vsel %vm1325_vm1, %v2257_v36, 0.0  ;;  %v2220_v48 = vpop.xlane.xlu1 %2219  ;;  %5043 = vmatpush3.msra.mxu0 %v6175_v27  ;;  %v1441_v39 = vmul.f32 %v6102_v28, %v6194_v49 }
 0x226   : > { %2270 = vadd.xlane.f32.xlu0 %v2269_v32  ;;  %v2229_v2 = vpop.xlane.xlu0 %2228  ;;  %v2240_v52 = vmul.f32 0.03125, %v2220_v48  ;;  %5008 = vmatmul.mubr.msk.f32.gmra.mxu0 %vm1325_vm1, %v1450_v40  ;;  %v1999_v54 = vmul.f32 %v6184_v38, %v6184_v38 }
 0x227   : > { %v5274_v3 = vpop.eup %5273  ;;  %v2243_v9 = vmul.f32 0.03125, %v2229_v2  ;;  %5010 = vmatprep.mubr.msk.f32.mxu0 %vm1325_vm1, %v1451_v57  ;;  %v2002_v33 = vmul.f32 %v6189_v41, %v6189_v41  ;;  %5076 = vmatprep.subr.mxu0 %v6088_v34 }
 0x228   : > { %v6205_v53 = vsub.f32 %v5941_v10, %v2240_v52  ;;  %v2009_v17 = vsel %vm1325_vm1, %v1999_v54, 0.0  ;;  %v6209_v51 = vmul.f32 %v5274_v3, %v6014_v16 }
 0x229   : > { %v6212_v29 = vsub.f32 %v5943_v11, %v2243_v9  ;;  %v2018_v30 = vsel %vm1325_vm1, %v2002_v33, 0.0  ;;  %v1969_v1 = vpop.xlane.xlu1 %1968  ;;  %2010 = vadd.xlane.f32.xlu1 %v2009_v17  ;;  %v1453_v9 = vadd.f32 %v6110_v37, %v1441_v39  ;;  %v6236_v33 = vld [vmem:[%s7310_s7] ss:$0 sm:$0xff] }
 0x22a   : > { %2019 = vadd.xlane.f32.xlu0 %v2018_v30  ;;  %v1978_v36 = vpop.xlane.xlu0 %1977  ;;  %v1985_v40 = vmul.f32 0.03125, %v1969_v1  ;;  %v2256_v10 = vmul.f32 %v6205_v53, %v6205_v53  ;;  %v1440_v16 = vmul.f32 %v6102_v28, %v6209_v51 }
 0x22b   : > { %v1988_v32 = vmul.f32 0.03125, %v1978_v36  ;;  %v2259_v11 = vmul.f32 %v6212_v29, %v6212_v29 }
 0x22c   : > { %v6224_v48 = vsub.f32 %v5945_v12, %v1985_v40  ;;  %v2266_v57 = vsel %vm1325_vm1, %v2256_v10, 0.0  ;;  %v1452_v2 = vadd.f32 %v6110_v37, %v1440_v16 }
 0x22d   : > { %v6229_v52 = vsub.f32 %v5947_v13, %v1988_v32  ;;  %v2275_v54 = vsel %vm1325_vm1, %v2259_v11, 0.0  ;;  %v2226_v3 = vpop.xlane.xlu1 %2225  ;;  %2267 = vadd.xlane.f32.xlu1 %v2266_v57  ;;  %v1795_v57 = vmul.f32 %v6236_v33, %v6105_v35  ;;  %v1796_v35 = vmul.f32 %v6236_v33, %v6125_v60 }
 0x22e   : > { %2276 = vadd.xlane.f32.xlu0 %v2275_v54  ;;  %v2235_v12 = vpop.xlane.xlu0 %2234  ;;  %v2242_v17 = vmul.f32 0.03125, %v2226_v3  ;;  %5011 = vmatmul.mubr.msk.f32.gmra.mxu0 %vm1325_vm1, %v1452_v2  ;;  %v2001_v13 = vmul.f32 %v6224_v48, %v6224_v48 }
 0x22f   : > { %v5276_v30 = vpop.eup %5275  ;;  %v2245_v1 = vmul.f32 0.03125, %v2235_v12  ;;  %5013 = vmatprep.mubr.msk.f32.mxu0 %vm1325_vm1, %v1453_v9  ;;  %v2004_v39 = vmul.f32 %v6229_v52, %v6229_v52 }
 0x230   : > { %v6245_v36 = vsub.f32 %v5959_v19, %v2242_v17  ;;  %v2015_v40 = vsel %vm1325_vm1, %v2001_v13, 0.0  ;;  %v6249_v10 = vmul.f32 %v5276_v30, %v6024_v31 }
 0x231   : > { %v6252_v16 = vsub.f32 %v6057_v50, %v2245_v1  ;;  %v2024_v32 = vsel %vm1325_vm1, %v2004_v39, 0.0  ;;  %v1975_v11 = vpop.xlane.xlu1 %1974  ;;  %2016 = vadd.xlane.f32.xlu1 %v2015_v40  ;;  %v6264_v50 = vld [vmem:[%s7310_s7 + $0x1] ss:$0 sm:$0xff]  ;;  %v1797_v40 = vmul.f32 %v6236_v33, %v6119_v47 }
 0x232   : > { %2025 = vadd.xlane.f32.xlu0 %v2024_v32  ;;  %v2474_v2 = vpop.xlane.xlu0 %2473  ;;  %v1987_v54 = vmul.f32 0.03125, %v1975_v11  ;;  %v2258_v19 = vmul.f32 %v6245_v36, %v6245_v36  ;;  %v1442_v31 = vmul.f32 %v6102_v28, %v6249_v10  ;;  %v1807_v39 = vadd.f32 %v6264_v50, %v1795_v57 }
 0x233   : > { %v2496_v3 = vmul.f32 0.03125, %v2474_v2  ;;  %v2261_v9 = vmul.f32 %v6252_v16, %v6252_v16  ;;  %v1808_v47 = vadd.f32 %v6264_v50, %v1796_v35  ;;  %v1798_v2 = vmul.f32 %v6236_v33, %v6162_v55 }
 0x234   : > { %v6271_v12 = vsub.f32 %v5961_v20, %v1987_v54  ;;  %v2272_v17 = vsel %vm1325_vm1, %v2258_v19, 0.0  ;;  %v1454_v13 = vadd.f32 %v6110_v37, %v1442_v31 }
 0x235   : > { %v6276_v28 = vsub.f32 %v5917_v62, %v2496_v3  ;;  %v2281_v30 = vsel %vm1325_vm1, %v2261_v9, 0.0  ;;  %v2232_v1 = vpop.xlane.xlu1 %2231  ;;  %2273 = vadd.xlane.f32.xlu1 %v2272_v17  ;;  %v1809_v3 = vadd.f32 %v6264_v50, %v1797_v40 }
 0x236   : > { %2282 = vadd.xlane.f32.xlu0 %v2281_v30  ;;  %v2480_v60 = vpop.xlane.xlu0 %2479  ;;  %v2244_v20 = vmul.f32 0.03125, %v2232_v1  ;;  %5014 = vmatmul.mubr.msk.f32.gmra.mxu0 %vm1325_vm1, %v1454_v13  ;;  %v2003_v37 = vmul.f32 %v6271_v12, %v6271_v12  ;;  %v1810_v30 = vadd.f32 %v6264_v50, %v1798_v2  ;;  %v1800_v1 = vmul.f32 %v6236_v33, %v6209_v51 }
 0x237   : > { %v2498_v32 = vmul.f32 0.03125, %v2480_v60  ;;  %5044 = vmatprep.mubr.msk.f32.mxu0 %vm1325_vm1, %v1807_v39  ;;  %v2512_v62 = vmul.f32 %v6276_v28, %v6276_v28  ;;  %v1802_v2 = vmul.f32 %v6236_v33, %v6249_v10 }
 0x238   : > { %v6289_v11 = vsub.f32 %v5969_v24, %v2244_v20  ;;  %v2021_v57 = vsel %vm1325_vm1, %v2003_v37, 0.0  ;;  %v1799_v24 = vmul.f32 %v6236_v33, %v6144_v42 }
 0x239   : > { %v6296_v54 = vsub.f32 %v5919_v63, %v2498_v32  ;;  %v2520_v19 = vsel %vm1325_vm1, %v2512_v62, 0.0  ;;  %v1981_v31 = vpop.xlane.xlu1 %1980  ;;  %2022 = vadd.xlane.f32.xlu1 %v2021_v57 }
 0x23a   : > { %2521 = vadd.xlane.f32.xlu0 %v2520_v19  ;;  %v2486_v9 = vpop.xlane.xlu0 %2485  ;;  %v1989_v17 = vmul.f32 0.03125, %v1981_v31  ;;  %5045 = vmatmul.mubr.msk.f32.vlgmr.msra.gmra.mxu0 %vm1325_vm1, %v1808_v47  ;;  %v2260_v55 = vmul.f32 %v6289_v11, %v6289_v11  ;;  %v1811_v20 = vadd.f32 %v6264_v50, %v1799_v24  ;;  %v1812_v47 = vadd.f32 %v6264_v50, %v1800_v1 }
 0x23b   : > { %v2500_v35 = vmul.f32 0.03125, %v2486_v9  ;;  %5047 = vmatprep.mubr.msk.f32.mxu0 %vm1325_vm1, %v1809_v3  ;;  %v2514_v63 = vmul.f32 %v6296_v54, %v6296_v54  ;;  %5077 = vmatpush3.msra.mxu0 %v6088_v34 }
 0x23c   : > { %v6310_v13 = vsub.f32 %v5971_v25, %v1989_v17  ;;  %v2278_v42 = vsel %vm1325_vm1, %v2260_v55, 0.0  ;;  %5078 = vmatprep.subr.mxu0 %v6149_v43  ;;  %v1801_v25 = vmul.f32 %v6236_v33, %v6194_v49  ;;  %v1814_v55 = vadd.f32 %v6264_v50, %v1802_v2  ;;  %v1636_v2 = vld [vmem:[%s7308_s5 + $0x8] sm:$0xff] }
 0x23d   : > { %v6318_v39 = vsub.f32 %v5937_v8, %v2500_v35  ;;  %v2526_v40 = vsel %vm1325_vm1, %v2514_v63, 0.0  ;;  %2279 = vadd.xlane.f32.xlu1 %v2278_v42  ;;  %v2238_v60 = vpop.xlane.xlu1 %2237  ;;  %5079 = vmatpush3.msra.mxu0 %v6149_v43 }
 0x23e   : > { %2527 = vadd.xlane.f32.xlu0 %v2526_v40  ;;  %v2492_v37 = vpop.xlane.xlu0 %2491  ;;  %v2246_v32 = vmul.f32 0.03125, %v2238_v60  ;;  %5048 = vmatmul.mubr.msk.f32.gmra.mxu0 %vm1325_vm1, %v1810_v30  ;;  %v2005_v8 = vmul.f32 %v6310_v13, %v6310_v13  ;;  %v1813_v24 = vadd.f32 %v6264_v50, %v1801_v25 }
 0x23f   : > { %v2502_v51 = vmul.f32 0.03125, %v2492_v37  ;;  %5050 = vmatprep.mubr.msk.f32.mxu0 %vm1325_vm1, %v1811_v20  ;;  %v2516_v62 = vmul.f32 %v6318_v39, %v6318_v39  ;;  %5080 = vmatprep.subr.mxu0 %v6159_v44 }
 0x240   : > { %v6333_v49 = vsub.f32 %v6075_v22, %v2246_v32  ;;  %v2027_v57 = vsel %vm1325_vm1, %v2005_v8, 0.0  ;;  %5081 = vmatpush3.msra.mxu0 %v6159_v44 }
 0x241   : > { %v6341_v19 = vsub.f32 %v6048_v46, %v2502_v51  ;;  %v2532_v31 = vsel %vm1325_vm1, %v2516_v62, 0.0  ;;  %2028 = vadd.xlane.f32.xlu1 %v2027_v57  ;;  %v2477_v3 = vpop.xlane.xlu1 %2476  ;;  %5082 = vmatprep.subr.mxu0 %v6175_v27 }
 0x242   : > { %2533 = vadd.xlane.f32.xlu0 %v2532_v31  ;;  %v2497_v22 = vmul.f32 0.03125, %v2477_v3  ;;  %5051 = vmatmul.mubr.msk.f32.gmra.mxu0 %vm1325_vm1, %v1812_v47  ;;  %v2262_v10 = vmul.f32 %v6333_v49, %v6333_v49  ;;  %v1638_v47 = vld [vmem:[%s7308_s5 + $0x18] sm:$0xff]  ;;  %v1635_v31 = vld [vmem:[%s7308_s5] sm:$0xff] }
 0x243   : > { %5053 = vmatprep.mubr.msk.f32.mxu0 %vm1325_vm1, %v1813_v24  ;;  %v2518_v46 = vmul.f32 %v6341_v19, %v6341_v19  ;;  %5083 = vmatpush3.msra.mxu0 %v6175_v27  ;;  %v6397_v3 = vld [vmem:[%s7312_s9 + $0x18] sm:$0xff] }
 0x244   : > { %v6354_v9 = vsub.f32 %v5935_v7, %v2497_v22  ;;  %v2284_v17 = vsel %vm1325_vm1, %v2262_v10, 0.0  ;;  %5016 = vmatprep.subr.mxu1 %v1638_v47  ;;  %5116 = vmatprep.subr.mxu0 %v6397_v3 }
 0x245   : > { %v2538_v35 = vsel %vm1325_vm1, %v2518_v46, 0.0  ;;  %2285 = vadd.xlane.f32.xlu1 %v2284_v17  ;;  %v2483_v63 = vpop.xlane.xlu1 %2482  ;;  %5017 = vmatpush3.msra.mxu1 %v1638_v47 }
 0x246   : > { %2539 = vadd.xlane.f32.xlu0 %v2538_v35  ;;  %v2499_v42 = vmul.f32 0.03125, %v2483_v63  ;;  %5054 = vmatmul.mubr.msk.f32.gmra.mxu0 %vm1325_vm1, %v1814_v55  ;;  %v2513_v30 = vmul.f32 %v6354_v9, %v6354_v9 }
 0x248   : > { %v6363_v1 = vsub.f32 %v5957_v18, %v2499_v42  ;;  %v2523_v7 = vsel %vm1325_vm1, %v2513_v30, 0.0 }
 0x249   : > { %2524 = vadd.xlane.f32.xlu1 %v2523_v7  ;;  %v2489_v40 = vpop.xlane.xlu1 %2488 }
 0x24a   : > { %v2501_v60 = vmul.f32 0.03125, %v2489_v40  ;;  %v2515_v20 = vmul.f32 %v6363_v1, %v6363_v1 }
 0x24c   : > { %v6369_v25 = vsub.f32 %v5967_v23, %v2501_v60  ;;  %v2529_v37 = vsel %vm1325_vm1, %v2515_v20, 0.0 }
 0x24d   : > { %2530 = vadd.xlane.f32.xlu1 %v2529_v37  ;;  %v2495_v32 = vpop.xlane.xlu1 %2494 }
 0x24e   : > { %v2503_v8 = vmul.f32 0.03125, %v2495_v32  ;;  %v2517_v18 = vmul.f32 %v6369_v25, %v6369_v25 }
 0x250   : > { %v6375_v51 = vsub.f32 %v6069_v6, %v2503_v8  ;;  %v2535_v62 = vsel %vm1325_vm1, %v2517_v18, 0.0  ;;  %v1637_v6 = vld [vmem:[%s7308_s5 + $0x10] sm:$0xff] }
 0x251   : > { %2536 = vadd.xlane.f32.xlu1 %v2535_v62  ;;  %5018 = vmatprep.subr.mxu1 %v1637_v6 }
 0x252   : > { %v2519_v57 = vmul.f32 %v6375_v51, %v6375_v51  ;;  %5019 = vmatpush3.msra.mxu1 %v1637_v6 }
 0x253   : > { %5020 = vmatprep.subr.mxu1 %v1636_v2 }
 0x254   : > { %v2541_v23 = vsel %vm1325_vm1, %v2519_v57, 0.0  ;;  %5021 = vmatpush3.msra.mxu1 %v1636_v2 }
 0x255   : > { %2542 = vadd.xlane.f32.xlu1 %v2541_v23  ;;  %5022 = vmatprep.subr.mxu1 %v1635_v31 }
 0x256   : > { %5023 = vmatpush3.msra.mxu1 %v1635_v31 }
 0x257   : > { %5056 = vmatprep.subr.mxu1 %v6088_v34 }
 0x2a3   : > { %v6400_v24 = vpop.xlane.xlu0 %2007 }
 0x2a7   : > { %v2265_v22 = vpop.xlane.xlu0 %2264 }
 0x2a8   : > { %v2287_v10 = vmul.f32 0.03125, %v2265_v22 }
 0x2aa   : > { %v2295_v46 = vadd.f32 1e-05, %v2287_v10 }
 0x2ab   : > { %v6402_v17 = vpop.xlane.xlu0 %2013 }
 0x2ac   : > { %5277 = vrsqrt.f32 %v2295_v46 }
 0x2af   : > { %v2271_v55 = vpop.xlane.xlu0 %2270 }
 0x2b0   : > { %v2289_v35 = vmul.f32 0.03125, %v2271_v55 }
 0x2b2   : > { %v2297_v63 = vadd.f32 1e-05, %v2289_v35  ;;  %v6404_v42 = vpop.xlane.xlu1 %2010 }
 0x2b3   : > { %v6406_v30 = vpop.xlane.xlu0 %2019 }
 0x2b4   : > { %5279 = vrsqrt.f32 %v2297_v63 }
 0x2b6   : > { %v2268_v7 = vpop.xlane.xlu1 %2267 }
 0x2b7   : > { %v2277_v40 = vpop.xlane.xlu0 %2276  ;;  %v2288_v60 = vmul.f32 0.03125, %v2268_v7 }
 0x2b8   : > { %v2291_v20 = vmul.f32 0.03125, %v2277_v40 }
 0x2b9   : > { %v5278_v37 = vpop.eup %5277  ;;  %v2296_v32 = vadd.f32 1e-05, %v2288_v60 }
 0x2ba   : > { %v2299_v8 = vadd.f32 1e-05, %v2291_v20  ;;  %v6408_v18 = vpop.xlane.xlu1 %2016  ;;  %v2311_v62 = vmul.f32 %v5278_v37, %v6128_v56 }
 0x2bb   : > { %5281 = vrsqrt.f32 %v2296_v32  ;;  %v6411_v57 = vpop.xlane.xlu0 %2025 }
 0x2bc   : > { %v2319_v23 = vmul.f32 %v6236_v33, %v2311_v62  ;;  %5283 = vrsqrt.f32 %v2299_v8 }
 0x2be   : > { %v2274_v47 = vpop.xlane.xlu1 %2273  ;;  %v2327_v6 = vadd.f32 %v6264_v50, %v2319_v23 }
 0x2bf   : > { %v2283_v2 = vpop.xlane.xlu0 %2282  ;;  %v2290_v31 = vmul.f32 0.03125, %v2274_v47 }
 0x2c0   : > { %v2293_v22 = vmul.f32 0.03125, %v2283_v2  ;;  %5084 = vmatprep.mubr.msk.f32.mxu0 %vm1325_vm1, %v2327_v6 }
 0x2c1   : > { %v2298_v10 = vadd.f32 1e-05, %v2290_v31  ;;  %v5280_v35 = vpop.eup %5279 }
 0x2c2   : > { %v2301_v46 = vadd.f32 1e-05, %v2293_v22  ;;  %v6416_v55 = vpop.xlane.xlu1 %2022  ;;  %v2313_v63 = vmul.f32 %v5280_v35, %v6166_v61  ;;  %v6438_v22 = vld [vmem:[%s7312_s9 + $0x8] sm:$0xff]  ;;  %v6447_v35 = vld [vmem:[%s7312_s9] sm:$0xff] }
 0x2c3   : > { %5285 = vrsqrt.f32 %v2298_v10 }
 0x2c4   : > { %5287 = vrsqrt.f32 %v2301_v46  ;;  %v2321_v32 = vmul.f32 %v6236_v33, %v2313_v63 }
 0x2c6   : > { %v2280_v56 = vpop.xlane.xlu1 %2279  ;;  %v2329_v6 = vadd.f32 %v6264_v50, %v2321_v32 }
 0x2c7   : > { %v2292_v7 = vmul.f32 0.03125, %v2280_v56 }
 0x2c8   : > { %v5282_v40 = vpop.eup %5281 }
 0x2c9   : > { %v2312_v60 = vmul.f32 %v5282_v40, %v6205_v53  ;;  %v2300_v20 = vadd.f32 1e-05, %v2292_v7  ;;  %v5284_v8 = vpop.eup %5283  ;;  %v6430_v53 = vld [vmem:[%s7312_s9 + $0x10] sm:$0xff] }
 0x2ca   : > { %v6420_v37 = vpop.xlane.xlu1 %2028  ;;  %v2315_v61 = vmul.f32 %v5284_v8, %v6212_v29 }
 0x2cb   : > { %v2320_v62 = vmul.f32 %v6236_v33, %v2312_v60  ;;  %5289 = vrsqrt.f32 %v2300_v20 }
 0x2cc   : > { %v2323_v46 = vmul.f32 %v6236_v33, %v2315_v61 }
 0x2cd   : > { %v2328_v23 = vadd.f32 %v6264_v50, %v2320_v62  ;;  %v6466_v62 = vld [vmem:[%s7307_s4] ss:$0 sm:$0xff] }
 0x2ce   : > { %v2286_v47 = vpop.xlane.xlu1 %2285  ;;  %v2331_v7 = vadd.f32 %v6264_v50, %v2323_v46 }
 0x2cf   : > { %v2294_v2 = vmul.f32 0.03125, %v2286_v47  ;;  %5085 = vmatmul.mubr.msk.f32.vlgmr.msra.gmra.mxu0 %vm1325_vm1, %v2328_v23 }
 0x2d0   : > { %v5286_v31 = vpop.eup %5285  ;;  %5087 = vmatprep.mubr.msk.f32.mxu0 %vm1325_vm1, %v2329_v6  ;;  %5117 = vmatpush3.msra.mxu0 %v6397_v3 }
 0x2d1   : > { %v2302_v10 = vadd.f32 1e-05, %v2294_v2  ;;  %v2314_v29 = vmul.f32 %v5286_v31, %v6245_v36  ;;  %5118 = vmatprep.subr.mxu0 %v6430_v53  ;;  %v5288_v56 = vpop.eup %5287 }
 0x2d2   : > { %5119 = vmatpush3.msra.mxu0 %v6430_v53  ;;  %v2317_v40 = vmul.f32 %v5288_v56, %v6252_v16 }
 0x2d3   : > { %5291 = vrsqrt.f32 %v2302_v10  ;;  %v2322_v63 = vmul.f32 %v6236_v33, %v2314_v29  ;;  %5120 = vmatprep.subr.mxu0 %v6438_v22 }
 0x2d4   : > { %5121 = vmatpush3.msra.mxu0 %v6438_v22  ;;  %v2325_v32 = vmul.f32 %v6236_v33, %v2317_v40 }
 0x2d5   : > { %v2330_v36 = vadd.f32 %v6264_v50, %v2322_v63  ;;  %5122 = vmatprep.subr.mxu0 %v6447_v35 }
 0x2d6   : > { %5123 = vmatpush3.msra.mxu0 %v6447_v35  ;;  %v2333_v47 = vadd.f32 %v6264_v50, %v2325_v32  ;;  %v2030_v32 = vmul.f32 0.03125, %v6400_v24  ;;  %v2032_v24 = vmul.f32 0.03125, %v6402_v17 }
 0x2d7   : > { %5088 = vmatmul.mubr.msk.f32.gmra.mxu0 %vm1325_vm1, %v2330_v36  ;;  %5156 = vmatprep.subr.mxu0 %v6397_v3 }
 0x2d8   : > { %v5290_v60 = vpop.eup %5289  ;;  %5090 = vmatprep.mubr.msk.f32.mxu0 %vm1325_vm1, %v2331_v7 }
 0x2d9   : > { %v2316_v20 = vmul.f32 %v5290_v60, %v6289_v11 }
 0x2db   : > { %v2324_v8 = vmul.f32 %v6236_v33, %v2316_v20  ;;  %v5713_v20 = vmov 0.0  }
 0x2dd   : > { %v2332_v16 = vadd.f32 %v6264_v50, %v2324_v8 }
 0x2de   : > { %v5006_v23 = vpop.f32.mrf.mxu0 }
 0x2df   : > { %v1562_v6 = vadd.f32 %v5006_v23, %v6466_v62  ;;  %5091 = vmatmul.mubr.msk.f32.gmra.mxu0 %vm1325_vm1, %v2332_v16 }
 0x2e0   : > { %v5292_v61 = vpop.eup %5291  ;;  %v1556_v11 = vpop.f32.mrf.mxu0  ;;  %5093 = vmatprep.mubr.msk.f32.mxu0 %vm1325_vm1, %v2333_v47 }
 0x2e1   : > { %v1604_v2 = vmul.f32 0.70710677, %v1562_v6  ;;  %v1557_v31 = vadd.f32 %v6466_v62, %v1556_v11  ;;  %v2318_v10 = vmul.f32 %v5292_v61, %v6333_v49  ;;  %v2038_v61 = vadd.f32 1e-05, %v2030_v32 }
 0x2e2   : > { %v1596_v17 = vmul.f32 0.5, %v1562_v6 }
 0x2e3   : > { %5293 = verf.f32 %v1604_v2  ;;  %v1603_v29 = vmul.f32 0.70710677, %v1557_v31  ;;  %v2326_v46 = vmul.f32 %v6236_v33, %v2318_v10 }
 0x2e5   : > { %5295 = verf.f32 %v1603_v29  ;;  %v2334_v63 = vadd.f32 %v6264_v50, %v2326_v46  ;;  %v2031_v29 = vmul.f32 0.03125, %v6404_v42 }
 0x2e6   : > { %v5009_v56 = vpop.f32.mrf.mxu0 }
 0x2e7   : > { %v6478_v36 = vadd.f32 %v5009_v56, %v6466_v62  ;;  %5094 = vmatmul.mubr.msk.f32.gmra.mxu0 %vm1325_vm1, %v2334_v63  ;;  %v1595_v56 = vmul.f32 0.5, %v1557_v31 }
 0x2e8   : > { %v1566_v7 = vpop.f32.mrf.mxu0  ;;  %5124 = vmatprep.mubr.f32.mxu0 %v5713_v20 }
 0x2e9   : > { %v1606_v40 = vmul.f32 0.70710677, %v6478_v36  ;;  %v1567_v60 = vadd.f32 %v6466_v62, %v1566_v7 }
 0x2eb   : > { %5297 = verf.f32 %v1606_v40  ;;  %v1605_v49 = vmul.f32 0.70710677, %v1567_v60  ;;  %5125 = vmatmul.mubr.f32.vlgmr.msra.gmra.mxu0 %v5713_v20  ;;  %v2040_v40 = vadd.f32 1e-05, %v2032_v24 }
 0x2ec   : > { %5127 = vmatprep.mubr.f32.mxu0 %v5713_v20  ;;  %5157 = vmatpush3.msra.mxu0 %v6397_v3 }
 0x2ed   : > { %5299 = verf.f32 %v1605_v49  ;;  %5158 = vmatprep.subr.mxu0 %v6430_v53  ;;  %v2033_v49 = vmul.f32 0.03125, %v6408_v18 }
 0x2ee   : > { %v5012_v8 = vpop.f32.mrf.mxu0  ;;  %5159 = vmatpush3.msra.mxu0 %v6430_v53 }
 0x2ef   : > { %v6487_v16 = vadd.f32 %v5012_v8, %v6466_v62  ;;  %5128 = vmatmul.mubr.f32.gmra.mxu0 %v5713_v20  ;;  %5160 = vmatprep.subr.mxu0 %v6438_v22  ;;  %v2039_v8 = vadd.f32 1e-05, %v2031_v29  ;;  %v2041_v18 = vadd.f32 1e-05, %v2033_v49 }
 0x2f0   : > { %v5294_v23 = vpop.eup %5293  ;;  %v1576_v47 = vpop.f32.mrf.mxu0  ;;  %5130 = vmatprep.mubr.f32.mxu0 %v5713_v20  ;;  %5161 = vmatpush3.msra.mxu0 %v6438_v22 }
 0x2f1   : > { %v1608_v11 = vmul.f32 0.70710677, %v6487_v16  ;;  %v6494_v2 = vadd.f32 %v6466_v62, %v1576_v47  ;;  %v1620_v46 = vadd.f32 1.0, %v5294_v23  ;;  %5162 = vmatprep.subr.mxu0 %v6447_v35  ;;  %v2522_v47 = vpop.xlane.xlu0 %2521 }
 0x2f2   : > { %v5296_v10 = vpop.eup %5295  ;;  %5163 = vmatpush3.msra.mxu0 %v6447_v35 }
 0x2f3   : > { %v1619_v63 = vadd.f32 1.0, %v5296_v10  ;;  %5301 = verf.f32 %v1608_v11  ;;  %v1607_v7 = vmul.f32 0.70710677, %v6494_v2  ;;  %5131 = vmatmul.mubr.f32.gmra.mxu0 %v5713_v20  ;;  %v1628_v42 = vmul.f32 %v1620_v46, %v1596_v17  ;;  %v2525_v46 = vpop.xlane.xlu1 %2524 }
 0x2f4   : > { %5303 = vrsqrt.f32 %v2038_v61  ;;  %5133 = vmatprep.mubr.f32.mxu0 %v5713_v20  ;;  %v2034_v11 = vmul.f32 0.03125, %v6406_v30  ;;  %v2035_v30 = vmul.f32 0.03125, %v6416_v55 }
 0x2f5   : > { %v1627_v32 = vmul.f32 %v1619_v63, %v1595_v56  ;;  %5305 = verf.f32 %v1607_v7  ;;  %v1597_v63 = vmul.f32 0.5, %v1567_v60  ;;  %v2036_v7 = vmul.f32 0.03125, %v6411_v57  ;;  %v2528_v49 = vpop.xlane.xlu0 %2527 }
 0x2f6   : > { %v5015_v23 = vpop.f32.mrf.mxu0  ;;  %5307 = vrsqrt.f32 %v2040_v40  ;;  %v2043_v60 = vadd.f32 1e-05, %v2035_v30  ;;  %v1599_v30 = vmul.f32 0.5, %v6494_v2 }
 0x2f7   : > { %v6503_v31 = vadd.f32 %v5015_v23, %v6466_v62  ;;  %5024 = vmatprep.mubr.msk.f32.mxu1 %vm1325_vm1, %v1627_v32  ;;  %5134 = vmatmul.mubr.f32.gmra.mxu0 %v5713_v20  ;;  %5309 = vrsqrt.f32 %v2039_v8  ;;  %v2042_v20 = vadd.f32 1e-05, %v2034_v11  ;;  %v2037_v8 = vmul.f32 0.03125, %v6420_v37  ;;  %v2531_v23 = vpop.xlane.xlu1 %2530 }
 0x2f8   : > { %v5298_v6 = vpop.eup %5297  ;;  %v1586_v10 = vpop.f32.mrf.mxu0  ;;  %5025 = vmatmul.mubr.msk.f32.vlgmr.msra.gmra.mxu1 %vm1325_vm1, %v1628_v42  ;;  %v2544_v42 = vmul.f32 0.03125, %v2522_v47  ;;  %v2546_v11 = vmul.f32 0.03125, %v2528_v49  ;;  %v2545_v37 = vmul.f32 0.03125, %v2525_v46  ;;  %v1600_v47 = vmul.f32 0.5, %v6487_v16 }
 0x2f9   : > { %v1610_v61 = vmul.f32 0.70710677, %v6503_v31  ;;  %v6510_v24 = vadd.f32 %v6466_v62, %v1586_v10  ;;  %5057 = vmatpush3.msra.mxu1 %v6088_v34  ;;  %v1622_v56 = vadd.f32 1.0, %v5298_v6  ;;  %v1598_v62 = vmul.f32 0.5, %v6478_v36 }
 0x2fa   : > { %v5300_v29 = vpop.eup %5299  ;;  %5058 = vmatprep.subr.mxu1 %v6149_v43  ;;  %v2044_v36 = vadd.f32 1e-05, %v2036_v7  ;;  %v2553_v49 = vadd.f32 1e-05, %v2545_v37 }
 0x2fb   : > { %v1621_v17 = vadd.f32 1.0, %v5300_v29  ;;  %5311 = verf.f32 %v1610_v61  ;;  %5059 = vmatpush3.msra.mxu1 %v6149_v43  ;;  %v1609_v40 = vmul.f32 0.70710677, %v6510_v24  ;;  %v1630_v55 = vmul.f32 %v1622_v56, %v1598_v62  ;;  %v2537_v7 = vpop.xlane.xlu1 %2536 }
 0x2fc   : > { %5060 = vmatprep.subr.mxu1 %v6159_v44  ;;  %5313 = vrsqrt.f32 %v2041_v18  ;;  %v2534_v18 = vpop.xlane.xlu0 %2533  ;;  %v2045_v61 = vadd.f32 1e-05, %v2037_v8  ;;  %v2552_v56 = vadd.f32 1e-05, %v2544_v42 }
 0x2fd   : > { %v1629_v32 = vmul.f32 %v1621_v17, %v1597_v63  ;;  %5061 = vmatpush3.msra.mxu1 %v6159_v44  ;;  %5315 = verf.f32 %v1609_v40 }
 0x2fe   : > { %5062 = vmatprep.subr.mxu1 %v6175_v27  ;;  %5317 = vrsqrt.f32 %v2042_v20  ;;  %v2554_v20 = vadd.f32 1e-05, %v2546_v11 }
 0x2ff   : > { %5027 = vmatprep.mubr.msk.f32.mxu1 %vm1325_vm1, %v1629_v32  ;;  %5063 = vmatpush3.msra.mxu1 %v6175_v27  ;;  %5319 = vrsqrt.f32 %v2043_v60  ;;  %v2547_v32 = vmul.f32 0.03125, %v2531_v23  ;;  %v2548_v60 = vmul.f32 0.03125, %v2534_v18  ;;  %v2549_v23 = vmul.f32 0.03125, %v2537_v7  ;;  %v2543_v18 = vpop.xlane.xlu1 %2542 }
 0x300   : > { %v5302_v57 = vpop.eup %5301  ;;  %5028 = vmatmul.mubr.msk.f32.gmra.mxu1 %vm1325_vm1, %v1630_v55  ;;  %5096 = vmatprep.subr.mxu1 %v6088_v34  ;;  %5321 = vrsqrt.f32 %v2044_v36  ;;  %v2540_v2 = vpop.xlane.xlu0 %2539 }
 0x301   : > { %v5304_v6 = vpop.eup %5303  ;;  %v1624_v29 = vadd.f32 1.0, %v5302_v57  ;;  %5323 = vrsqrt.f32 %v2045_v61  ;;  %v2555_v42 = vadd.f32 1e-05, %v2547_v32  ;;  %v2556_v11 = vadd.f32 1e-05, %v2548_v60 }
 0x302   : > { %v5306_v10 = vpop.eup %5305  ;;  %v2054_v34 = vmul.f32 %v5304_v6, %v6116_v45  ;;  %5325 = vrsqrt.f32 %v2552_v56  ;;  %v1601_v61 = vmul.f32 0.5, %v6510_v24  ;;  %v1602_v56 = vmul.f32 0.5, %v6503_v31 }
 0x303   : > { %v1623_v63 = vadd.f32 1.0, %v5306_v10  ;;  %v5308_v17 = vpop.eup %5307  ;;  %v1632_v55 = vmul.f32 %v1624_v29, %v1600_v47  ;;  %5327 = vrsqrt.f32 %v2554_v20  ;;  %v2550_v10 = vmul.f32 0.03125, %v2540_v2 }
 0x304   : > { %v5310_v40 = vpop.eup %5309  ;;  %v2062_v57 = vmul.f32 %v6236_v33, %v2054_v34  ;;  %v2056_v45 = vmul.f32 %v5308_v17, %v6139_v0  ;;  %5329 = vrsqrt.f32 %v2553_v49  ;;  %v2557_v47 = vadd.f32 1e-05, %v2549_v23 }
 0x305   : > { %v1631_v62 = vmul.f32 %v1623_v63, %v1599_v30  ;;  %v2055_v8 = vmul.f32 %v5310_v40, %v6184_v38  ;;  %5331 = vrsqrt.f32 %v2555_v42  ;;  %v2551_v17 = vmul.f32 0.03125, %v2543_v18 }
 0x306   : > { %v2070_v63 = vadd.f32 %v6264_v50, %v2062_v57  ;;  %5333 = vrsqrt.f32 %v2556_v11  ;;  %v2064_v24 = vmul.f32 %v6236_v33, %v2056_v45 }
 0x307   : > { %5030 = vmatprep.mubr.msk.f32.mxu1 %vm1325_vm1, %v1631_v62  ;;  %v2063_v38 = vmul.f32 %v6236_v33, %v2055_v8  ;;  %v2558_v62 = vadd.f32 1e-05, %v2550_v10  ;;  %5335 = vrsqrt.f32 %v2557_v47  ;;  %v2559_v40 = vadd.f32 1e-05, %v2551_v17 }
 0x308   : > { %v5312_v46 = vpop.eup %5311  ;;  %5031 = vmatmul.mubr.msk.f32.gmra.mxu1 %vm1325_vm1, %v1632_v55 }
 0x309   : > { %v5314_v16 = vpop.eup %5313  ;;  %v1626_v6 = vadd.f32 1.0, %v5312_v46  ;;  %5337 = vrsqrt.f32 %v2558_v62  ;;  %v2072_v46 = vadd.f32 %v6264_v50, %v2064_v24 }
 0x30a   : > { %v5316_v36 = vpop.eup %5315  ;;  %v2057_v0 = vmul.f32 %v5314_v16, %v6224_v48  ;;  %v2071_v48 = vadd.f32 %v6264_v50, %v2063_v38  ;;  %v5645_v16 = vld [vmem:[%s7311_s8 + $0x18] sm:$0xff]  ;;  %5339 = vrsqrt.f32 %v2559_v40 }
 0x30b   : > { %v1625_v37 = vadd.f32 1.0, %v5316_v36  ;;  %v5318_v29 = vpop.eup %5317  ;;  %v1634_v20 = vmul.f32 %v1626_v6, %v1602_v56 }
 0x30c   : > { %v5320_v7 = vpop.eup %5319  ;;  %v2058_v31 = vmul.f32 %v5318_v29, %v6189_v41  ;;  %v2065_v49 = vmul.f32 %v6236_v33, %v2057_v0 }
 0x30d   : > { %v1633_v30 = vmul.f32 %v1625_v37, %v1601_v61  ;;  %v5322_v34 = vpop.eup %5321  ;;  %v2059_v32 = vmul.f32 %v5320_v7, %v6271_v12 }
 0x30e   : > { %v5324_v55 = vpop.eup %5323  ;;  %v2066_v60 = vmul.f32 %v6236_v33, %v2058_v31  ;;  %v2060_v41 = vmul.f32 %v5322_v34, %v6229_v52  ;;  %v2073_v12 = vadd.f32 %v6264_v50, %v2065_v49 }
 0x30f   : > { %5033 = vmatprep.mubr.msk.f32.mxu1 %vm1325_vm1, %v1633_v30  ;;  %v5326_v2 = vpop.eup %5325  ;;  %v2067_v57 = vmul.f32 %v6236_v33, %v2059_v32  ;;  %v2061_v52 = vmul.f32 %v5324_v55, %v6310_v13 }
 0x310   : > { %5034 = vmatmul.mubr.msk.f32.gmra.mxu1 %vm1325_vm1, %v1634_v20  ;;  %v5328_v8 = vpop.eup %5327  ;;  %v2074_v36 = vadd.f32 %v6264_v50, %v2066_v60  ;;  %v2068_v42 = vmul.f32 %v6236_v33, %v2060_v41  ;;  %v2568_v23 = vmul.f32 %v5326_v2, %v6276_v28 }
 0x311   : > { %5064 = vmatprep.mubr.msk.f32.mxu1 %vm1325_vm1, %v2070_v63  ;;  %v5330_v45 = vpop.eup %5329  ;;  %v2075_v13 = vadd.f32 %v6264_v50, %v2067_v57  ;;  %v2570_v18 = vmul.f32 %v5328_v8, %v6296_v54 }
 0x312   : > { %v2569_v6 = vmul.f32 %v5330_v45, %v6354_v9  ;;  %v5332_v11 = vpop.eup %5331  ;;  %v2076_v10 = vadd.f32 %v6264_v50, %v2068_v42  ;;  %v2576_v28 = vmul.f32 %v6236_v33, %v2568_v23 }
 0x313   : > { %v5334_v61 = vpop.eup %5333  ;;  %v2571_v37 = vmul.f32 %v5332_v11, %v6363_v1  ;;  %v2578_v56 = vmul.f32 %v6236_v33, %v2570_v18 }
 0x314   : > { %5065 = vmatmul.mubr.msk.f32.vlgmr.msra.gmra.mxu1 %vm1325_vm1, %v2071_v48  ;;  %v5336_v29 = vpop.eup %5335  ;;  %v2572_v54 = vmul.f32 %v5334_v61, %v6318_v39 }
 0x315   : > { %5097 = vmatpush3.msra.mxu1 %v5645_v16  ;;  %5067 = vmatprep.mubr.msk.f32.mxu1 %vm1325_vm1, %v2072_v46  ;;  %v2579_v63 = vmul.f32 %v6236_v33, %v2571_v37  ;;  %v2573_v0 = vmul.f32 %v5336_v29, %v6369_v25  ;;  %v2586_v1 = vadd.f32 %v6264_v50, %v2578_v56 }
 0x316   : > { %5098 = vmatprep.subr.mxu1 %v6149_v43  ;;  %v5338_v38 = vpop.eup %5337  ;;  %v2580_v17 = vmul.f32 %v6236_v33, %v2572_v54 }
 0x317   : > { %5099 = vmatpush3.msra.mxu1 %v6149_v43  ;;  %v2069_v43 = vmul.f32 %v6236_v33, %v2061_v52  ;;  %v5340_v47 = vpop.eup %5339  ;;  %v2574_v20 = vmul.f32 %v5338_v38, %v6341_v19  ;;  %v2587_v39 = vadd.f32 %v6264_v50, %v2579_v63  ;;  %v2581_v7 = vmul.f32 %v6236_v33, %v2573_v0 }
 0x318   : > { %5068 = vmatmul.mubr.msk.f32.gmra.mxu1 %vm1325_vm1, %v2073_v12  ;;  %5100 = vmatprep.subr.mxu1 %v6159_v44  ;;  %v2575_v62 = vmul.f32 %v5340_v47, %v6375_v51  ;;  %v2588_v25 = vadd.f32 %v6264_v50, %v2580_v17 }
 0x319   : > { %5070 = vmatprep.mubr.msk.f32.mxu1 %vm1325_vm1, %v2074_v36  ;;  %5101 = vmatpush3.msra.mxu1 %v6159_v44  ;;  %v2577_v44 = vmul.f32 %v6236_v33, %v2569_v6  ;;  %v2077_v9 = vadd.f32 %v6264_v50, %v2069_v43  ;;  %v2582_v24 = vmul.f32 %v6236_v33, %v2574_v20 }
 0x31a   : > { %5102 = vmatprep.subr.mxu1 %v6175_v27  ;;  %v2589_v19 = vadd.f32 %v6264_v50, %v2581_v7  ;;  %v2583_v51 = vmul.f32 %v6236_v33, %v2575_v62 }
 0x31b   : > { %5103 = vmatpush3.msra.mxu1 %v6175_v27  ;;  %v2584_v27 = vadd.f32 %v6264_v50, %v2576_v28  ;;  %v2585_v30 = vadd.f32 %v6264_v50, %v2577_v44  ;;  %v2590_v31 = vadd.f32 %v6264_v50, %v2582_v24 }
 0x31c   : > { %5071 = vmatmul.mubr.msk.f32.gmra.mxu1 %vm1325_vm1, %v2075_v13  ;;  %5136 = vmatprep.subr.mxu1 %v6397_v3 }
 0x31d   : > { %5073 = vmatprep.mubr.msk.f32.mxu1 %vm1325_vm1, %v2076_v10 }
 0x320   : > { %5074 = vmatmul.mubr.msk.f32.gmra.mxu1 %vm1325_vm1, %v2077_v9 }
 0x321   : > { %5104 = vmatprep.mubr.msk.f32.mxu1 %vm1325_vm1, %v2584_v27 }
 0x324   : > { %5105 = vmatmul.mubr.msk.f32.vlgmr.msra.gmra.mxu1 %vm1325_vm1, %v2585_v30 }
 0x325   : > { %5107 = vmatprep.mubr.msk.f32.mxu1 %vm1325_vm1, %v2586_v1  ;;  %5137 = vmatpush3.msra.mxu1 %v6397_v3  ;;  %v6700_v1 = vld [vmem:[%s7313_s10] ss:$0 sm:$0xff] }
 0x326   : > { %5138 = vmatprep.subr.mxu1 %v6430_v53 }
 0x327   : > { %5139 = vmatpush3.msra.mxu1 %v6430_v53  ;;  %v2591_v53 = vadd.f32 %v6264_v50, %v2583_v51 }
 0x328   : > { %5108 = vmatmul.mubr.msk.f32.gmra.mxu1 %vm1325_vm1, %v2587_v39  ;;  %5140 = vmatprep.subr.mxu1 %v6438_v22 }
 0x329   : > { %5110 = vmatprep.mubr.msk.f32.mxu1 %vm1325_vm1, %v2588_v25  ;;  %5141 = vmatpush3.msra.mxu1 %v6438_v22  ;;  %v6617_v22 = vpop.f32.mrf.mxu0 }
 0x32a   : > { %5142 = vmatprep.subr.mxu1 %v6447_v35 }
 0x32b   : > { %5143 = vmatpush3.msra.mxu1 %v6447_v35  ;;  %v6619_v33 = vpop.f32.mrf.mxu0 }
 0x32c   : > { %5111 = vmatmul.mubr.msk.f32.gmra.mxu1 %vm1325_vm1, %v2589_v19  ;;  %5176 = vmatprep.subr.mxu1 %v6397_v3  ;;  %v4557_v3 = vld [vmem:[%s7309_s6] ss:$0 sm:$0xff] }
 0x32d   : > { %5113 = vmatprep.mubr.msk.f32.mxu1 %vm1325_vm1, %v2590_v31  ;;  %v6621_v34 = vpop.f32.mrf.mxu0 }
 0x32f   : > { %v6623_v48 = vpop.f32.mrf.mxu0 }
 0x330   : > { %5114 = vmatmul.mubr.msk.f32.gmra.mxu1 %vm1325_vm1, %v2591_v53 }
 0x331   : > { %v6625_v40 = vpop.f32.mrf.mxu0 }
 0x333   : > { %v6631_v35 = vpop.f32.mrf.mxu0 }
 0x335   : > { %v6635_v55 = vpop.f32.mrf.mxu0 }
 0x337   : > { %v6643_v2 = vpop.f32.mrf.mxu0 }
 0x38f   : > { %v6647_v8 = vpop.f32.mrf.mxu0 }
 0x391   : > { %v6650_v45 = vpop.f32.mrf.mxu0 }
 0x397   : > { %v6655_v36 = vpop.f32.mrf.mxu0 }
 0x399   : > { %v6659_v6 = vpop.f32.mrf.mxu0 }
 0x39f   : > { %v6662_v11 = vpop.f32.mrf.mxu0 }
 0x3a1   : > { %v6669_v10 = vpop.f32.mrf.mxu0 }
 0x3a7   : > { %v6671_v61 = vpop.f32.mrf.mxu0 }
 0x3a9   : > { %v6679_v27 = vpop.f32.mrf.mxu0 }
 0x3ab   : > { %v5126_v54 = vpop.f32.mrf.mxu0 }
 0x3b8   : > { %v5026_v50 = vpop.f32.mrf.mxu1 }
 0x3b9   : > { %v1742_v49 = vadd.f32 %v5026_v50, %v4557_v3 }
 0x3ba   : > { %v1736_v32 = vpop.f32.mrf.mxu1 }
 0x3bb   : > { %v1776_v46 = vadd.f32 %v1742_v49, %v5929_v4  ;;  %v1737_v60 = vadd.f32 %v4557_v3, %v1736_v32 }
 0x3bd   : > { %1784 = vst.msk [vmem:[%s6638_s22 + $0x8] sm:$0xff] %vm1325_vm1, %v1776_v46  ;;  %v1775_v41 = vadd.f32 %v1737_v60, %v5909_v58 }
 0x3bf   : > { %1783 = vst.msk [vmem:[%s6638_s22] sm:$0xff] %vm1325_vm1, %v1775_v41 }
 0x3c0   : > { %v5029_v16 = vpop.f32.mrf.mxu1 }
 0x3c1   : > { %v1752_v12 = vadd.f32 %v5029_v16, %v4557_v3 }
 0x3c2   : > { %v1746_v4 = vpop.f32.mrf.mxu1 }
 0x3c3   : > { %v1778_v57 = vadd.f32 %v1752_v12, %v5949_v14  ;;  %v1747_v52 = vadd.f32 %v4557_v3, %v1746_v4 }
 0x3c5   : > { %1786 = vst.msk [vmem:[%s6638_s22 + $0x18] sm:$0xff] %vm1325_vm1, %v1778_v57  ;;  %v1777_v58 = vadd.f32 %v1747_v52, %v5911_v59 }
 0x3c7   : > { %1785 = vst.msk [vmem:[%s6638_s22 + $0x10] sm:$0xff] %vm1325_vm1, %v1777_v58 }
 0x3c8   : > { %v5032_v42 = vpop.f32.mrf.mxu1 }
 0x3c9   : > { %v1762_v23 = vadd.f32 %v5032_v42, %v4557_v3 }
 0x3ca   : > { %v1756_v13 = vpop.f32.mrf.mxu1 }
 0x3cb   : > { %v1780_v14 = vadd.f32 %v1762_v23, %v5963_v21  ;;  %v1757_v43 = vadd.f32 %v4557_v3, %v1756_v13 }
 0x3cd   : > { %1788 = vst.msk [vmem:[%s6638_s22 + $0x28] sm:$0xff] %vm1325_vm1, %v1780_v14  ;;  %v1779_v59 = vadd.f32 %v1757_v43, %v5931_v5 }
 0x3cf   : > { %1787 = vst.msk [vmem:[%s6638_s22 + $0x20] sm:$0xff] %vm1325_vm1, %v1779_v59 }
 0x3d0   : > { %v5035_v28 = vpop.f32.mrf.mxu1 }
 0x3d1   : > { %v1772_v18 = vadd.f32 %v5035_v28, %v4557_v3 }
 0x3d2   : > { %v1766_v44 = vpop.f32.mrf.mxu1 }
 0x3d3   : > { %v1782_v9 = vadd.f32 %v1772_v18, %v5973_v26  ;;  %v1767_v21 = vadd.f32 %v4557_v3, %v1766_v44  ;;  %v2810_v26 = vpop.f32.mrf.mxu0 }
 0x3d4   : > { %v6674_v37 = vpop.f32.mrf.mxu1 }
 0x3d5   : > { %1790 = vst.msk [vmem:[%s6638_s22 + $0x38] sm:$0xff] %vm1325_vm1, %v1782_v9  ;;  %v1781_v29 = vadd.f32 %v1767_v21, %v5951_v15  ;;  %v5129_v47 = vpop.f32.mrf.mxu0 }
 0x3d6   : > { %v6681_v5 = vpop.f32.mrf.mxu1 }
 0x3d7   : > { %1789 = vst.msk [vmem:[%s6638_s22 + $0x30] sm:$0xff] %vm1325_vm1, %v1781_v29  ;;  %v2820_v20 = vpop.f32.mrf.mxu0 }
 0x3d8   : > { %v6685_v56 = vpop.f32.mrf.mxu1 }
 0x3d9   : > { %v5132_v62 = vpop.f32.mrf.mxu0 }
 0x3da   : > { %v6687_v38 = vpop.f32.mrf.mxu1 }
 0x3db   : > { %v2830_v53 = vpop.f32.mrf.mxu0 }
 0x3dc   : > { %v6689_v30 = vpop.f32.mrf.mxu1 }
 0x3dd   : > { %v5135_v60 = vpop.f32.mrf.mxu0 }
 0x3de   : > { %v6691_v63 = vpop.f32.mrf.mxu1 }
 0x3df   : > { %v2840_v58 = vpop.f32.mrf.mxu0 }
 0x3e0   : > { %v6693_v0 = vpop.f32.mrf.mxu1 }
 0x3e2   : > { %v6695_v15 = vpop.f32.mrf.mxu1 }
 0x3e4   : > { %v5106_v17 = vpop.f32.mrf.mxu1 }
 0x3e5   : > { %v2688_v39 = vadd.f32 %v5106_v17, %v6700_v1 }
 0x3e6   : > { %v2682_v7 = vpop.f32.mrf.mxu1 }
 0x3e7   : > { %v2850_v25 = vadd.f32 %v5126_v54, %v2688_v39  ;;  %v2683_v24 = vadd.f32 %v6700_v1, %v2682_v7 }
 0x3e8   : > { %v5109_v19 = vpop.f32.mrf.mxu1 }
 0x3e9   : > { %5341 = vtanh.f32 %v2850_v25  ;;  %v2849_v51 = vadd.f32 %v2810_v26, %v2683_v24  ;;  %v2698_v3 = vadd.f32 %v5109_v19, %v6700_v1  ;;  %v4602_v26 = vmul.f32 -1.442695, %v2850_v25 }
 0x3ea   : > { %v2692_v31 = vpop.f32.mrf.mxu1 }
 0x3eb   : > { %v2693_v50 = vadd.f32 %v6700_v1, %v2692_v31  ;;  %5343 = vtanh.f32 %v2849_v51  ;;  %v2852_v41 = vadd.f32 %v5129_v47, %v2698_v3  ;;  %v4601_v47 = vmul.f32 -1.442695, %v2849_v51 }
 0x3ec   : > { %v5112_v49 = vpop.f32.mrf.mxu1 }
 0x3ed   : > { %v2851_v32 = vadd.f32 %v2820_v20, %v2693_v50  ;;  %v2708_v16 = vadd.f32 %v5112_v49, %v6700_v1  ;;  %v4604_v20 = vmul.f32 -1.442695, %v2852_v41 }
 0x3ee   : > { %v2702_v46 = vpop.f32.mrf.mxu1 }
 0x3ef   : > { %v2703_v12 = vadd.f32 %v6700_v1, %v2702_v46  ;;  %5345 = vtanh.f32 %v2851_v32  ;;  %v2854_v42 = vadd.f32 %v5132_v62, %v2708_v16  ;;  %v4603_v17 = vmul.f32 -1.442695, %v2851_v32 }
 0x3f0   : > { %v5115_v4 = vpop.f32.mrf.mxu1  ;;  %5347 = vtanh.f32 %v2852_v41 }
 0x3f1   : > { %v2853_v57 = vadd.f32 %v2830_v53, %v2703_v12  ;;  %v2718_v13 = vadd.f32 %v5115_v4, %v6700_v1  ;;  %v4606_v7 = vmul.f32 -1.442695, %v2854_v42 }
 0x3f2   : > { %v2712_v52 = vpop.f32.mrf.mxu1 }
 0x3f3   : > { %v2713_v23 = vadd.f32 %v6700_v1, %v2712_v52  ;;  %5349 = vtanh.f32 %v2853_v57  ;;  %v2856_v59 = vadd.f32 %v5135_v60, %v2718_v13  ;;  %v4605_v39 = vmul.f32 -1.442695, %v2853_v57 }
 0x3f4   : > { %5351 = vtanh.f32 %v2854_v42 }
 0x3f5   : > { %v2855_v14 = vadd.f32 %v2840_v58, %v2713_v23  ;;  %v4608_v19 = vmul.f32 -1.442695, %v2856_v59 }
 0x3f6   : > { %v5342_v43 = vpop.eup %5341 }
 0x3f7   : > { %2931 = vrot.lane.b32.xlu1 %v5342_v43, %s5714_s30  ;;  %5353 = vtanh.f32 %v2855_v14  ;;  %v4607_v62 = vmul.f32 -1.442695, %v2855_v14 }
 0x3f8   : > { %v5344_v28 = vpop.eup %5343  ;;  %5355 = vtanh.f32 %v2856_v59 }
 0x3f9   : > { %2929 = vrot.lane.b32.xlu0 %v5344_v28, %s5714_s30  ;;  %5357 = vpow2.f32 %v4602_v26 }
 0x3fa   : > { %5359 = vpow2.f32 %v4601_v47 }
 0x3fb   : > { %5361 = vpow2.f32 %v4603_v17 }
 0x3fc   : > { %v5346_v18 = vpop.eup %5345  ;;  %5363 = vpow2.f32 %v4604_v20 }
 0x3fd   : > { %2933 = vrot.lane.b32.xlu1 %v5346_v18, %s5714_s30  ;;  %v5348_v44 = vpop.eup %5347  ;;  %5365 = vpow2.f32 %v4605_v39 }
 0x3fe   : > { %5367 = vpow2.f32 %v4606_v7 }
 0x3ff   : > { %5369 = vpow2.f32 %v4607_v62 }
 0x400   : > { %v5350_v9 = vpop.eup %5349  ;;  %5371 = vpow2.f32 %v4608_v19 }
 0x401   : > { %2935 = vrot.lane.b32.xlu1 %v5348_v44, %s5714_s30  ;;  %2937 = vrot.lane.b32.xlu0 %v5350_v9, %s5714_s30  ;;  %v5352_v21 = vpop.eup %5351 }
 0x404   : > { %v5354_v29 = vpop.eup %5353 }
 0x405   : > { %2939 = vrot.lane.b32.xlu1 %v5352_v21, %s5714_s30  ;;  %2941 = vrot.lane.b32.xlu0 %v5354_v29, %s5714_s30  ;;  %v5356_v54 = vpop.eup %5355 }
 0x406   : > { %v5358_v24 = vpop.eup %5357 }
 0x407   : > { %v5360_v31 = vpop.eup %5359  ;;  %v2882_v53 = vadd.f32 1.0, %v5358_v24 }
 0x408   : > { %v2881_v3 = vadd.f32 1.0, %v5360_v31  ;;  %v5362_v25 = vpop.eup %5361 }
 0x409   : > { %2943 = vrot.lane.b32.xlu1 %v5356_v54, %s5714_s30  ;;  %5373 = vrcp.f32 %v2882_v53  ;;  %v5364_v51 = vpop.eup %5363  ;;  %v2883_v50 = vadd.f32 1.0, %v5362_v25 }
 0x40a   : > { %5375 = vrcp.f32 %v2881_v3  ;;  %v5366_v49 = vpop.eup %5365  ;;  %v2884_v32 = vadd.f32 1.0, %v5364_v51 }
 0x40b   : > { %v5368_v46 = vpop.eup %5367  ;;  %5377 = vrcp.f32 %v2883_v50  ;;  %v2885_v60 = vadd.f32 1.0, %v5366_v49 }
 0x40c   : > { %v5370_v41 = vpop.eup %5369  ;;  %5379 = vrcp.f32 %v2884_v32  ;;  %v2886_v16 = vadd.f32 1.0, %v5368_v46 }
 0x40d   : > { %5381 = vrcp.f32 %v2885_v60  ;;  %v2887_v12 = vadd.f32 1.0, %v5370_v41  ;;  %v5372_v4 = vpop.eup %5371 }
 0x40e   : > { %5383 = vrcp.f32 %v2886_v16  ;;  %v2888_v42 = vadd.f32 1.0, %v5372_v4 }
 0x40f   : > { %5385 = vrcp.f32 %v2887_v12 }
 0x410   : > { %5387 = vrcp.f32 %v2888_v42 }
 0x416   : > { %v6718_v57 = vpop.eup %5373 }
 0x417   : > { %v6721_v23 = vpop.eup %5375  ;;  %v2914_v31 = vmul.f32 0.0, %v6718_v57 }
 0x418   : > { %v6726_v43 = vpop.eup %5377  ;;  %v2913_v25 = vmul.f32 0.0, %v6721_v23 }
 0x419   : > { %v6729_v18 = vpop.eup %5379  ;;  %v2915_v49 = vmul.f32 0.0, %v6726_v43 }
 0x41a   : > { %v6732_v44 = vpop.eup %5381  ;;  %v2916_v60 = vmul.f32 0.0, %v6729_v18 }
 0x41b   : > { %v6736_v26 = vpop.eup %5383  ;;  %v2917_v41 = vmul.f32 0.0, %v6732_v44 }
 0x41c   : > { %v6740_v47 = vpop.eup %5385 }
 0x41d   : > { %v6746_v62 = vpop.eup %5387  ;;  %v2919_v42 = vmul.f32 0.0, %v6740_v47 }
 0x469   : > { %v2932_v52 = vpop.permute.xlu1 %2931 }
 0x46a   : > { %v2954_v58 = vmul.f32 %v6718_v57, %v2932_v52 }
 0x46b   : > { %v2930_v13 = vpop.permute.xlu0 %2929 }
 0x46c   : > { %2971 = vrot.lane.b32.xlu1 %v2954_v58, %s7318_s15  ;;  %v2953_v14 = vmul.f32 %v6721_v23, %v2930_v13  ;;  %v2918_v58 = vmul.f32 0.0, %v6736_v26 }
 0x46e   : > { %2969 = vrot.lane.b32.xlu0 %v2953_v14, %s7318_s15 }
 0x46f   : > { %v2934_v59 = vpop.permute.xlu1 %2933 }
 0x470   : > { %v2955_v28 = vmul.f32 %v6726_v43, %v2934_v59 }
 0x472   : > { %2973 = vrot.lane.b32.xlu0 %v2955_v28, %s7318_s15 }
 0x473   : > { %v2936_v9 = vpop.permute.xlu1 %2935  ;;  %v2938_v21 = vpop.permute.xlu0 %2937 }
 0x474   : > { %v2956_v29 = vmul.f32 %v6729_v18, %v2936_v9  ;;  %v2957_v54 = vmul.f32 %v6732_v44, %v2938_v21  ;;  %v2920_v21 = vmul.f32 0.0, %v6746_v62 }
 0x476   : > { %2975 = vrot.lane.b32.xlu1 %v2956_v29, %s7318_s15  ;;  %2977 = vrot.lane.b32.xlu0 %v2957_v54, %s7318_s15 }
 0x477   : > { %v2940_v17 = vpop.permute.xlu1 %2939  ;;  %v2942_v20 = vpop.permute.xlu0 %2941 }
 0x478   : > { %v2958_v39 = vmul.f32 %v6736_v26, %v2940_v17  ;;  %v2959_v7 = vmul.f32 %v6740_v47, %v2942_v20 }
 0x47a   : > { %2979 = vrot.lane.b32.xlu1 %v2958_v39, %s7318_s15  ;;  %2981 = vrot.lane.b32.xlu0 %v2959_v7, %s7318_s15 }
 0x47b   : > { %v2944_v24 = vpop.permute.xlu1 %2943 }
 0x47c   : > { %v2960_v19 = vmul.f32 %v6746_v62, %v2944_v24 }
 0x47e   : > { %2983 = vrot.lane.b32.xlu1 %v2960_v19, %s7318_s15 }
 0x4de   : > { %v2972_v53 = vpop.permute.xlu1 %2971 }
 0x4df   : > { %v6751_v3 = vadd.f32 %v2972_v53, %v2914_v31 }
 0x4e0   : > { %v2970_v51 = vpop.permute.xlu0 %2969 }
 0x4e1   : > { %5389 = vtanh.f32 %v6751_v3  ;;  %v6755_v50 = vadd.f32 %v2970_v51, %v2913_v25 }
 0x4e3   : > { %5391 = vtanh.f32 %v6755_v50 }
 0x4e4   : > { %v2974_v32 = vpop.permute.xlu0 %2973 }
 0x4e5   : > { %v6759_v46 = vadd.f32 %v2974_v32, %v2915_v49 }
 0x4e7   : > { %5393 = vtanh.f32 %v6759_v46 }
 0x4e8   : > { %v2976_v16 = vpop.permute.xlu1 %2975  ;;  %v2978_v12 = vpop.permute.xlu0 %2977 }
 0x4e9   : > { %v6764_v4 = vadd.f32 %v2976_v16, %v2916_v60  ;;  %v6766_v52 = vadd.f32 %v2978_v12, %v2917_v41 }
 0x4eb   : > { %5395 = vtanh.f32 %v6764_v4 }
 0x4ec   : > { %5397 = vtanh.f32 %v6766_v52  ;;  %v2980_v13 = vpop.permute.xlu1 %2979  ;;  %v2982_v14 = vpop.permute.xlu0 %2981 }
 0x4ed   : > { %v6772_v28 = vadd.f32 %v2980_v13, %v2918_v58  ;;  %v6774_v9 = vadd.f32 %v2982_v14, %v2919_v42 }
 0x4ee   : > { %v5390_v59 = vpop.eup %5389 }
 0x4ef   : > { %3019 = vrot.lane.b32.xlu1 %v5390_v59, %s5714_s30  ;;  %5399 = vtanh.f32 %v6772_v28  ;;  %v5647_v59 = vld [vmem:[%s7312_s9 + $0x10] sm:$0xff] }
 0x4f0   : > { %v5392_v29 = vpop.eup %5391  ;;  %5401 = vtanh.f32 %v6774_v9  ;;  %v2984_v54 = vpop.permute.xlu1 %2983 }
 0x4f1   : > { %v6780_v17 = vadd.f32 %v2984_v54, %v2920_v21  ;;  %3017 = vrot.lane.b32.xlu0 %v5392_v29, %s5714_s30  ;;  %v5649_v29 = vld [vmem:[%s7312_s9] sm:$0xff] }
 0x4f3   : > { %5403 = vtanh.f32 %v6780_v17 }
 0x4f4   : > { %v5394_v20 = vpop.eup %5393 }
 0x4f5   : > { %3021 = vrot.lane.b32.xlu0 %v5394_v20, %s5714_s30 }
 0x4f8   : > { %v5396_v39 = vpop.eup %5395 }
 0x4f9   : > { %v5398_v7 = vpop.eup %5397  ;;  %3023 = vrot.lane.b32.xlu1 %v5396_v39, %s5714_s30 }
 0x4fa   : > { %3025 = vrot.lane.b32.xlu0 %v5398_v7, %s5714_s30 }
 0x4fc   : > { %v5400_v24 = vpop.eup %5399 }
 0x4fd   : > { %v5402_v19 = vpop.eup %5401  ;;  %3027 = vrot.lane.b32.xlu1 %v5400_v24, %s5714_s30  ;;  %v2431_v24 = vadd.f32 %v6647_v8, %v6700_v1  ;;  %v2451_v8 = vadd.f32 %v6662_v11, %v6700_v1 }
 0x4fe   : > { %3029 = vrot.lane.b32.xlu0 %v5402_v19, %s5714_s30 }
 0x500   : > { %v5404_v31 = vpop.eup %5403 }
 0x501   : > { %3031 = vrot.lane.b32.xlu1 %v5404_v31, %s5714_s30  ;;  %v2426_v31 = vadd.f32 %v6700_v1, %v6650_v45 }
 0x561   : > { %v3020_v53 = vpop.permute.xlu1 %3019 }
 0x562   : > { %v3042_v25 = vmul.f32 %v6718_v57, %v3020_v53 }
 0x563   : > { %v3018_v51 = vpop.permute.xlu0 %3017 }
 0x564   : > { %3067 = vrot.lane.b32.xlu1 %v3042_v25, %s7318_s15  ;;  %v3041_v49 = vmul.f32 %v6721_v23, %v3018_v51 }
 0x566   : > { %3065 = vrot.lane.b32.xlu0 %v3041_v49, %s7318_s15  ;;  %v2441_v49 = vadd.f32 %v6655_v36, %v6700_v1  ;;  %v2461_v36 = vadd.f32 %v6671_v61, %v6700_v1 }
 0x567   : > { %v3022_v32 = vpop.permute.xlu0 %3021 }
 0x568   : > { %v3043_v60 = vmul.f32 %v6726_v43, %v3022_v32 }
 0x56a   : > { %3069 = vrot.lane.b32.xlu0 %v3043_v60, %s7318_s15  ;;  %v2436_v60 = vadd.f32 %v6700_v1, %v6659_v6 }
 0x56b   : > { %v3024_v41 = vpop.permute.xlu1 %3023 }
 0x56c   : > { %v3044_v16 = vmul.f32 %v6729_v18, %v3024_v41  ;;  %v3026_v12 = vpop.permute.xlu0 %3025 }
 0x56d   : > { %v3045_v58 = vmul.f32 %v6732_v44, %v3026_v12 }
 0x56e   : > { %3071 = vrot.lane.b32.xlu1 %v3044_v16, %s7318_s15 }
 0x56f   : > { %3073 = vrot.lane.b32.xlu0 %v3045_v58, %s7318_s15  ;;  %v3028_v57 = vpop.permute.xlu1 %3027  ;;  %v2446_v58 = vadd.f32 %v6700_v1, %v6669_v10 }
 0x570   : > { %v3046_v23 = vmul.f32 %v6736_v26, %v3028_v57  ;;  %v3030_v42 = vpop.permute.xlu0 %3029  ;;  %v5646_v26 = vld [vmem:[%s7312_s9 + $0x18] sm:$0xff] }
 0x571   : > { %v3047_v13 = vmul.f32 %v6740_v47, %v3030_v42 }
 0x572   : > { %3075 = vrot.lane.b32.xlu1 %v3046_v23, %s7318_s15 }
 0x573   : > { %3077 = vrot.lane.b32.xlu0 %v3047_v13, %s7318_s15  ;;  %v3032_v43 = vpop.permute.xlu1 %3031 }
 0x574   : > { %v3048_v18 = vmul.f32 %v6746_v62, %v3032_v43  ;;  %v5648_v62 = vld [vmem:[%s7312_s9 + $0x8] sm:$0xff] }
 0x576   : > { %3079 = vrot.lane.b32.xlu1 %v3048_v18, %s7318_s15  ;;  %v2456_v18 = vadd.f32 %v6700_v1, %v6679_v27  ;;  %s4430_s15 = sshll.u32 %s6638_s22, 4  ;;  %s7255_s15 = int_to_ptr.vmem [resolvable:$true] %s4430_s15 }
 0x577   : > { %s5651_s23 = scalar_lea.vmem %s7255_s15, 1024 }
 0x578   : > { %p5652_p11 = scmp.ne.s32.totalorder %s7255_s15, %s5651_s23 }
 0x57a   : > { %p5653_p12 = pnand %p5652_p11, %p5828_p5 }
 0x57c   : > { %p5654_p13 = pneg %p5653_p12 }
 0x5d6   : > { %v3068_v14 = vpop.permute.xlu1 %3067 }
 0x5d8   : > { %v3066_v44 = vpop.permute.xlu0 %3065 }
 0x5d9   : > { %5144 = vmatprep.mubr.msk.f32.mxu1 %vm1325_vm1, %v3066_v44 }
 0x5da   : > { %5145 = vmatmul.mubr.msk.f32.vlgmr.msra.gmra.mxu1 %vm1325_vm1, %v3068_v14 }
 0x5db   : > { %5177 = vmatpush3.msra.mxu1 %v5646_v26 }
 0x5dc   : > { %v3070_v47 = vpop.permute.xlu0 %3069  ;;  %5178 = vmatprep.subr.mxu1 %v5647_v59 }
 0x5dd   : > { %5147 = vmatprep.mubr.msk.f32.mxu1 %vm1325_vm1, %v3070_v47  ;;  %5179 = vmatpush3.msra.mxu1 %v5647_v59 }
 0x5de   : > { %5180 = vmatprep.subr.mxu1 %v5648_v62 }
 0x5df   : > { %5181 = vmatpush3.msra.mxu1 %v5648_v62 }
 0x5e0   : > { %v3072_v21 = vpop.permute.xlu1 %3071  ;;  %5182 = vmatprep.subr.mxu1 %v5649_v29 }
 0x5e1   : > { %v3074_v54 = vpop.permute.xlu0 %3073  ;;  %5148 = vmatmul.mubr.msk.f32.gmra.mxu1 %vm1325_vm1, %v3072_v21 }
 0x5e2   : > { %5150 = vmatprep.mubr.msk.f32.mxu1 %vm1325_vm1, %v3074_v54  ;;  %5183 = vmatpush3.msra.mxu1 %v5649_v29 }
 0x5e4   : > { %v3076_v20 = vpop.permute.xlu1 %3075 }
 0x5e5   : > { %v3078_v39 = vpop.permute.xlu0 %3077  ;;  %5151 = vmatmul.mubr.msk.f32.gmra.mxu1 %vm1325_vm1, %v3076_v20 }
 0x5e6   : > { %5153 = vmatprep.mubr.msk.f32.mxu1 %vm1325_vm1, %v3078_v39 }
 0x5e8   : > { %v3080_v7 = vpop.permute.xlu1 %3079 }
 0x5e9   : > { %5154 = vmatmul.mubr.msk.f32.gmra.mxu1 %vm1325_vm1, %v3080_v7 }
 0x69a   : > { %v5146_v19 = vpop.f32.mrf.mxu1 }
 0x69b   : > { %v3203_v53 = vadd.f32 %v5146_v19, %v2431_v24 }
 0x69c   : > { %v3163_v25 = vpop.f32.mrf.mxu1 }
 0x69d   : > { %5405 = vtanh.f32 %v3203_v53  ;;  %v3202_v51 = vadd.f32 %v3163_v25, %v2426_v31  ;;  %v4618_v62 = vmul.f32 -1.442695, %v3203_v53 }
 0x69f   : > { %5407 = vtanh.f32 %v3202_v51  ;;  %v4617_v21 = vmul.f32 -1.442695, %v3202_v51 }
 0x6a1   : > { %v5149_v32 = vpop.f32.mrf.mxu1 }
 0x6a2   : > { %v3205_v41 = vadd.f32 %v5149_v32, %v2441_v49 }
 0x6a3   : > { %v3173_v16 = vpop.f32.mrf.mxu1 }
 0x6a4   : > { %5409 = vtanh.f32 %v3205_v41  ;;  %v3204_v12 = vadd.f32 %v3173_v16, %v2436_v60  ;;  %v4620_v29 = vmul.f32 -1.442695, %v3205_v41 }
 0x6a5   : > { %v5152_v45 = vpop.f32.mrf.mxu1 }
 0x6a6   : > { %v3207_v57 = vadd.f32 %v5152_v45, %v2451_v8  ;;  %5411 = vtanh.f32 %v3204_v12  ;;  %v4619_v54 = vmul.f32 -1.442695, %v3204_v12 }
 0x6a7   : > { %v3183_v23 = vpop.f32.mrf.mxu1 }
 0x6a8   : > { %v3206_v42 = vadd.f32 %v3183_v23, %v2446_v58  ;;  %5413 = vtanh.f32 %v3207_v57  ;;  %v4622_v20 = vmul.f32 -1.442695, %v3207_v57 }
 0x6a9   : > { %v5155_v6 = vpop.f32.mrf.mxu1 }
 0x6aa   : > { %v5406_v13 = vpop.eup %5405  ;;  %v3209_v43 = vadd.f32 %v5155_v6, %v2461_v36  ;;  %5415 = vtanh.f32 %v3206_v42  ;;  %v4621_v39 = vmul.f32 -1.442695, %v3206_v42 }
 0x6ab   : > { %3284 = vrot.lane.b32.xlu1 %v5406_v13, %s5714_s30  ;;  %v3193_v11 = vpop.f32.mrf.mxu1 }
 0x6ac   : > { %v5408_v44 = vpop.eup %5407  ;;  %5417 = vtanh.f32 %v3209_v43  ;;  %v3208_v10 = vadd.f32 %v3193_v11, %v2456_v18  ;;  %v4624_v7 = vmul.f32 -1.442695, %v3209_v43 }
 0x6ad   : > { %3282 = vrot.lane.b32.xlu0 %v5408_v44, %s5714_s30 }
 0x6ae   : > { %5419 = vtanh.f32 %v3208_v10  ;;  %v4623_v25 = vmul.f32 -1.442695, %v3208_v10 }
 0x6af   : > { %5421 = vpow2.f32 %v4618_v62 }
 0x6b0   : > { %5423 = vpow2.f32 %v4617_v21 }
 0x6b1   : > { %v5410_v14 = vpop.eup %5409  ;;  %5425 = vpow2.f32 %v4620_v29 }
 0x6b2   : > { %3288 = vrot.lane.b32.xlu1 %v5410_v14, %s5714_s30  ;;  %5427 = vpow2.f32 %v4619_v54 }
 0x6b3   : > { %v5412_v61 = vpop.eup %5411  ;;  %5429 = vpow2.f32 %v4622_v20 }
 0x6b4   : > { %3286 = vrot.lane.b32.xlu0 %v5412_v61, %s5714_s30  ;;  %5431 = vpow2.f32 %v4621_v39 }
 0x6b5   : > { %v5414_v26 = vpop.eup %5413  ;;  %5433 = vpow2.f32 %v4624_v7 }
 0x6b6   : > { %3292 = vrot.lane.b32.xlu1 %v5414_v26, %s5714_s30 }
 0x6b7   : > { %v5416_v47 = vpop.eup %5415 }
 0x6b8   : > { %3290 = vrot.lane.b32.xlu0 %v5416_v47, %s5714_s30 }
 0x6b9   : > { %v5418_v59 = vpop.eup %5417 }
 0x6ba   : > { %3296 = vrot.lane.b32.xlu1 %v5418_v59, %s5714_s30 }
 0x6bb   : > { %v5420_v27 = vpop.eup %5419 }
 0x6bc   : > { %3294 = vrot.lane.b32.xlu0 %v5420_v27, %s5714_s30  ;;  %v5422_v24 = vpop.eup %5421 }
 0x6bd   : > { %v5424_v19 = vpop.eup %5423  ;;  %v3235_v31 = vadd.f32 1.0, %v5422_v24 }
 0x6be   : > { %v3234_v49 = vadd.f32 1.0, %v5424_v19  ;;  %v5426_v32 = vpop.eup %5425 }
 0x6bf   : > { %5435 = vrcp.f32 %v3235_v31  ;;  %v5428_v53 = vpop.eup %5427  ;;  %v3237_v51 = vadd.f32 1.0, %v5426_v32 }
 0x6c0   : > { %5437 = vpow2.f32 %v4623_v25  ;;  %v5430_v60 = vpop.eup %5429  ;;  %v3236_v41 = vadd.f32 1.0, %v5428_v53 }
 0x6c1   : > { %5439 = vrcp.f32 %v3234_v49  ;;  %v5432_v16 = vpop.eup %5431  ;;  %v3239_v8 = vadd.f32 1.0, %v5430_v60 }
 0x6c2   : > { %5441 = vrcp.f32 %v3237_v51  ;;  %v5434_v12 = vpop.eup %5433  ;;  %v3238_v45 = vadd.f32 1.0, %v5432_v16 }
 0x6c3   : > { %5443 = vrcp.f32 %v3236_v41  ;;  %v3241_v58 = vadd.f32 1.0, %v5434_v12 }
 0x6c4   : > { %5445 = vrcp.f32 %v3239_v8 }
 0x6c5   : > { %5447 = vrcp.f32 %v3238_v45 }
 0x6c6   : > { %5449 = vrcp.f32 %v3241_v58 }
 0x6cc   : > { %v6850_v57 = vpop.eup %5435 }
 0x6cd   : > { %v5438_v36 = vpop.eup %5437  ;;  %v3267_v31 = vmul.f32 %v6850_v57, %v6751_v3 }
 0x6ce   : > { %v6853_v6 = vpop.eup %5439  ;;  %v3240_v43 = vadd.f32 1.0, %v5438_v36 }
 0x6cf   : > { %v6858_v18 = vpop.eup %5441  ;;  %v3266_v32 = vmul.f32 %v6853_v6, %v6755_v50 }
 0x6d0   : > { %5451 = vrcp.f32 %v3240_v43  ;;  %v6861_v14 = vpop.eup %5443  ;;  %v3269_v60 = vmul.f32 %v6858_v18, %v6764_v4 }
 0x6d1   : > { %v6865_v47 = vpop.eup %5445  ;;  %v3268_v3 = vmul.f32 %v6861_v14, %v6759_v46 }
 0x6d2   : > { %v6869_v62 = vpop.eup %5447  ;;  %v3271_v12 = vmul.f32 %v6865_v47, %v6772_v28 }
 0x6d3   : > { %v6873_v54 = vpop.eup %5449  ;;  %v3270_v4 = vmul.f32 %v6869_v62, %v6766_v52 }
 0x6d4   : > { %v3273_v36 = vmul.f32 %v6873_v54, %v6780_v17 }
 0x6dd   : > { %v6878_v7 = vpop.eup %5451 }
 0x6de   : > { %v3272_v52 = vmul.f32 %v6878_v7, %v6774_v9 }
 0x71d   : > { %v3285_v23 = vpop.permute.xlu1 %3284 }
 0x71e   : > { %v3307_v42 = vmul.f32 %v6850_v57, %v3285_v23 }
 0x71f   : > { %v3283_v13 = vpop.permute.xlu0 %3282 }
 0x720   : > { %3324 = vrot.lane.b32.xlu1 %v3307_v42, %s7327_s16  ;;  %v3306_v11 = vmul.f32 %v6853_v6, %v3283_v13 }
 0x722   : > { %3322 = vrot.lane.b32.xlu0 %v3306_v11, %s7327_s16 }
 0x724   : > { %v3289_v44 = vpop.permute.xlu1 %3288 }
 0x725   : > { %v3309_v10 = vmul.f32 %v6858_v18, %v3289_v44 }
 0x726   : > { %v3287_v61 = vpop.permute.xlu0 %3286 }
 0x727   : > { %3328 = vrot.lane.b32.xlu1 %v3309_v10, %s7327_s16  ;;  %v3308_v26 = vmul.f32 %v6861_v14, %v3287_v61 }
 0x728   : > { %v3293_v59 = vpop.permute.xlu1 %3292 }
 0x729   : > { %v3311_v27 = vmul.f32 %v6865_v47, %v3293_v59  ;;  %3326 = vrot.lane.b32.xlu0 %v3308_v26, %s7327_s16 }
 0x72a   : > { %v3291_v21 = vpop.permute.xlu0 %3290 }
 0x72b   : > { %v3310_v29 = vmul.f32 %v6869_v62, %v3291_v21  ;;  %3332 = vrot.lane.b32.xlu1 %v3311_v27, %s7327_s16 }
 0x72c   : > { %v3297_v20 = vpop.permute.xlu1 %3296 }
 0x72d   : > { %v3313_v39 = vmul.f32 %v6873_v54, %v3297_v20  ;;  %3330 = vrot.lane.b32.xlu0 %v3310_v29, %s7327_s16 }
 0x72e   : > { %v3295_v24 = vpop.permute.xlu0 %3294 }
 0x72f   : > { %3336 = vrot.lane.b32.xlu1 %v3313_v39, %s7327_s16  ;;  %v3312_v19 = vmul.f32 %v6878_v7, %v3295_v24 }
 0x731   : > { %3334 = vrot.lane.b32.xlu0 %v3312_v19, %s7327_s16 }
 0x792   : > { %v3325_v25 = vpop.permute.xlu1 %3324 }
 0x793   : > { %v6884_v49 = vadd.f32 %v3325_v25, %v3267_v31 }
 0x794   : > { %v3323_v53 = vpop.permute.xlu0 %3322 }
 0x795   : > { %5453 = vtanh.f32 %v6884_v49  ;;  %v6889_v51 = vadd.f32 %v3323_v53, %v3266_v32 }
 0x797   : > { %5455 = vtanh.f32 %v6889_v51 }
 0x799   : > { %v3329_v41 = vpop.permute.xlu1 %3328 }
 0x79a   : > { %v6894_v16 = vadd.f32 %v3329_v41, %v3269_v60 }
 0x79b   : > { %v3327_v8 = vpop.permute.xlu0 %3326 }
 0x79c   : > { %5457 = vtanh.f32 %v6894_v16  ;;  %v6899_v50 = vadd.f32 %v3327_v8, %v3268_v3 }
 0x79d   : > { %v3333_v45 = vpop.permute.xlu1 %3332 }
 0x79e   : > { %5459 = vtanh.f32 %v6899_v50  ;;  %v6904_v58 = vadd.f32 %v3333_v45, %v3271_v12  ;;  %v2174_v45 = vadd.f32 %v6674_v37, %v6700_v1  ;;  %v2194_v37 = vadd.f32 %v6689_v30, %v6700_v1 }
 0x79f   : > { %v3331_v23 = vpop.permute.xlu0 %3330 }
 0x7a0   : > { %5461 = vtanh.f32 %v6904_v58  ;;  %v6909_v46 = vadd.f32 %v3331_v23, %v3270_v4  ;;  %v2169_v23 = vadd.f32 %v6700_v1, %v6681_v5 }
 0x7a1   : > { %v3337_v13 = vpop.permute.xlu1 %3336 }
 0x7a2   : > { %v5454_v42 = vpop.eup %5453  ;;  %5463 = vtanh.f32 %v6909_v46  ;;  %v6914_v28 = vadd.f32 %v3337_v13, %v3273_v36 }
 0x7a3   : > { %3372 = vrot.lane.b32.xlu1 %v5454_v42, %s5714_s30  ;;  %v3335_v11 = vpop.permute.xlu0 %3334 }
 0x7a4   : > { %v5456_v43 = vpop.eup %5455  ;;  %5465 = vtanh.f32 %v6914_v28  ;;  %v6921_v44 = vadd.f32 %v3335_v11, %v3272_v52  ;;  %v2179_v11 = vadd.f32 %v6700_v1, %v6687_v38  ;;  %v2204_v38 = vadd.f32 %v6693_v0, %v6700_v1 }
 0x7a5   : > { %3370 = vrot.lane.b32.xlu0 %v5456_v43, %s5714_s30  ;;  %v2184_v43 = vadd.f32 %v6685_v56, %v6700_v1 }
 0x7a6   : > { %5467 = vtanh.f32 %v6921_v44 }
 0x7a9   : > { %v5458_v17 = vpop.eup %5457 }
 0x7aa   : > { %3376 = vrot.lane.b32.xlu1 %v5458_v17, %s5714_s30 }
 0x7ab   : > { %v5460_v10 = vpop.eup %5459 }
 0x7ac   : > { %3374 = vrot.lane.b32.xlu0 %v5460_v10, %s5714_s30 }
 0x7ad   : > { %v5462_v61 = vpop.eup %5461 }
 0x7ae   : > { %3380 = vrot.lane.b32.xlu1 %v5462_v61, %s5714_s30 }
 0x7af   : > { %v5464_v26 = vpop.eup %5463 }
 0x7b0   : > { %3378 = vrot.lane.b32.xlu0 %v5464_v26, %s5714_s30  ;;  %v2189_v26 = vadd.f32 %v6700_v1, %v6691_v63 }
 0x7b1   : > { %v5466_v9 = vpop.eup %5465 }
 0x7b2   : > { %3384 = vrot.lane.b32.xlu1 %v5466_v9, %s5714_s30 }
 0x7b3   : > { %v5468_v59 = vpop.eup %5467 }
 0x7b4   : > { %3382 = vrot.lane.b32.xlu0 %v5468_v59, %s5714_s30 }
 0x815   : > { %v3373_v27 = vpop.permute.xlu1 %3372 }
 0x816   : > { %v3395_v21 = vmul.f32 %v6850_v57, %v3373_v27 }
 0x817   : > { %v3371_v29 = vpop.permute.xlu0 %3370 }
 0x818   : > { %3420 = vrot.lane.b32.xlu1 %v3395_v21, %s7327_s16  ;;  %v3394_v20 = vmul.f32 %v6853_v6, %v3371_v29 }
 0x81a   : > { %3418 = vrot.lane.b32.xlu0 %v3394_v20, %s7327_s16  ;;  %v2199_v20 = vadd.f32 %v6700_v1, %v6695_v15 }
 0x81c   : > { %v3377_v39 = vpop.permute.xlu1 %3376 }
 0x81d   : > { %v3397_v24 = vmul.f32 %v6858_v18, %v3377_v39 }
 0x81e   : > { %v3375_v19 = vpop.permute.xlu0 %3374 }
 0x81f   : > { %3424 = vrot.lane.b32.xlu1 %v3397_v24, %s7327_s16  ;;  %v3396_v31 = vmul.f32 %v6861_v14, %v3375_v19 }
 0x820   : > { %v3381_v25 = vpop.permute.xlu1 %3380 }
 0x821   : > { %v3399_v32 = vmul.f32 %v6865_v47, %v3381_v25  ;;  %3422 = vrot.lane.b32.xlu0 %v3396_v31, %s7327_s16 }
 0x822   : > { %v3379_v57 = vpop.permute.xlu0 %3378 }
 0x823   : > { %v3398_v53 = vmul.f32 %v6869_v62, %v3379_v57  ;;  %3428 = vrot.lane.b32.xlu1 %v3399_v32, %s7327_s16 }
 0x824   : > { %v3385_v6 = vpop.permute.xlu1 %3384 }
 0x825   : > { %v3401_v60 = vmul.f32 %v6873_v54, %v3385_v6  ;;  %3426 = vrot.lane.b32.xlu0 %v3398_v53, %s7327_s16 }
 0x826   : > { %v3383_v18 = vpop.permute.xlu0 %3382 }
 0x827   : > { %3432 = vrot.lane.b32.xlu1 %v3401_v60, %s7327_s16  ;;  %v3400_v14 = vmul.f32 %v6878_v7, %v3383_v18 }
 0x829   : > { %3430 = vrot.lane.b32.xlu0 %v3400_v14, %s7327_s16 }
 0x88a   : > { %v3421_v41 = vpop.permute.xlu1 %3420 }
 0x88c   : > { %v3419_v47 = vpop.permute.xlu0 %3418 }
 0x88d   : > { %5164 = vmatprep.mubr.msk.f32.mxu0 %vm1325_vm1, %v3419_v47 }
 0x88e   : > { %5165 = vmatmul.mubr.msk.f32.vlgmr.msra.gmra.mxu0 %vm1325_vm1, %v3421_v41 }
 0x891   : > { %v3425_v62 = vpop.permute.xlu1 %3424 }
 0x893   : > { %v3423_v3 = vpop.permute.xlu0 %3422 }
 0x894   : > { %5167 = vmatprep.mubr.msk.f32.mxu0 %vm1325_vm1, %v3423_v3 }
 0x895   : > { %5168 = vmatmul.mubr.msk.f32.gmra.mxu0 %vm1325_vm1, %v3425_v62  ;;  %v3429_v8 = vpop.permute.xlu1 %3428 }
 0x897   : > { %v3427_v54 = vpop.permute.xlu0 %3426 }
 0x898   : > { %5170 = vmatprep.mubr.msk.f32.mxu0 %vm1325_vm1, %v3427_v54 }
 0x899   : > { %5171 = vmatmul.mubr.msk.f32.gmra.mxu0 %vm1325_vm1, %v3429_v8  ;;  %v3433_v12 = vpop.permute.xlu1 %3432 }
 0x89b   : > { %v3431_v7 = vpop.permute.xlu0 %3430 }
 0x89c   : > { %5173 = vmatprep.mubr.msk.f32.mxu0 %vm1325_vm1, %v3431_v7 }
 0x89d   : > { %5174 = vmatmul.mubr.msk.f32.gmra.mxu0 %vm1325_vm1, %v3433_v12 }
 0x94e   : > { %v5166_v4 = vpop.f32.mrf.mxu0 }
 0x94f   : > { %v3556_v36 = vadd.f32 %v5166_v4, %v2174_v45 }
 0x950   : > { %v3516_v42 = vpop.f32.mrf.mxu0 }
 0x951   : > { %5469 = vtanh.f32 %v3556_v36  ;;  %v3555_v13 = vadd.f32 %v3516_v42, %v2169_v23  ;;  %v4634_v1 = vmul.f32 -1.442695, %v3556_v36 }
 0x953   : > { %5471 = vtanh.f32 %v3555_v13  ;;  %v4633_v32 = vmul.f32 -1.442695, %v3555_v13 }
 0x955   : > { %v5169_v52 = vpop.f32.mrf.mxu0 }
 0x956   : > { %v3558_v17 = vadd.f32 %v5169_v52, %v2184_v43 }
 0x957   : > { %v3526_v10 = vpop.f32.mrf.mxu0 }
 0x958   : > { %5473 = vtanh.f32 %v3558_v17  ;;  %v3557_v61 = vadd.f32 %v3526_v10, %v2179_v11  ;;  %v4636_v57 = vmul.f32 -1.442695, %v3558_v17 }
 0x959   : > { %v5172_v5 = vpop.f32.mrf.mxu0 }
 0x95a   : > { %v3560_v9 = vadd.f32 %v5172_v5, %v2194_v37  ;;  %5475 = vtanh.f32 %v3557_v61  ;;  %v4635_v53 = vmul.f32 -1.442695, %v3557_v61 }
 0x95b   : > { %v3536_v59 = vpop.f32.mrf.mxu0 }
 0x95c   : > { %v3559_v56 = vadd.f32 %v3536_v59, %v2189_v26  ;;  %5477 = vtanh.f32 %v3560_v9  ;;  %v4638_v6 = vmul.f32 -1.442695, %v3560_v9 }
 0x95d   : > { %v5175_v21 = vpop.f32.mrf.mxu0 }
 0x95e   : > { %v5470_v27 = vpop.eup %5469  ;;  %5479 = vtanh.f32 %v3559_v56  ;;  %v3562_v29 = vadd.f32 %v5175_v21, %v2204_v38  ;;  %v4637_v60 = vmul.f32 -1.442695, %v3559_v56 }
 0x95f   : > { %3637 = vrot.lane.b32.xlu1 %v5470_v27, %s5714_s30  ;;  %v3546_v39 = vpop.f32.mrf.mxu0 }
 0x960   : > { %v5472_v30 = vpop.eup %5471  ;;  %5481 = vtanh.f32 %v3562_v29  ;;  %v3561_v63 = vadd.f32 %v3546_v39, %v2199_v20  ;;  %v4640_v47 = vmul.f32 -1.442695, %v3562_v29 }
 0x961   : > { %3635 = vrot.lane.b32.xlu0 %v5472_v30, %s5714_s30 }
 0x962   : > { %5483 = vtanh.f32 %v3561_v63  ;;  %v4639_v3 = vmul.f32 -1.442695, %v3561_v63 }
 0x963   : > { %5485 = vpow2.f32 %v4634_v1 }
 0x964   : > { %5487 = vpow2.f32 %v4633_v32 }
 0x965   : > { %v5474_v24 = vpop.eup %5473  ;;  %5489 = vpow2.f32 %v4636_v57 }
 0x966   : > { %3641 = vrot.lane.b32.xlu1 %v5474_v24, %s5714_s30  ;;  %5491 = vpow2.f32 %v4635_v53 }
 0x967   : > { %v5476_v19 = vpop.eup %5475  ;;  %5493 = vpow2.f32 %v4638_v6 }
 0x968   : > { %3639 = vrot.lane.b32.xlu0 %v5476_v19, %s5714_s30  ;;  %5495 = vpow2.f32 %v4637_v60 }
 0x969   : > { %v5478_v0 = vpop.eup %5477  ;;  %5497 = vpow2.f32 %v4640_v47 }
 0x96a   : > { %3645 = vrot.lane.b32.xlu1 %v5478_v0, %s5714_s30 }
 0x96b   : > { %v5480_v31 = vpop.eup %5479 }
 0x96c   : > { %3643 = vrot.lane.b32.xlu0 %v5480_v31, %s5714_s30 }
 0x96d   : > { %v5482_v25 = vpop.eup %5481 }
 0x96e   : > { %3649 = vrot.lane.b32.xlu1 %v5482_v25, %s5714_s30 }
 0x96f   : > { %v5484_v15 = vpop.eup %5483 }
 0x970   : > { %3647 = vrot.lane.b32.xlu0 %v5484_v15, %s5714_s30  ;;  %v5486_v18 = vpop.eup %5485 }
 0x971   : > { %v5488_v14 = vpop.eup %5487  ;;  %v3588_v41 = vadd.f32 1.0, %v5486_v18 }
 0x972   : > { %v3587_v62 = vadd.f32 1.0, %v5488_v14  ;;  %v5490_v54 = vpop.eup %5489 }
 0x973   : > { %5499 = vrcp.f32 %v3588_v41  ;;  %v5492_v8 = vpop.eup %5491  ;;  %v3590_v7 = vadd.f32 1.0, %v5490_v54 }
 0x974   : > { %5501 = vrcp.f32 %v3587_v62  ;;  %v5494_v12 = vpop.eup %5493  ;;  %v3589_v45 = vadd.f32 1.0, %v5492_v8 }
 0x975   : > { %5503 = vpow2.f32 %v4639_v3  ;;  %v5496_v4 = vpop.eup %5495  ;;  %v3592_v23 = vadd.f32 1.0, %v5494_v12 }
 0x976   : > { %5505 = vrcp.f32 %v3590_v7  ;;  %v3591_v36 = vadd.f32 1.0, %v5496_v4  ;;  %v5498_v42 = vpop.eup %5497 }
 0x977   : > { %5507 = vrcp.f32 %v3589_v45  ;;  %v3594_v17 = vadd.f32 1.0, %v5498_v42 }
 0x978   : > { %5509 = vrcp.f32 %v3592_v23 }
 0x979   : > { %5511 = vrcp.f32 %v3591_v36 }
 0x97a   : > { %5513 = vrcp.f32 %v3594_v17 }
 0x980   : > { %v6978_v13 = vpop.eup %5499 }
 0x981   : > { %v6981_v11 = vpop.eup %5501  ;;  %v3620_v1 = vmul.f32 %v6978_v13, %v6884_v49 }
 0x982   : > { %v5504_v10 = vpop.eup %5503  ;;  %v3619_v53 = vmul.f32 %v6981_v11, %v6889_v51 }
 0x983   : > { %v3593_v5 = vadd.f32 1.0, %v5504_v10  ;;  %v6986_v26 = vpop.eup %5505 }
 0x984   : > { %v6989_v56 = vpop.eup %5507  ;;  %v3622_v18 = vmul.f32 %v6986_v26, %v6894_v16 }
 0x985   : > { %5515 = vrcp.f32 %v3593_v5  ;;  %v6993_v21 = vpop.eup %5509  ;;  %v3621_v49 = vmul.f32 %v6989_v56, %v6899_v50 }
 0x986   : > { %v6997_v20 = vpop.eup %5511  ;;  %v3624_v62 = vmul.f32 %v6993_v21, %v6904_v58 }
 0x987   : > { %v7002_v24 = vpop.eup %5513  ;;  %v3623_v16 = vmul.f32 %v6997_v20, %v6909_v46 }
 0x988   : > { %v3626_v58 = vmul.f32 %v7002_v24, %v6914_v28 }
 0x992   : > { %v7006_v31 = vpop.eup %5515 }
 0x993   : > { %v3625_v46 = vmul.f32 %v7006_v31, %v6921_v44 }
 0x9d1   : > { %v3638_v43 = vpop.permute.xlu1 %3637 }
 0x9d2   : > { %v3660_v52 = vmul.f32 %v6978_v13, %v3638_v43 }
 0x9d3   : > { %v3636_v37 = vpop.permute.xlu0 %3635 }
 0x9d4   : > { %3677 = vrot.lane.b32.xlu1 %v3660_v52, %s7327_s16  ;;  %v3659_v61 = vmul.f32 %v6981_v11, %v3636_v37 }
 0x9d6   : > { %3675 = vrot.lane.b32.xlu0 %v3659_v61, %s7327_s16 }
 0x9d8   : > { %v3642_v9 = vpop.permute.xlu1 %3641 }
 0x9d9   : > { %v3662_v59 = vmul.f32 %v6986_v26, %v3642_v9 }
 0x9da   : > { %v3640_v27 = vpop.permute.xlu0 %3639 }
 0x9db   : > { %3681 = vrot.lane.b32.xlu1 %v3662_v59, %s7327_s16  ;;  %v3661_v38 = vmul.f32 %v6989_v56, %v3640_v27 }
 0x9dc   : > { %v3646_v30 = vpop.permute.xlu1 %3645 }
 0x9dd   : > { %v3664_v29 = vmul.f32 %v6993_v21, %v3646_v30  ;;  %3679 = vrot.lane.b32.xlu0 %v3661_v38, %s7327_s16 }
 0x9de   : > { %v3644_v39 = vpop.permute.xlu0 %3643 }
 0x9df   : > { %v3663_v63 = vmul.f32 %v6997_v20, %v3644_v39  ;;  %3685 = vrot.lane.b32.xlu1 %v3664_v29, %s7327_s16 }
 0x9e0   : > { %v3650_v19 = vpop.permute.xlu1 %3649 }
 0x9e1   : > { %3683 = vrot.lane.b32.xlu0 %v3663_v63, %s7327_s16  ;;  %v3666_v0 = vmul.f32 %v7002_v24, %v3650_v19 }
 0x9e2   : > { %v3648_v25 = vpop.permute.xlu0 %3647 }
 0x9e3   : > { %3689 = vrot.lane.b32.xlu1 %v3666_v0, %s7327_s16  ;;  %v3665_v15 = vmul.f32 %v7006_v31, %v3648_v25 }
 0x9e5   : > { %3687 = vrot.lane.b32.xlu0 %v3665_v15, %s7327_s16 }
 0xa46   : > { %v3678_v32 = vpop.permute.xlu1 %3677 }
 0xa47   : > { %v7012_v57 = vadd.f32 %v3678_v32, %v3620_v1  ;;  %v5650_v1 = vld [vmem:[%s7313_s10] ss:$0 sm:$0xff] }
 0xa48   : > { %v3676_v6 = vpop.permute.xlu0 %3675  ;;  %v1917_v32 = vadd.f32 %v5650_v1, %v6617_v22 }
 0xa49   : > { %5517 = vtanh.f32 %v7012_v57  ;;  %v7017_v60 = vadd.f32 %v3676_v6, %v3619_v53  ;;  %v1912_v6 = vadd.f32 %v5650_v1, %v6619_v33 }
 0xa4b   : > { %5519 = vtanh.f32 %v7017_v60 }
 0xa4d   : > { %v3682_v14 = vpop.permute.xlu1 %3681 }
 0xa4e   : > { %v7022_v47 = vadd.f32 %v3682_v14, %v3622_v18 }
 0xa4f   : > { %v3680_v41 = vpop.permute.xlu0 %3679 }
 0xa50   : > { %5521 = vtanh.f32 %v7022_v47  ;;  %v7027_v51 = vadd.f32 %v3680_v41, %v3621_v49  ;;  %v1927_v41 = vadd.f32 %v5650_v1, %v6621_v34 }
 0xa51   : > { %v3686_v3 = vpop.permute.xlu1 %3685 }
 0xa52   : > { %5523 = vtanh.f32 %v7027_v51  ;;  %v7032_v54 = vadd.f32 %v3686_v3, %v3624_v62  ;;  %v1922_v3 = vadd.f32 %v5650_v1, %v6623_v48  ;;  %v1947_v48 = vadd.f32 %v5650_v1, %v6635_v55 }
 0xa53   : > { %v3684_v8 = vpop.permute.xlu0 %3683 }
 0xa54   : > { %5525 = vtanh.f32 %v7032_v54  ;;  %v7037_v50 = vadd.f32 %v3684_v8, %v3623_v16 }
 0xa55   : > { %v3690_v45 = vpop.permute.xlu1 %3689 }
 0xa56   : > { %v5518_v7 = vpop.eup %5517  ;;  %5527 = vtanh.f32 %v7037_v50  ;;  %v7043_v4 = vadd.f32 %v3690_v45, %v3626_v58 }
 0xa57   : > { %3725 = vrot.lane.b32.xlu1 %v5518_v7, %s5714_s30  ;;  %v3688_v36 = vpop.permute.xlu0 %3687  ;;  %v1937_v7 = vadd.f32 %v5650_v1, %v6625_v40  ;;  %v1942_v40 = vadd.f32 %v5650_v1, %v6643_v2 }
 0xa58   : > { %v5520_v12 = vpop.eup %5519  ;;  %5529 = vtanh.f32 %v7043_v4  ;;  %v7049_v42 = vadd.f32 %v3688_v36, %v3625_v46 }
 0xa59   : > { %3723 = vrot.lane.b32.xlu0 %v5520_v12, %s5714_s30  ;;  %v1932_v12 = vadd.f32 %v5650_v1, %v6631_v35 }
 0xa5a   : > { %5531 = vtanh.f32 %v7049_v42 }
 0xa5d   : > { %v5522_v23 = vpop.eup %5521 }
 0xa5e   : > { %3729 = vrot.lane.b32.xlu1 %v5522_v23, %s5714_s30 }
 0xa5f   : > { %v5524_v43 = vpop.eup %5523 }
 0xa60   : > { %3727 = vrot.lane.b32.xlu0 %v5524_v43, %s5714_s30 }
 0xa61   : > { %v5526_v28 = vpop.eup %5525 }
 0xa62   : > { %3733 = vrot.lane.b32.xlu1 %v5526_v28, %s5714_s30 }
 0xa63   : > { %v5528_v52 = vpop.eup %5527 }
 0xa64   : > { %3731 = vrot.lane.b32.xlu0 %v5528_v52, %s5714_s30 }
 0xa65   : > { %v5530_v17 = vpop.eup %5529 }
 0xa66   : > { %3737 = vrot.lane.b32.xlu1 %v5530_v17, %s5714_s30 }
 0xa67   : > { %v5532_v44 = vpop.eup %5531 }
 0xa68   : > { %3735 = vrot.lane.b32.xlu0 %v5532_v44, %s5714_s30 }
 0xac9   : > { %v3726_v10 = vpop.permute.xlu1 %3725 }
 0xaca   : > { %v3748_v37 = vmul.f32 %v6978_v13, %v3726_v10 }
 0xacb   : > { %v3724_v61 = vpop.permute.xlu0 %3723 }
 0xacc   : > { %3773 = vrot.lane.b32.xlu1 %v3748_v37, %s7327_s16  ;;  %v3747_v5 = vmul.f32 %v6981_v11, %v3724_v61 }
 0xace   : > { %3771 = vrot.lane.b32.xlu0 %v3747_v5, %s7327_s16 }
 0xad0   : > { %v3730_v9 = vpop.permute.xlu1 %3729 }
 0xad1   : > { %v3750_v59 = vmul.f32 %v6986_v26, %v3730_v9 }
 0xad2   : > { %v3728_v27 = vpop.permute.xlu0 %3727 }
 0xad3   : > { %3777 = vrot.lane.b32.xlu1 %v3750_v59, %s7327_s16  ;;  %v3749_v38 = vmul.f32 %v6989_v56, %v3728_v27 }
 0xad4   : > { %v3734_v30 = vpop.permute.xlu1 %3733 }
 0xad5   : > { %v3752_v29 = vmul.f32 %v6993_v21, %v3734_v30  ;;  %3775 = vrot.lane.b32.xlu0 %v3749_v38, %s7327_s16 }
 0xad6   : > { %v3732_v13 = vpop.permute.xlu0 %3731 }
 0xad7   : > { %v3751_v39 = vmul.f32 %v6997_v20, %v3732_v13  ;;  %3781 = vrot.lane.b32.xlu1 %v3752_v29, %s7327_s16 }
 0xad8   : > { %v3738_v11 = vpop.permute.xlu1 %3737 }
 0xad9   : > { %3779 = vrot.lane.b32.xlu0 %v3751_v39, %s7327_s16  ;;  %v3754_v26 = vmul.f32 %v7002_v24, %v3738_v11 }
 0xada   : > { %v3736_v63 = vpop.permute.xlu0 %3735 }
 0xadb   : > { %3785 = vrot.lane.b32.xlu1 %v3754_v26, %s7327_s16  ;;  %v3753_v56 = vmul.f32 %v7006_v31, %v3736_v63 }
 0xadd   : > { %3783 = vrot.lane.b32.xlu0 %v3753_v56, %s7327_s16 }
 0xb3e   : > { %v3774_v19 = vpop.permute.xlu1 %3773 }
 0xb40   : > { %v3772_v21 = vpop.permute.xlu0 %3771 }
 0xb41   : > { %5184 = vmatprep.mubr.msk.f32.mxu1 %vm1325_vm1, %v3772_v21 }
 0xb42   : > { %5185 = vmatmul.mubr.msk.f32.vlgmr.msra.gmra.mxu1 %vm1325_vm1, %v3774_v19 }
 0xb45   : > { %v3778_v20 = vpop.permute.xlu1 %3777 }
 0xb47   : > { %v3776_v0 = vpop.permute.xlu0 %3775 }
 0xb48   : > { %5187 = vmatprep.mubr.msk.f32.mxu1 %vm1325_vm1, %v3776_v0 }
 0xb49   : > { %5188 = vmatmul.mubr.msk.f32.gmra.mxu1 %vm1325_vm1, %v3778_v20  ;;  %v3782_v25 = vpop.permute.xlu1 %3781 }
 0xb4b   : > { %v3780_v24 = vpop.permute.xlu0 %3779 }
 0xb4c   : > { %5190 = vmatprep.mubr.msk.f32.mxu1 %vm1325_vm1, %v3780_v24 }
 0xb4d   : > { %5191 = vmatmul.mubr.msk.f32.gmra.mxu1 %vm1325_vm1, %v3782_v25  ;;  %v3786_v15 = vpop.permute.xlu1 %3785 }
 0xb4f   : > { %v3784_v31 = vpop.permute.xlu0 %3783 }
 0xb50   : > { %5193 = vmatprep.mubr.msk.f32.mxu1 %vm1325_vm1, %v3784_v31 }
 0xb51   : > { %5194 = vmatmul.mubr.msk.f32.gmra.mxu1 %vm1325_vm1, %v3786_v15 }
 0xc02   : > { %v5186_v53 = vpop.f32.mrf.mxu1 }
 0xc03   : > { %v3909_v18 = vadd.f32 %v5186_v53, %v1917_v32 }
 0xc04   : > { %v3869_v14 = vpop.f32.mrf.mxu1 }
 0xc05   : > { %5533 = vtanh.f32 %v3909_v18  ;;  %v3908_v49 = vadd.f32 %v3869_v14, %v1912_v6  ;;  %v4650_v37 = vmul.f32 -1.442695, %v3909_v18 }
 0xc07   : > { %5535 = vtanh.f32 %v3908_v49  ;;  %v4649_v61 = vmul.f32 -1.442695, %v3908_v49 }
 0xc09   : > { %v5189_v62 = vpop.f32.mrf.mxu1 }
 0xc0a   : > { %v3911_v16 = vadd.f32 %v5189_v62, %v1927_v41 }
 0xc0b   : > { %v3879_v8 = vpop.f32.mrf.mxu1 }
 0xc0c   : > { %5537 = vtanh.f32 %v3911_v16  ;;  %v3910_v58 = vadd.f32 %v3879_v8, %v1922_v3  ;;  %v4652_v5 = vmul.f32 -1.442695, %v3911_v16 }
 0xc0d   : > { %v5192_v22 = vpop.f32.mrf.mxu1 }
 0xc0e   : > { %v3913_v33 = vadd.f32 %v5192_v22, %v1937_v7  ;;  %5539 = vtanh.f32 %v3910_v58  ;;  %v4651_v9 = vmul.f32 -1.442695, %v3910_v58 }
 0xc0f   : > { %v3889_v45 = vpop.f32.mrf.mxu1 }
 0xc10   : > { %v3912_v46 = vadd.f32 %v3889_v45, %v1932_v12  ;;  %5541 = vtanh.f32 %v3913_v33  ;;  %v4654_v59 = vmul.f32 -1.442695, %v3913_v33 }
 0xc11   : > { %v5195_v36 = vpop.f32.mrf.mxu1 }
 0xc12   : > { %v5534_v23 = vpop.eup %5533  ;;  %5543 = vtanh.f32 %v3912_v46  ;;  %v3915_v43 = vadd.f32 %v5195_v36, %v1947_v48  ;;  %v4653_v27 = vmul.f32 -1.442695, %v3912_v46 }
 0xc13   : > { %3990 = vrot.lane.b32.xlu1 %v5534_v23, %s5714_s30  ;;  %v3899_v28 = vpop.f32.mrf.mxu1 }
 0xc14   : > { %v5536_v34 = vpop.eup %5535  ;;  %v3914_v52 = vadd.f32 %v3899_v28, %v1942_v40  ;;  %5545 = vtanh.f32 %v3915_v43  ;;  %v4656_v13 = vmul.f32 -1.442695, %v3915_v43 }
 0xc15   : > { %3988 = vrot.lane.b32.xlu0 %v5536_v34, %s5714_s30 }
 0xc16   : > { %5547 = vtanh.f32 %v3914_v52  ;;  %v4655_v11 = vmul.f32 -1.442695, %v3914_v52 }
 0xc17   : > { %5549 = vpow2.f32 %v4650_v37 }
 0xc18   : > { %5551 = vpow2.f32 %v4649_v61 }
 0xc19   : > { %v5538_v35 = vpop.eup %5537  ;;  %5553 = vpow2.f32 %v4652_v5 }
 0xc1a   : > { %3994 = vrot.lane.b32.xlu1 %v5538_v35, %s5714_s30  ;;  %5555 = vpow2.f32 %v4651_v9 }
 0xc1b   : > { %v5540_v17 = vpop.eup %5539  ;;  %5557 = vpow2.f32 %v4654_v59 }
 0xc1c   : > { %3992 = vrot.lane.b32.xlu0 %v5540_v17, %s5714_s30  ;;  %5559 = vpow2.f32 %v4653_v27 }
 0xc1d   : > { %v5542_v44 = vpop.eup %5541 }
 0xc1e   : > { %3998 = vrot.lane.b32.xlu1 %v5542_v44, %s5714_s30 }
 0xc1f   : > { %v5544_v55 = vpop.eup %5543 }
 0xc20   : > { %3996 = vrot.lane.b32.xlu0 %v5544_v55, %s5714_s30 }
 0xc21   : > { %v5546_v10 = vpop.eup %5545 }
 0xc22   : > { %4002 = vrot.lane.b32.xlu1 %v5546_v10, %s5714_s30 }
 0xc23   : > { %v5548_v2 = vpop.eup %5547 }
 0xc24   : > { %4000 = vrot.lane.b32.xlu0 %v5548_v2, %s5714_s30  ;;  %v5550_v38 = vpop.eup %5549 }
 0xc25   : > { %v5552_v30 = vpop.eup %5551  ;;  %v3941_v29 = vadd.f32 1.0, %v5550_v38 }
 0xc26   : > { %v3940_v39 = vadd.f32 1.0, %v5552_v30  ;;  %v5554_v26 = vpop.eup %5553 }
 0xc27   : > { %5561 = vrcp.f32 %v3941_v29  ;;  %v5556_v63 = vpop.eup %5555  ;;  %v3943_v56 = vadd.f32 1.0, %v5554_v26 }
 0xc28   : > { %5563 = vpow2.f32 %v4656_v13  ;;  %v5558_v21 = vpop.eup %5557  ;;  %v3942_v19 = vadd.f32 1.0, %v5556_v63 }
 0xc29   : > { %5565 = vrcp.f32 %v3940_v39  ;;  %v5560_v20 = vpop.eup %5559  ;;  %v3945_v0 = vadd.f32 1.0, %v5558_v21 }
 0xc2a   : > { %5567 = vpow2.f32 %v4655_v11  ;;  %v3944_v24 = vadd.f32 1.0, %v5560_v20  ;;  %v4150_v20 = vld [vmem:[%s7314_s11 + $0x10] sm:$0xff] }
 0xc2b   : > { %5569 = vrcp.f32 %v3943_v56 }
 0xc2c   : > { %5571 = vrcp.f32 %v3942_v19  ;;  %v4151_v19 = vld [vmem:[%s7314_s11 + $0x18] sm:$0xff] }
 0xc2d   : > { %5573 = vrcp.f32 %v3945_v0  ;;  %5196 = vmatprep.subr.mxu0 %v4151_v19  ;;  %v4149_v0 = vld [vmem:[%s7314_s11 + $0x8] sm:$0xff] }
 0xc2e   : > { %5575 = vrcp.f32 %v3944_v24  ;;  %5197 = vmatpush3.msra.mxu0 %v4151_v19 }
 0xc2f   : > { %5198 = vmatprep.subr.mxu0 %v4150_v20 }
 0xc30   : > { %5199 = vmatpush3.msra.mxu0 %v4150_v20 }
 0xc31   : > { %5200 = vmatprep.subr.mxu0 %v4149_v0 }
 0xc32   : > { %5201 = vmatpush3.msra.mxu0 %v4149_v0 }
 0xc34   : > { %v7101_v25 = vpop.eup %5561 }
 0xc35   : > { %v5564_v15 = vpop.eup %5563  ;;  %v3973_v28 = vmul.f32 %v7101_v25, %v7012_v57 }
 0xc36   : > { %v7104_v32 = vpop.eup %5565  ;;  %v3947_v18 = vadd.f32 1.0, %v5564_v15 }
 0xc37   : > { %v5568_v53 = vpop.eup %5567  ;;  %v3972_v17 = vmul.f32 %v7104_v32, %v7017_v60 }
 0xc38   : > { %v3946_v49 = vadd.f32 1.0, %v5568_v53  ;;  %v7109_v41 = vpop.eup %5569  ;;  %5577 = vrcp.f32 %v3947_v18 }
 0xc39   : > { %v7112_v16 = vpop.eup %5571  ;;  %v3975_v10 = vmul.f32 %v7109_v41, %v7022_v47 }
 0xc3a   : > { %5579 = vrcp.f32 %v3946_v49  ;;  %v7116_v58 = vpop.eup %5573  ;;  %v3974_v61 = vmul.f32 %v7112_v16, %v7027_v51  ;;  %v4148_v49 = vld [vmem:[%s7314_s11] sm:$0xff] }
 0xc3b   : > { %v7120_v33 = vpop.eup %5575  ;;  %v3977_v9 = vmul.f32 %v7116_v58, %v7032_v54  ;;  %5202 = vmatprep.subr.mxu0 %v4148_v49 }
 0xc3c   : > { %v3976_v27 = vmul.f32 %v7120_v33, %v7037_v50  ;;  %5203 = vmatpush3.msra.mxu0 %v4148_v49 }
 0xc45   : > { %v7125_v23 = vpop.eup %5577 }
 0xc46   : > { %v3979_v29 = vmul.f32 %v7125_v23, %v7043_v4 }
 0xc47   : > { %v7128_v36 = vpop.eup %5579 }
 0xc48   : > { %v3978_v39 = vmul.f32 %v7128_v36, %v7049_v42 }
 0xc85   : > { %v3991_v31 = vpop.permute.xlu1 %3990 }
 0xc86   : > { %v4013_v1 = vmul.f32 %v7101_v25, %v3991_v31 }
 0xc87   : > { %v3989_v6 = vpop.permute.xlu0 %3988 }
 0xc88   : > { %4030 = vrot.lane.b32.xlu1 %v4013_v1, %s7327_s16  ;;  %v4012_v14 = vmul.f32 %v7104_v32, %v3989_v6 }
 0xc8a   : > { %4028 = vrot.lane.b32.xlu0 %v4012_v14, %s7327_s16 }
 0xc8c   : > { %v3995_v62 = vpop.permute.xlu1 %3994 }
 0xc8d   : > { %v4015_v3 = vmul.f32 %v7109_v41, %v3995_v62 }
 0xc8e   : > { %v3993_v8 = vpop.permute.xlu0 %3992 }
 0xc8f   : > { %4034 = vrot.lane.b32.xlu1 %v4015_v3, %s7327_s16  ;;  %v4014_v7 = vmul.f32 %v7112_v16, %v3993_v8 }
 0xc90   : > { %v3999_v22 = vpop.permute.xlu1 %3998 }
 0xc91   : > { %v4017_v12 = vmul.f32 %v7116_v58, %v3999_v22  ;;  %4032 = vrot.lane.b32.xlu0 %v4014_v7, %s7327_s16 }
 0xc92   : > { %v3997_v45 = vpop.permute.xlu0 %3996 }
 0xc93   : > { %v4016_v46 = vmul.f32 %v7120_v33, %v3997_v45  ;;  %4038 = vrot.lane.b32.xlu1 %v4017_v12, %s7327_s16 }
 0xc94   : > { %v4003_v34 = vpop.permute.xlu1 %4002 }
 0xc95   : > { %4036 = vrot.lane.b32.xlu0 %v4016_v46, %s7327_s16  ;;  %v4019_v48 = vmul.f32 %v7125_v23, %v4003_v34 }
 0xc96   : > { %v4001_v40 = vpop.permute.xlu0 %4000 }
 0xc97   : > { %v4018_v43 = vmul.f32 %v7128_v36, %v4001_v40  ;;  %4042 = vrot.lane.b32.xlu1 %v4019_v48, %s7327_s16 }
 0xc99   : > { %4040 = vrot.lane.b32.xlu0 %v4018_v43, %s7327_s16 }
 0xcfa   : > { %v4031_v35 = vpop.permute.xlu1 %4030 }
 0xcfb   : > { %v4053_v52 = vadd.f32 %v4031_v35, %v3973_v28 }
 0xcfc   : > { %v4029_v44 = vpop.permute.xlu0 %4028 }
 0xcfd   : > { %5581 = vtanh.f32 %v4053_v52  ;;  %v4052_v55 = vadd.f32 %v4029_v44, %v3972_v17 }
 0xcff   : > { %5583 = vtanh.f32 %v4052_v55 }
 0xd01   : > { %v4035_v2 = vpop.permute.xlu1 %4034 }
 0xd02   : > { %v4055_v37 = vadd.f32 %v4035_v2, %v3975_v10 }
 0xd03   : > { %v4033_v5 = vpop.permute.xlu0 %4032 }
 0xd04   : > { %5585 = vtanh.f32 %v4055_v37  ;;  %v4054_v57 = vadd.f32 %v4033_v5, %v3974_v61 }
 0xd05   : > { %v4039_v59 = vpop.permute.xlu1 %4038 }
 0xd06   : > { %5587 = vtanh.f32 %v4054_v57  ;;  %v4057_v60 = vadd.f32 %v4039_v59, %v3977_v9 }
 0xd07   : > { %v4037_v38 = vpop.permute.xlu0 %4036 }
 0xd08   : > { %5589 = vtanh.f32 %v4057_v60  ;;  %v4056_v47 = vadd.f32 %v4037_v38, %v3976_v27 }
 0xd09   : > { %v4043_v54 = vpop.permute.xlu1 %4042 }
 0xd0a   : > { %v5582_v30 = vpop.eup %5581  ;;  %5591 = vtanh.f32 %v4056_v47  ;;  %v4059_v13 = vadd.f32 %v4043_v54, %v3979_v29 }
 0xd0b   : > { %4078 = vrot.lane.b32.xlu1 %v5582_v30, %s5714_s30  ;;  %v4041_v50 = vpop.permute.xlu0 %4040 }
 0xd0c   : > { %v5584_v51 = vpop.eup %5583  ;;  %5593 = vtanh.f32 %v4059_v13  ;;  %v4058_v26 = vadd.f32 %v4041_v50, %v3978_v39 }
 0xd0d   : > { %4076 = vrot.lane.b32.xlu0 %v5584_v51, %s5714_s30 }
 0xd0e   : > { %5595 = vtanh.f32 %v4058_v26 }
 0xd11   : > { %v5586_v11 = vpop.eup %5585 }
 0xd12   : > { %4082 = vrot.lane.b32.xlu1 %v5586_v11, %s5714_s30 }
 0xd13   : > { %v5588_v63 = vpop.eup %5587 }
 0xd14   : > { %4080 = vrot.lane.b32.xlu0 %v5588_v63, %s5714_s30 }
 0xd15   : > { %v5590_v56 = vpop.eup %5589 }
 0xd16   : > { %4086 = vrot.lane.b32.xlu1 %v5590_v56, %s5714_s30 }
 0xd17   : > { %v5592_v4 = vpop.eup %5591 }
 0xd18   : > { %4084 = vrot.lane.b32.xlu0 %v5592_v4, %s5714_s30 }
 0xd19   : > { %v5594_v21 = vpop.eup %5593 }
 0xd1a   : > { %4090 = vrot.lane.b32.xlu1 %v5594_v21, %s5714_s30 }
 0xd1b   : > { %v5596_v42 = vpop.eup %5595 }
 0xd1c   : > { %4088 = vrot.lane.b32.xlu0 %v5596_v42, %s5714_s30 }
 0xd7d   : > { %v4079_v24 = vpop.permute.xlu1 %4078 }
 0xd7e   : > { %v4101_v31 = vmul.f32 %v7101_v25, %v4079_v24 }
 0xd7f   : > { %v4077_v1 = vpop.permute.xlu0 %4076 }
 0xd80   : > { %v4117_v15 = vmul.f32 0.70710677, %v4101_v31  ;;  %v4100_v53 = vmul.f32 %v7104_v32, %v4077_v1  ;;  %v4109_v34 = vmul.f32 0.5, %v4101_v31  ;;  %v4657_v31 = vld [vmem:[%s7315_s12] ss:$0 sm:$0xff] }
 0xd82   : > { %5597 = verf.f32 %v4117_v15  ;;  %v4116_v6 = vmul.f32 0.70710677, %v4100_v53  ;;  %v4108_v28 = vmul.f32 0.5, %v4100_v53 }
 0xd84   : > { %v4083_v18 = vpop.permute.xlu1 %4082  ;;  %5599 = verf.f32 %v4116_v6 }
 0xd85   : > { %v4103_v14 = vmul.f32 %v7109_v41, %v4083_v18 }
 0xd86   : > { %v4081_v3 = vpop.permute.xlu0 %4080 }
 0xd87   : > { %v4119_v62 = vmul.f32 0.70710677, %v4103_v14  ;;  %v4102_v8 = vmul.f32 %v7112_v16, %v4081_v3  ;;  %v4111_v10 = vmul.f32 0.5, %v4103_v14 }
 0xd88   : > { %v4087_v25 = vpop.permute.xlu1 %4086 }
 0xd89   : > { %5601 = verf.f32 %v4119_v62  ;;  %v4118_v7 = vmul.f32 0.70710677, %v4102_v8  ;;  %v4105_v32 = vmul.f32 %v7116_v58, %v4087_v25  ;;  %v4110_v57 = vmul.f32 0.5, %v4102_v8 }
 0xd8a   : > { %v4085_v22 = vpop.permute.xlu0 %4084 }
 0xd8b   : > { %5603 = verf.f32 %v4118_v7  ;;  %v4121_v12 = vmul.f32 0.70710677, %v4105_v32  ;;  %v4104_v41 = vmul.f32 %v7120_v33, %v4085_v22  ;;  %v4113_v60 = vmul.f32 0.5, %v4105_v32 }
 0xd8c   : > { %v4091_v16 = vpop.permute.xlu1 %4090 }
 0xd8d   : > { %5605 = verf.f32 %v4121_v12  ;;  %v4120_v45 = vmul.f32 0.70710677, %v4104_v41  ;;  %v4107_v52 = vmul.f32 %v7125_v23, %v4091_v16  ;;  %v4112_v47 = vmul.f32 0.5, %v4104_v41 }
 0xd8e   : > { %v4089_v17 = vpop.permute.xlu0 %4088 }
 0xd8f   : > { %v5598_v46 = vpop.eup %5597  ;;  %5607 = verf.f32 %v4120_v45  ;;  %v4123_v44 = vmul.f32 0.70710677, %v4107_v52  ;;  %v4106_v33 = vmul.f32 %v7128_v36, %v4089_v17  ;;  %v4115_v54 = vmul.f32 0.5, %v4107_v52 }
 0xd90   : > { %v4133_v48 = vadd.f32 1.0, %v5598_v46 }
 0xd91   : > { %v5600_v40 = vpop.eup %5599  ;;  %5609 = verf.f32 %v4123_v44  ;;  %v4122_v37 = vmul.f32 0.70710677, %v4106_v33  ;;  %v4114_v50 = vmul.f32 0.5, %v4106_v33 }
 0xd92   : > { %v4141_v43 = vmul.f32 %v4133_v48, %v4109_v34  ;;  %v4132_v35 = vadd.f32 1.0, %v5600_v40 }
 0xd93   : > { %5611 = verf.f32 %v4122_v37 }
 0xd94   : > { %4169 = vrot.lane.b32.xlu1 %v4141_v43, %s7327_s16  ;;  %v4140_v58 = vmul.f32 %v4132_v35, %v4108_v28 }
 0xd96   : > { %v5602_v55 = vpop.eup %5601  ;;  %4167 = vrot.lane.b32.xlu0 %v4140_v58, %s7327_s16 }
 0xd97   : > { %v4135_v2 = vadd.f32 1.0, %v5602_v55 }
 0xd98   : > { %v5604_v61 = vpop.eup %5603 }
 0xd99   : > { %v4143_v5 = vmul.f32 %v4135_v2, %v4111_v10  ;;  %v4134_v9 = vadd.f32 1.0, %v5604_v61 }
 0xd9a   : > { %v5606_v23 = vpop.eup %5605 }
 0xd9b   : > { %4173 = vrot.lane.b32.xlu1 %v4143_v5, %s7327_s16  ;;  %v4142_v59 = vmul.f32 %v4134_v9, %v4110_v57  ;;  %v4137_v27 = vadd.f32 1.0, %v5606_v23 }
 0xd9c   : > { %v5608_v38 = vpop.eup %5607 }
 0xd9d   : > { %v4145_v36 = vmul.f32 %v4137_v27, %v4113_v60  ;;  %v4136_v30 = vadd.f32 1.0, %v5608_v38  ;;  %4171 = vrot.lane.b32.xlu0 %v4142_v59, %s7327_s16 }
 0xd9e   : > { %v5610_v29 = vpop.eup %5609 }
 0xd9f   : > { %v4144_v51 = vmul.f32 %v4136_v30, %v4112_v47  ;;  %4177 = vrot.lane.b32.xlu1 %v4145_v36, %s7327_s16  ;;  %v4139_v13 = vadd.f32 1.0, %v5610_v29 }
 0xda0   : > { %v5612_v39 = vpop.eup %5611 }
 0xda1   : > { %4175 = vrot.lane.b32.xlu0 %v4144_v51, %s7327_s16  ;;  %v4147_v11 = vmul.f32 %v4139_v13, %v4115_v54  ;;  %v4138_v26 = vadd.f32 1.0, %v5612_v39  ;;  %v4393_v39 = vld [vmem:[%s6638_s22 + $0x8] sm:$0xff] }
 0xda3   : > { %v4146_v63 = vmul.f32 %v4138_v26, %v4114_v50  ;;  %4181 = vrot.lane.b32.xlu1 %v4147_v11, %s7327_s16 }
 0xda5   : > { %4179 = vrot.lane.b32.xlu0 %v4146_v63, %s7327_s16  ;;  %v4392_v63 = vld [vmem:[%s6638_s22] sm:$0xff]  ;;  %s7263_s16 = scalar_lea.sflag [#allocation4], %s7328_s29 }
 0xe06   : > { %v4170_v4 = vpop.permute.xlu1 %4169 }
 0xe08   : > { %v4168_v56 = vpop.permute.xlu0 %4167 }
 0xe09   : > { %5204 = vmatprep.mubr.msk.f32.mxu0 %vm1325_vm1, %v4168_v56 }
 0xe0a   : > { %5205 = vmatmul.mubr.msk.f32.vlgmr.msra.gmra.mxu0 %vm1325_vm1, %v4170_v4 }
 0xe0d   : > { %v4174_v21 = vpop.permute.xlu1 %4173 }
 0xe0f   : > { %v4172_v42 = vpop.permute.xlu0 %4171 }
 0xe10   : > { %5207 = vmatprep.mubr.msk.f32.mxu0 %vm1325_vm1, %v4172_v42  ;;  %v4395_v42 = vld [vmem:[%s6638_s22 + $0x18] sm:$0xff] }
 0xe11   : > { %5208 = vmatmul.mubr.msk.f32.gmra.mxu0 %vm1325_vm1, %v4174_v21  ;;  %v4178_v20 = vpop.permute.xlu1 %4177 }
 0xe13   : > { %v4176_v19 = vpop.permute.xlu0 %4175 }
 0xe14   : > { %5210 = vmatprep.mubr.msk.f32.mxu0 %vm1325_vm1, %v4176_v19 }
 0xe15   : > { %5211 = vmatmul.mubr.msk.f32.gmra.mxu0 %vm1325_vm1, %v4178_v20  ;;  %v4182_v24 = vpop.permute.xlu1 %4181 }
 0xe17   : > { %v4180_v0 = vpop.permute.xlu0 %4179 }
 0xe18   : > { %5213 = vmatprep.mubr.msk.f32.mxu0 %vm1325_vm1, %v4180_v0 }
 0xe19   : > { %5214 = vmatmul.mubr.msk.f32.gmra.mxu0 %vm1325_vm1, %v4182_v24  ;;  %v4394_v24 = vld [vmem:[%s6638_s22 + $0x10] sm:$0xff] }
 0xeca   : > { %v5206_v15 = vpop.f32.mrf.mxu0 }
 0xecb   : > { %v7196_v1 = vadd.f32 %v5206_v15, %v4657_v31 }
 0xecc   : > { %v4265_v53 = vpop.f32.mrf.mxu0 }
 0xecd   : > { %v4667_v6 = vmul.f32 -1.442695, %v7196_v1  ;;  %v7199_v18 = vadd.f32 %v4657_v31, %v4265_v53  ;;  %v4397_v53 = vld [vmem:[%s6638_s22 + $0x28] sm:$0xff] }
 0xecf   : > { %5613 = vpow2.f32 %v4667_v6  ;;  %v4666_v14 = vmul.f32 -1.442695, %v7199_v18 }
 0xed1   : > { %5615 = vpow2.f32 %v4666_v14  ;;  %v5209_v49 = vpop.f32.mrf.mxu0 }
 0xed2   : > { %v7202_v62 = vadd.f32 %v5209_v49, %v4657_v31  ;;  %v4396_v49 = vld [vmem:[%s6638_s22 + $0x20] sm:$0xff] }
 0xed3   : > { %v4275_v3 = vpop.f32.mrf.mxu0 }
 0xed4   : > { %v4669_v8 = vmul.f32 -1.442695, %v7202_v62  ;;  %v7205_v25 = vadd.f32 %v4657_v31, %v4275_v3 }
 0xed5   : > { %v5212_v7 = vpop.f32.mrf.mxu0 }
 0xed6   : > { %5617 = vpow2.f32 %v4669_v8  ;;  %v4668_v32 = vmul.f32 -1.442695, %v7205_v25  ;;  %v7208_v22 = vadd.f32 %v5212_v7, %v4657_v31 }
 0xed7   : > { %v4285_v12 = vpop.f32.mrf.mxu0 }
 0xed8   : > { %5619 = vpow2.f32 %v4668_v32  ;;  %v4671_v41 = vmul.f32 -1.442695, %v7208_v22  ;;  %v7211_v45 = vadd.f32 %v4657_v31, %v4285_v12  ;;  %v4398_v12 = vld [vmem:[%s6638_s22 + $0x30] sm:$0xff] }
 0xed9   : > { %v5215_v43 = vpop.f32.mrf.mxu0 }
 0xeda   : > { %5621 = vpow2.f32 %v4671_v41  ;;  %v4670_v46 = vmul.f32 -1.442695, %v7211_v45  ;;  %v7214_v28 = vadd.f32 %v5215_v43, %v4657_v31 }
 0xedb   : > { %v4295_v35 = vpop.f32.mrf.mxu0 }
 0xedc   : > { %v5614_v34 = vpop.eup %5613  ;;  %5623 = vpow2.f32 %v4670_v46  ;;  %v4673_v52 = vmul.f32 -1.442695, %v7214_v28  ;;  %v7217_v17 = vadd.f32 %v4657_v31, %v4295_v35 }
 0xedd   : > { %v4329_v48 = vadd.f32 1.0, %v5614_v34 }
 0xede   : > { %v5616_v40 = vpop.eup %5615  ;;  %v4672_v44 = vmul.f32 -1.442695, %v7217_v17 }
 0xedf   : > { %5625 = vrcp.f32 %v4329_v48  ;;  %v4328_v16 = vadd.f32 1.0, %v5616_v40 }
 0xee1   : > { %5627 = vrcp.f32 %v4328_v16 }
 0xee2   : > { %5629 = vpow2.f32 %v4673_v52 }
 0xee3   : > { %v5618_v58 = vpop.eup %5617  ;;  %5631 = vpow2.f32 %v4672_v44 }
 0xee4   : > { %v4331_v33 = vadd.f32 1.0, %v5618_v58 }
 0xee5   : > { %v5620_v55 = vpop.eup %5619 }
 0xee6   : > { %5633 = vrcp.f32 %v4331_v33  ;;  %v4330_v10 = vadd.f32 1.0, %v5620_v55 }
 0xee7   : > { %v5622_v2 = vpop.eup %5621 }
 0xee8   : > { %5635 = vrcp.f32 %v4330_v10  ;;  %v4333_v37 = vadd.f32 1.0, %v5622_v2 }
 0xee9   : > { %v5624_v61 = vpop.eup %5623 }
 0xeea   : > { %5637 = vrcp.f32 %v4333_v37  ;;  %v4332_v5 = vadd.f32 1.0, %v5624_v61 }
 0xeec   : > { %v5626_v57 = vpop.eup %5625  ;;  %5639 = vrcp.f32 %v4332_v5 }
 0xeed   : > { %4362 = vrot.lane.b32.xlu1 %v5626_v57, %s5716_s24 }
 0xeee   : > { %v5628_v9 = vpop.eup %5627 }
 0xeef   : > { %4360 = vrot.lane.b32.xlu0 %v5628_v9, %s5716_s24  ;;  %v5630_v23 = vpop.eup %5629 }
 0xef0   : > { %v4335_v59 = vadd.f32 1.0, %v5630_v23  ;;  %v5632_v60 = vpop.eup %5631 }
 0xef1   : > { %v4334_v38 = vadd.f32 1.0, %v5632_v60 }
 0xef2   : > { %5641 = vrcp.f32 %v4335_v59 }
 0xef3   : > { %v5634_v27 = vpop.eup %5633  ;;  %5643 = vrcp.f32 %v4334_v38 }
 0xef4   : > { %4366 = vrot.lane.b32.xlu1 %v5634_v27, %s5716_s24 }
 0xef5   : > { %v5636_v36 = vpop.eup %5635 }
 0xef6   : > { %4364 = vrot.lane.b32.xlu0 %v5636_v36, %s5716_s24 }
 0xef7   : > { %v5638_v47 = vpop.eup %5637 }
 0xef8   : > { %4370 = vrot.lane.b32.xlu1 %v5638_v47, %s5716_s24 }
 0xef9   : > { %v5640_v30 = vpop.eup %5639 }
 0xefa   : > { %4368 = vrot.lane.b32.xlu0 %v5640_v30, %s5716_s24 }
 0xeff   : > { %v5642_v51 = vpop.eup %5641 }
 0xf00   : > { %4374 = vrot.lane.b32.xlu1 %v5642_v51, %s5716_s24  ;;  %v5644_v29 = vpop.eup %5643 }
 0xf01   : > { %4372 = vrot.lane.b32.xlu0 %v5644_v29, %s5716_s24  ;;  %s5717_s24 = smov [#allocation3]  }
 0xf02   : > { %s5655_s17 = sshll.u32 %s5717_s24, 4  ;;  %s5656_s17 = int_to_ptr.vmem [resolvable:$false] %s5655_s17 }
 0xf03   : > { %s5657_s20 = scalar_lea.vmem %s5656_s17, 2048  ;;  %p5658_p0 = scmp.lt.s32.totalorder %s7255_s15, %s5656_s17 }
 0xf04   : > { %p5659_p1 = scmp.lt.s32.totalorder %s5657_s20, %s5651_s23 }
 0xf06   : > { %p5660_p2 = por %p5659_p1, %p5658_p0 }
 0xf08   : > { %p5661_p3 = pnand %p5660_p2, %p5654_p13 }
 0xf5f   : > { %v4363_v54 = vpop.permute.xlu1 %4362 }
 0xf60   : > { %v4385_v13 = vmul.f32 %v4363_v54, %v7196_v1 }
 0xf61   : > { %v4361_v11 = vpop.permute.xlu0 %4360 }
 0xf62   : > { %v4401_v50 = vadd.f32 %v4393_v39, %v4385_v13  ;;  %v4384_v26 = vmul.f32 %v4361_v11, %v7199_v18 }
 0xf64   : > { %4409 = vst.msk [vmem:[%s6638_s22 + $0x8] sm:$0xff] %vm1325_vm1, %v4401_v50  ;;  %v4400_v56 = vadd.f32 %v4392_v63, %v4384_v26 }
 0xf66   : > { %4408 = vst.msk [vmem:[%s6638_s22] sm:$0xff] %vm1325_vm1, %v4400_v56  ;;  %v4367_v4 = vpop.permute.xlu1 %4366 }
 0xf67   : > { %v4387_v21 = vmul.f32 %v4367_v4, %v7202_v62 }
 0xf68   : > { %v4365_v19 = vpop.permute.xlu0 %4364 }
 0xf69   : > { %v4403_v20 = vadd.f32 %v4395_v42, %v4387_v21  ;;  %v4386_v0 = vmul.f32 %v4365_v19, %v7205_v25  ;;  %v4399_v25 = vld [vmem:[%s6638_s22 + $0x38] sm:$0xff] }
 0xf6a   : > { %v4371_v31 = vpop.permute.xlu1 %4370 }
 0xf6b   : > { %4411 = vst.msk [vmem:[%s6638_s22 + $0x18] sm:$0xff] %vm1325_vm1, %v4403_v20  ;;  %v4402_v15 = vadd.f32 %v4394_v24, %v4386_v0  ;;  %v4389_v1 = vmul.f32 %v4371_v31, %v7208_v22 }
 0xf6c   : > { %v4369_v6 = vpop.permute.xlu0 %4368 }
 0xf6d   : > { %4410 = vst.msk [vmem:[%s6638_s22 + $0x10] sm:$0xff] %vm1325_vm1, %v4402_v15  ;;  %v4405_v18 = vadd.f32 %v4397_v53, %v4389_v1  ;;  %v4388_v14 = vmul.f32 %v4369_v6, %v7211_v45 }
 0xf6f   : > { %4413 = vst.msk [vmem:[%s6638_s22 + $0x28] sm:$0xff] %vm1325_vm1, %v4405_v18  ;;  %v4404_v62 = vadd.f32 %v4396_v49, %v4388_v14 }
 0xf71   : > { %4412 = vst.msk [vmem:[%s6638_s22 + $0x20] sm:$0xff] %vm1325_vm1, %v4404_v62 }
 0xf72   : > { %v4375_v3 = vpop.permute.xlu1 %4374 }
 0xf73   : > { %v4391_v8 = vmul.f32 %v4375_v3, %v7214_v28  ;;  %v4373_v7 = vpop.permute.xlu0 %4372 }
 0xf74   : > { %v4390_v22 = vmul.f32 %v4373_v7, %v7217_v17 }
 0xf75   : > { %v4407_v32 = vadd.f32 %v4399_v25, %v4391_v8 }
 0xf76   : > { %v4406_v41 = vadd.f32 %v4398_v12, %v4390_v22 }
 0xf77   : > { %4415 = vst.msk [vmem:[%s6638_s22 + $0x38] sm:$0xff] %vm1325_vm1, %v4407_v32 }
 0xf78   : > { %4414 = vst.msk [vmem:[%s6638_s22 + $0x30] sm:$0xff] %vm1325_vm1, %v4406_v41 }
 0xf79   : > { %5664 = shalt.err (!%p5661_p3)
}
 0xf7a   : > { %s5665_s22 = scalar_lea.hbm %s7253_s21, 1024  ;;  %s5669_s24 = scalar_lea.hbm %s7316_s13, 2048 }
 0xf7b   : > { %p5666_p4 = scmp.ne.s32.totalorder %s7253_s21, %s5665_s22  ;;  %p5670_p9 = scmp.lt.s32.totalorder %s7253_s21, %s7316_s13 }
 0xf7c   : > { %p5671_p10 = scmp.lt.s32.totalorder %s5669_s24, %s5665_s22 }
 0xf7d   : > { %p5667_p7 = pnand %p5666_p4, %p5828_p5 }
 0xf7e   : > { %p5672_p11 = por %p5671_p10, %p5670_p9 }
 0xf7f   : > { %p5668_p8 = pneg %p5667_p7 }
 0xf81   : > { %p5673_p12 = pnand %p5672_p11, %p5668_p8 }
 0xf83   : > { %5676 = shalt.err (!%p5673_p12)
}
 0xf84   : > { %s5718_s23 = smov 128   ;;  %s5719_s17 = smov 8  }
 0xf85   : > { %5216 = dma.vmem_to_hbm [thread:$0]  (%p5828_p5), %s7255_s15, 1024, %s7253_s21, %s7263_s16, %s5718_s23, %s5718_s23, %s5719_s17  }
 0xf86 PF: > { %p5222_p13 = scmp.ge.s32.totalorder %s5711_s28, 2  ;;  %s4445_s20 = sand.u32 1, %s5699_s25  }
 0xf87   : > { %s4446_s0 = scalar_lea.sflag [#allocation4], %s4445_s20 }
 0xf88   : > { %p5219_p0 = pnand %p5222_p13, %p5832_p6 }
 0xf8a   : > { %p5220_p1 = pneg %p5219_p0 }
 0xf8c   : > { %5694 = dma.done.wait (%p5220_p1), %s4446_s0, 1024  }
 0xf8d   : > { %5696 = vsyncadd (%p5220_p1), %s4446_s0, 4294966272  ;;  %s7329_s1 = sld [smem:[#allocation6_spill]]  ;;  %p23_p2 = scmp.ge.s32.totalorder %s5815_s14, 4  }
 0xf8e   : > { %s7330_s25 = smov %s5703_s26  ;;  %s7331_s26 = smov %s5707_s27 }
 0xf8f   : > { %s7333_s28 = smov %s5815_s14  ;;  %25 = sbr.rel (!%p23_p2) target bundleno = 6 (0x6), region = 110 }
 0xf93   : > { %s7332_s27 = smov %s7329_s1 }
 0xf94   :  { %4451 = vsyncpa [#allocation4], 1 }
 0xf95   :  { %4453 = vsyncpa [#allocation4 + $0x1], 1 }

</bundles_post_ra>
